<compile_context>
chip_gen: v7x
topology: tpu7x:2x2x1
jax: 0.10.0
libtpu: 0.0.40
codegen_flags: <defaults>
</compile_context>

<pallas_src>
import jax
import jax.numpy as jnp
from jax import lax
from jax.experimental import pallas as pl
from jax.experimental.pallas import tpu as pltpu

LANE = 128
SUBLANE = 8


def _round_up(x, m):
    return ((x + m - 1) // m) * m


def _pick_row_tiles(h):
    # Largest of {4, 2} that divides H and keeps >= 8 output rows per tile.
    for nt in (4, 2):
        if h % nt == 0 and h // nt >= 8:
            return nt
    return 1


def _vmem_limit_bytes():
    # ~75% of physical VMEM (≈48 MiB on v7x, ≈96 MiB on v5e/v6e); never the full cap.
    try:
        cap = getattr(pltpu.get_tpu_info(), "vmem_capacity_bytes", None)
        return int(cap * 3 // 4) if cap else None
    except Exception:
        return None


def basic_block_pallas(x_nchw, w1_oihw, w2_oihw, bn1, bn2, eps=1e-5,
                       compute_dtype=jnp.bfloat16, row_tiles=None):
    """x_nchw: (N, C, H, W) f32.  bn{1,2}: dict(gamma, beta, mean, var), shape (C,)."""
    N, C, H, W = x_nchw.shape
    Cout = w1_oihw.shape[0]
    assert C == Cout, "stride=1 / downsample=None requires inplanes == planes"

    Cp = _round_up(C, LANE)        # lane-dense channels
    Wr = _round_up(W, SUBLANE)     # sublane-aligned width -> layout-trivial (H,W) merges
    Wp = Wr + 2
    nt = row_tiles if row_tiles is not None else _pick_row_tiles(H)
    assert H % nt == 0, "row_tiles must divide H"
    TH = H // nt

    # ---- layout: NCHW -> NHWC, pad channels -> Cp, width -> Wr (zeros), conv halo ----
    x_nhwc = jnp.transpose(x_nchw, (0, 2, 3, 1)).astype(jnp.float32)
    x_nhwc = jnp.pad(x_nhwc, ((0, 0), (0, 0), (0, Wr - W), (0, Cp - C)))
    # 2-row halo top/bottom (fused conv1->conv2 needs 2 input halo rows per row-tile),
    # 1-col halo left/right.  Cast to the (bf16) compute dtype once, here.
    x_pad = jnp.pad(x_nhwc, ((0, 0), (2, 2), (1, 1), (0, 0))).astype(compute_dtype)
    # Pre-materialized overlapping row tiles: (N, nt, TH+4, Wp, Cp).
    x_tiles = jnp.stack([x_pad[:, t * TH: t * TH + TH + 4] for t in range(nt)], axis=1)

    # ---- fold BN into conv weights/bias; stack dy taps per dx -> (3, 3*Cp, Cp) ----
    def fold(w_oihw, bn):
        scale = (bn["gamma"] / jnp.sqrt(bn["var"] + eps)).astype(jnp.float32)
        shift = (bn["beta"] - bn["mean"] * scale).astype(jnp.float32)
        w = jnp.transpose(w_oihw, (2, 3, 1, 0)).astype(jnp.float32)   # OIHW -> (ky,kx,Ci,Co)
        w = w * scale[None, None, None, :]                            # fold BN scale
        w = jnp.pad(w, ((0, 0), (0, 0), (0, Cp - w.shape[2]), (0, Cp - w.shape[3])))
        # (ky,kx,Cp,Cp) -> (kx, 3*Cp, Cp): row dy*Cp + c of wk[dx] is w[dy, dx, c, :].
        wk = jnp.transpose(w, (1, 0, 2, 3)).reshape(3, 3 * Cp, Cp)
        shift = jnp.pad(shift, (0, Cp - shift.shape[0])).reshape(1, Cp)
        return wk.astype(compute_dtype), shift

    w1, b1 = fold(w1_oihw, bn1)
    w2, b2 = fold(w2_oihw, bn2)

    def kernel(xt_ref, w1_ref, w2_ref, b1_ref, b2_ref, o_ref, mid_ref):
        # xt_ref : (TH+4, Wp, Cp)  padded input row-tile (compute dtype)
        # w*_ref : (3, 3*Cp, Cp)   per-dx stacked, BN-folded weights (compute dtype)
        # b*_ref : (1, Cp)         folded BN shifts, f32
        # o_ref  : (TH, Wr, Cp)    output row-tile, f32
        # mid_ref: (TH+2, Wp, Cp)  relu(bn1(conv1)) rows a-1..b  (+1-col halo), compute dtype
        def conv3x3(src_ref, w_ref, out_rows):
            # 3 MXU matmuls with K = 3*Cp (dy taps fused along K), f32 accumulation.
            acc = None
            for dx in range(3):
                xs = src_ref[:, dx:dx + Wr, :]                # one sublane-shifted load / dx
                lhs = jnp.concatenate(
                    [xs[dy:dy + out_rows] for dy in range(3)], axis=-1)
                lhs = lhs.reshape(out_rows * Wr, 3 * Cp)      # layout-trivial (Wr % 8 == 0)
                m = jnp.dot(lhs, w_ref[dx], preferred_element_type=jnp.float32)
                acc = m if acc is None else acc + m
            return acc

        # ---- conv1 + bn1 + relu over TH+2 rows (1-row halo each side for conv2) ----
        out1 = jnp.maximum(conv3x3(xt_ref, w1_ref, TH + 2) + b1_ref[...], 0.0)
        mid_ref[:, 1:Wr + 1, :] = out1.reshape(TH + 2, Wr, Cp).astype(mid_ref.dtype)
        # Zero the column halo + the zero-padded garbage columns (>= real W).
        mid_ref[:, 0:1, :] = jnp.zeros((TH + 2, 1, Cp), mid_ref.dtype)
        mid_ref[:, W + 1:Wp, :] = jnp.zeros((TH + 2, Wp - W - 1, Cp), mid_ref.dtype)
        # At global top/bottom tiles conv2 must see zeros (padding=1), not conv1 of the
        # zero-padded border rows.
        t = pl.program_id(1)

        @pl.when(t == 0)
        def _():
            mid_ref[0:1, :, :] = jnp.zeros((1, Wp, Cp), mid_ref.dtype)

        @pl.when(t == pl.num_programs(1) - 1)
        def _():
            mid_ref[TH + 1:TH + 2, :, :] = jnp.zeros((1, Wp, Cp), mid_ref.dtype)

        # ---- conv2 + bn2 + residual + relu (residual from the same input stream) ----
        out2 = conv3x3(mid_ref, w2_ref, TH) + b2_ref[...]
        res = xt_ref[2:TH + 2, 1:Wr + 1, :].astype(jnp.float32)
        out2 = out2.reshape(TH, Wr, Cp) + res
        o_ref[...] = jnp.maximum(out2, 0.0).astype(o_ref.dtype)

    out_nhwc = pl.pallas_call(
        kernel,
        out_shape=jax.ShapeDtypeStruct((N, H, Wr, Cp), jnp.float32),
        grid=(N, nt),
        in_specs=[
            pl.BlockSpec((None, None, TH + 4, Wp, Cp), lambda n, t: (n, t, 0, 0, 0)),
            pl.BlockSpec((3, 3 * Cp, Cp), lambda n, t: (0, 0, 0)),   # w1 (BN-folded)
            pl.BlockSpec((3, 3 * Cp, Cp), lambda n, t: (0, 0, 0)),   # w2 (BN-folded)
            pl.BlockSpec((1, Cp), lambda n, t: (0, 0)),              # b1
            pl.BlockSpec((1, Cp), lambda n, t: (0, 0)),              # b2
        ],
        out_specs=pl.BlockSpec((None, TH, Wr, Cp), lambda n, t: (n, t, 0, 0)),
        scratch_shapes=[pltpu.VMEM((TH + 2, Wp, Cp), compute_dtype)],
        compiler_params=pltpu.CompilerParams(
            dimension_semantics=("parallel", "parallel"),
            vmem_limit_bytes=_vmem_limit_bytes(),
        ),
    )(x_tiles, w1, w2, b1, b2)

    # drop width/channel padding, NHWC -> NCHW to match PyTorch layout
    return jnp.transpose(out_nhwc[:, :, :W, :C], (0, 3, 1, 2))


def basic_block_ref(x_nchw, w1_oihw, w2_oihw, bn1, bn2, eps=1e-5):
    """Pure-JAX reference (NCHW, lax.conv) for correctness checking."""
    def conv(x, w):
        return lax.conv_general_dilated(
            x, w, window_strides=(1, 1), padding=((1, 1), (1, 1)),
            dimension_numbers=("NCHW", "OIHW", "NCHW"))

    def bn(x, p):
        scale = p["gamma"] / jnp.sqrt(p["var"] + eps)
        shift = p["beta"] - p["mean"] * scale
        return x * scale.reshape(1, -1, 1, 1) + shift.reshape(1, -1, 1, 1)

    out = jnp.maximum(bn(conv(x_nchw, w1_oihw), bn1), 0.0)
    out = bn(conv(out, w2_oihw), bn2)
    return jnp.maximum(out + x_nchw, 0.0)


if __name__ == "__main__":
    key = jax.random.PRNGKey(0)
    N, C, H, W = 2, 4, 16, 16            # inplanes = planes = 4, stride = 1
    planes = C

    k = jax.random.split(key, 8)
    x = jax.random.normal(k[0], (N, C, H, W), dtype=jnp.float32)
    w1 = jax.random.normal(k[1], (planes, C, 3, 3), dtype=jnp.float32) * 0.2
    w2 = jax.random.normal(k[2], (planes, planes, 3, 3), dtype=jnp.float32) * 0.2
    bn1 = dict(gamma=jax.random.uniform(k[3], (planes,), minval=0.5, maxval=1.5),
               beta=jax.random.normal(k[4], (planes,)) * 0.1,
               mean=jax.random.normal(k[5], (planes,)) * 0.1,
               var=jax.random.uniform(k[6], (planes,), minval=0.5, maxval=1.5))
    bn2 = dict(gamma=jnp.ones((planes,), jnp.float32),
               beta=jnp.zeros((planes,), jnp.float32),
               mean=jax.random.normal(k[7], (planes,)) * 0.1,
               var=jnp.ones((planes,), jnp.float32))

    ref = basic_block_ref(x, w1, w2, bn1, bn2)

    # f32 matmul path (tight check)
    out_f32 = jax.block_until_ready(
        basic_block_pallas(x, w1, w2, bn1, bn2, compute_dtype=jnp.float32))
    assert out_f32.shape == (N, C, H, W)
    assert jnp.allclose(out_f32, ref, atol=1e-4, rtol=1e-4), "f32 kernel mismatch"

    # default bf16 matmul path (MXU-native; f32 accumulation & epilogue)
    out_bf16 = jax.block_until_ready(basic_block_pallas(x, w1, w2, bn1, bn2))
    assert out_bf16.shape == (N, C, H, W)
    assert jnp.allclose(out_bf16, ref, atol=0.2, rtol=0.05), "bf16 kernel mismatch"

    print("KERNEL_OK")
</pallas_src>

<mosaic_0001>
module attributes {stable_mosaic.version = 11 : i64} {
  func.func @kernel(%arg0: i32, %arg1: i32, %arg2: memref<1x1x12x18x128xf32, #tpu.memory_space<vmem>>, %arg3: memref<3x384x128xf32, #tpu.memory_space<vmem>>, %arg4: memref<3x384x128xf32, #tpu.memory_space<vmem>>, %arg5: memref<1x128xf32, #tpu.memory_space<vmem>>, %arg6: memref<1x128xf32, #tpu.memory_space<vmem>>, %arg7: memref<1x8x16x128xf32, #tpu.memory_space<vmem>>, %arg8: memref<10x18x128xf32, #tpu.memory_space<vmem>>) attributes {dimension_semantics = [#tpu.dimension_semantics<parallel>, #tpu.dimension_semantics<parallel>], iteration_bounds = array<i64: 2, 2>, scalar_prefetch = 0 : i64, scratch_operands = 1 : i64, tpu.core_type = #tpu.core_type<tc>, window_params = [{transform_indices = @transform_0, window_bounds = array<i64: 1, 1, 12, 18, 128>}, {pipeline_mode = #tpu.pipeline_mode<synchronous>, transform_indices = @transform_1, window_bounds = array<i64: 3, 384, 128>}, {pipeline_mode = #tpu.pipeline_mode<synchronous>, transform_indices = @transform_2, window_bounds = array<i64: 3, 384, 128>}, {pipeline_mode = #tpu.pipeline_mode<synchronous>, transform_indices = @transform_3, window_bounds = array<i64: 1, 128>}, {pipeline_mode = #tpu.pipeline_mode<synchronous>, transform_indices = @transform_4, window_bounds = array<i64: 1, 128>}, {transform_indices = @transform_5, window_bounds = array<i64: 1, 8, 16, 128>}]} {
    %c0 = arith.constant 0 : index
    %c0_0 = arith.constant 0 : index
    %c0_1 = arith.constant 0 : index
    %c0_2 = arith.constant 0 : index
    %c0_3 = arith.constant 0 : index
    %0 = vector.load %arg2[%c0, %c0_0, %c0_1, %c0_2, %c0_3] : memref<1x1x12x18x128xf32, #tpu.memory_space<vmem>>, vector<1x1x12x16x128xf32>
    %1 = vector.shape_cast %0 : vector<1x1x12x16x128xf32> to vector<12x16x128xf32>
    %2 = vector.extract_strided_slice %1 {offsets = [0, 0, 0], sizes = [10, 16, 128], strides = [1, 1, 1]} : vector<12x16x128xf32> to vector<10x16x128xf32>
    %3 = vector.extract_strided_slice %1 {offsets = [1, 0, 0], sizes = [10, 16, 128], strides = [1, 1, 1]} : vector<12x16x128xf32> to vector<10x16x128xf32>
    %4 = vector.extract_strided_slice %1 {offsets = [2, 0, 0], sizes = [10, 16, 128], strides = [1, 1, 1]} : vector<12x16x128xf32> to vector<10x16x128xf32>
    %5 = tpu.concatenate %2, %3, %4 in 2 : vector<10x16x128xf32>, vector<10x16x128xf32>, vector<10x16x128xf32> -> vector<10x16x384xf32>
    %6 = vector.shape_cast %5 : vector<10x16x384xf32> to vector<160x384xf32>
    %c0_4 = arith.constant 0 : index
    %c0_5 = arith.constant 0 : index
    %c0_6 = arith.constant 0 : index
    %7 = vector.load %arg3[%c0_4, %c0_5, %c0_6] : memref<3x384x128xf32, #tpu.memory_space<vmem>>, vector<1x384x128xf32>
    %8 = vector.shape_cast %7 : vector<1x384x128xf32> to vector<384x128xf32>
    %cst = arith.constant dense<0.000000e+00> : vector<160x128xf32>
    %9 = tpu.matmul %6, %8, %cst {dimension_numbers = #tpu.dot_dimension_numbers<[1], [0], [0], [1], [0, 0, 1, 1], [], []>} : vector<160x384xf32>, vector<384x128xf32>, vector<160x128xf32> -> vector<160x128xf32>
    %c0_7 = arith.constant 0 : index
    %c0_8 = arith.constant 0 : index
    %c0_9 = arith.constant 0 : index
    %c1 = arith.constant 1 : index
    %c0_10 = arith.constant 0 : index
    %10 = vector.load %arg2[%c0_7, %c0_8, %c0_9, %c1, %c0_10] : memref<1x1x12x18x128xf32, #tpu.memory_space<vmem>>, vector<1x1x12x16x128xf32>
    %11 = vector.shape_cast %10 : vector<1x1x12x16x128xf32> to vector<12x16x128xf32>
    %12 = vector.extract_strided_slice %11 {offsets = [0, 0, 0], sizes = [10, 16, 128], strides = [1, 1, 1]} : vector<12x16x128xf32> to vector<10x16x128xf32>
    %13 = vector.extract_strided_slice %11 {offsets = [1, 0, 0], sizes = [10, 16, 128], strides = [1, 1, 1]} : vector<12x16x128xf32> to vector<10x16x128xf32>
    %14 = vector.extract_strided_slice %11 {offsets = [2, 0, 0], sizes = [10, 16, 128], strides = [1, 1, 1]} : vector<12x16x128xf32> to vector<10x16x128xf32>
    %15 = tpu.concatenate %12, %13, %14 in 2 : vector<10x16x128xf32>, vector<10x16x128xf32>, vector<10x16x128xf32> -> vector<10x16x384xf32>
    %16 = vector.shape_cast %15 : vector<10x16x384xf32> to vector<160x384xf32>
    %c1_11 = arith.constant 1 : index
    %c0_12 = arith.constant 0 : index
    %c0_13 = arith.constant 0 : index
    %17 = vector.load %arg3[%c1_11, %c0_12, %c0_13] : memref<3x384x128xf32, #tpu.memory_space<vmem>>, vector<1x384x128xf32>
    %18 = vector.shape_cast %17 : vector<1x384x128xf32> to vector<384x128xf32>
    %cst_14 = arith.constant dense<0.000000e+00> : vector<160x128xf32>
    %19 = tpu.matmul %16, %18, %cst_14 {dimension_numbers = #tpu.dot_dimension_numbers<[1], [0], [0], [1], [0, 0, 1, 1], [], []>} : vector<160x384xf32>, vector<384x128xf32>, vector<160x128xf32> -> vector<160x128xf32>
    %20 = arith.addf %9, %19 : vector<160x128xf32>
    %c0_15 = arith.constant 0 : index
    %c0_16 = arith.constant 0 : index
    %c0_17 = arith.constant 0 : index
    %c2 = arith.constant 2 : index
    %c0_18 = arith.constant 0 : index
    %21 = vector.load %arg2[%c0_15, %c0_16, %c0_17, %c2, %c0_18] : memref<1x1x12x18x128xf32, #tpu.memory_space<vmem>>, vector<1x1x12x16x128xf32>
    %22 = vector.shape_cast %21 : vector<1x1x12x16x128xf32> to vector<12x16x128xf32>
    %23 = vector.extract_strided_slice %22 {offsets = [0, 0, 0], sizes = [10, 16, 128], strides = [1, 1, 1]} : vector<12x16x128xf32> to vector<10x16x128xf32>
    %24 = vector.extract_strided_slice %22 {offsets = [1, 0, 0], sizes = [10, 16, 128], strides = [1, 1, 1]} : vector<12x16x128xf32> to vector<10x16x128xf32>
    %25 = vector.extract_strided_slice %22 {offsets = [2, 0, 0], sizes = [10, 16, 128], strides = [1, 1, 1]} : vector<12x16x128xf32> to vector<10x16x128xf32>
    %26 = tpu.concatenate %23, %24, %25 in 2 : vector<10x16x128xf32>, vector<10x16x128xf32>, vector<10x16x128xf32> -> vector<10x16x384xf32>
    %27 = vector.shape_cast %26 : vector<10x16x384xf32> to vector<160x384xf32>
    %c2_19 = arith.constant 2 : index
    %c0_20 = arith.constant 0 : index
    %c0_21 = arith.constant 0 : index
    %28 = vector.load %arg3[%c2_19, %c0_20, %c0_21] : memref<3x384x128xf32, #tpu.memory_space<vmem>>, vector<1x384x128xf32>
    %29 = vector.shape_cast %28 : vector<1x384x128xf32> to vector<384x128xf32>
    %cst_22 = arith.constant dense<0.000000e+00> : vector<160x128xf32>
    %30 = tpu.matmul %27, %29, %cst_22 {dimension_numbers = #tpu.dot_dimension_numbers<[1], [0], [0], [1], [0, 0, 1, 1], [], []>} : vector<160x384xf32>, vector<384x128xf32>, vector<160x128xf32> -> vector<160x128xf32>
    %31 = arith.addf %20, %30 : vector<160x128xf32>
    %c0_23 = arith.constant 0 : index
    %c0_24 = arith.constant 0 : index
    %32 = vector.load %arg5[%c0_23, %c0_24] : memref<1x128xf32, #tpu.memory_space<vmem>>, vector<1x128xf32>
    %33 = vector.broadcast %32 : vector<1x128xf32> to vector<160x128xf32>
    %34 = arith.addf %31, %33 : vector<160x128xf32>
    %cst_25 = arith.constant 0.000000e+00 : f32
    %35 = vector.broadcast %cst_25 : f32 to vector<160x128xf32>
    %36 = arith.maximumf %34, %35 : vector<160x128xf32>
    %37 = vector.shape_cast %36 : vector<160x128xf32> to vector<10x16x128xf32>
    %c0_26 = arith.constant 0 : index
    %c1_27 = arith.constant 1 : index
    %c0_28 = arith.constant 0 : index
    %38 = vector.load %arg8[%c0_26, %c1_27, %c0_28] : memref<10x18x128xf32, #tpu.memory_space<vmem>>, vector<10x16x128xf32>
    tpu.vector_store %arg8[%c0_26, %c1_27, %c0_28], %37 {strides = array<i32>} : memref<10x18x128xf32, #tpu.memory_space<vmem>>, vector<10x16x128xf32>,
    %cst_29 = arith.constant 0.000000e+00 : f32
    %39 = vector.broadcast %cst_29 : f32 to vector<10x1x128xf32>
    %c0_30 = arith.constant 0 : index
    %c0_31 = arith.constant 0 : index
    %c0_32 = arith.constant 0 : index
    %40 = vector.load %arg8[%c0_30, %c0_31, %c0_32] : memref<10x18x128xf32, #tpu.memory_space<vmem>>, vector<10x1x128xf32>
    tpu.vector_store %arg8[%c0_30, %c0_31, %c0_32], %39 {strides = array<i32>} : memref<10x18x128xf32, #tpu.memory_space<vmem>>, vector<10x1x128xf32>,
    %cst_33 = arith.constant 0.000000e+00 : f32
    %41 = vector.broadcast %cst_33 : f32 to vector<10x1x128xf32>
    %c0_34 = arith.constant 0 : index
    %c17 = arith.constant 17 : index
    %c0_35 = arith.constant 0 : index
    %42 = vector.load %arg8[%c0_34, %c17, %c0_35] : memref<10x18x128xf32, #tpu.memory_space<vmem>>, vector<10x1x128xf32>
    tpu.vector_store %arg8[%c0_34, %c17, %c0_35], %41 {strides = array<i32>} : memref<10x18x128xf32, #tpu.memory_space<vmem>>, vector<10x1x128xf32>,
    %c0_i32 = arith.constant 0 : i32
    %43 = arith.cmpi eq, %arg1, %c0_i32 : i32
    %44 = arith.extui %43 : i1 to i32
    %c0_i32_36 = arith.constant 0 : i32
    %45 = arith.cmpi ne, %44, %c0_i32_36 : i32
    scf.if %45 {
      %cst_71 = arith.constant 0.000000e+00 : f32
      %90 = vector.broadcast %cst_71 : f32 to vector<1x18x128xf32>
      %c0_72 = arith.constant 0 : index
      %c0_73 = arith.constant 0 : index
      %c0_74 = arith.constant 0 : index
      %91 = vector.load %arg8[%c0_72, %c0_73, %c0_74] : memref<10x18x128xf32, #tpu.memory_space<vmem>>, vector<1x18x128xf32>
      tpu.vector_store %arg8[%c0_72, %c0_73, %c0_74], %90 {strides = array<i32>} : memref<10x18x128xf32, #tpu.memory_space<vmem>>, vector<1x18x128xf32>,
    } else {
    }
    %c1_i32 = arith.constant 1 : i32
    %46 = arith.cmpi eq, %arg1, %c1_i32 : i32
    %47 = arith.extui %46 : i1 to i32
    %c0_i32_37 = arith.constant 0 : i32
    %48 = arith.cmpi ne, %47, %c0_i32_37 : i32
    scf.if %48 {
      %cst_71 = arith.constant 0.000000e+00 : f32
      %90 = vector.broadcast %cst_71 : f32 to vector<1x18x128xf32>
      %c9 = arith.constant 9 : index
      %c0_72 = arith.constant 0 : index
      %c0_73 = arith.constant 0 : index
      %91 = vector.load %arg8[%c9, %c0_72, %c0_73] : memref<10x18x128xf32, #tpu.memory_space<vmem>>, vector<1x18x128xf32>
      tpu.vector_store %arg8[%c9, %c0_72, %c0_73], %90 {strides = array<i32>} : memref<10x18x128xf32, #tpu.memory_space<vmem>>, vector<1x18x128xf32>,
    } else {
    }
    %c0_38 = arith.constant 0 : index
    %c0_39 = arith.constant 0 : index
    %c0_40 = arith.constant 0 : index
    %49 = vector.load %arg8[%c0_38, %c0_39, %c0_40] : memref<10x18x128xf32, #tpu.memory_space<vmem>>, vector<10x16x128xf32>
    %50 = vector.extract_strided_slice %49 {offsets = [0, 0, 0], sizes = [8, 16, 128], strides = [1, 1, 1]} : vector<10x16x128xf32> to vector<8x16x128xf32>
    %51 = vector.extract_strided_slice %49 {offsets = [1, 0, 0], sizes = [8, 16, 128], strides = [1, 1, 1]} : vector<10x16x128xf32> to vector<8x16x128xf32>
    %52 = vector.extract_strided_slice %49 {offsets = [2, 0, 0], sizes = [8, 16, 128], strides = [1, 1, 1]} : vector<10x16x128xf32> to vector<8x16x128xf32>
    %53 = tpu.concatenate %50, %51, %52 in 2 : vector<8x16x128xf32>, vector<8x16x128xf32>, vector<8x16x128xf32> -> vector<8x16x384xf32>
    %54 = vector.shape_cast %53 : vector<8x16x384xf32> to vector<128x384xf32>
    %c0_41 = arith.constant 0 : index
    %c0_42 = arith.constant 0 : index
    %c0_43 = arith.constant 0 : index
    %55 = vector.load %arg4[%c0_41, %c0_42, %c0_43] : memref<3x384x128xf32, #tpu.memory_space<vmem>>, vector<1x384x128xf32>
    %56 = vector.shape_cast %55 : vector<1x384x128xf32> to vector<384x128xf32>
    %cst_44 = arith.constant dense<0.000000e+00> : vector<128x128xf32>
    %57 = tpu.matmul %54, %56, %cst_44 {dimension_numbers = #tpu.dot_dimension_numbers<[1], [0], [0], [1], [0, 0, 1, 1], [], []>} : vector<128x384xf32>, vector<384x128xf32>, vector<128x128xf32> -> vector<128x128xf32>
    %c0_45 = arith.constant 0 : index
    %c1_46 = arith.constant 1 : index
    %c0_47 = arith.constant 0 : index
    %58 = vector.load %arg8[%c0_45, %c1_46, %c0_47] : memref<10x18x128xf32, #tpu.memory_space<vmem>>, vector<10x16x128xf32>
    %59 = vector.extract_strided_slice %58 {offsets = [0, 0, 0], sizes = [8, 16, 128], strides = [1, 1, 1]} : vector<10x16x128xf32> to vector<8x16x128xf32>
    %60 = vector.extract_strided_slice %58 {offsets = [1, 0, 0], sizes = [8, 16, 128], strides = [1, 1, 1]} : vector<10x16x128xf32> to vector<8x16x128xf32>
    %61 = vector.extract_strided_slice %58 {offsets = [2, 0, 0], sizes = [8, 16, 128], strides = [1, 1, 1]} : vector<10x16x128xf32> to vector<8x16x128xf32>
    %62 = tpu.concatenate %59, %60, %61 in 2 : vector<8x16x128xf32>, vector<8x16x128xf32>, vector<8x16x128xf32> -> vector<8x16x384xf32>
    %63 = vector.shape_cast %62 : vector<8x16x384xf32> to vector<128x384xf32>
    %c1_48 = arith.constant 1 : index
    %c0_49 = arith.constant 0 : index
    %c0_50 = arith.constant 0 : index
    %64 = vector.load %arg4[%c1_48, %c0_49, %c0_50] : memref<3x384x128xf32, #tpu.memory_space<vmem>>, vector<1x384x128xf32>
    %65 = vector.shape_cast %64 : vector<1x384x128xf32> to vector<384x128xf32>
    %cst_51 = arith.constant dense<0.000000e+00> : vector<128x128xf32>
    %66 = tpu.matmul %63, %65, %cst_51 {dimension_numbers = #tpu.dot_dimension_numbers<[1], [0], [0], [1], [0, 0, 1, 1], [], []>} : vector<128x384xf32>, vector<384x128xf32>, vector<128x128xf32> -> vector<128x128xf32>
    %67 = arith.addf %57, %66 : vector<128x128xf32>
    %c0_52 = arith.constant 0 : index
    %c2_53 = arith.constant 2 : index
    %c0_54 = arith.constant 0 : index
    %68 = vector.load %arg8[%c0_52, %c2_53, %c0_54] : memref<10x18x128xf32, #tpu.memory_space<vmem>>, vector<10x16x128xf32>
    %69 = vector.extract_strided_slice %68 {offsets = [0, 0, 0], sizes = [8, 16, 128], strides = [1, 1, 1]} : vector<10x16x128xf32> to vector<8x16x128xf32>
    %70 = vector.extract_strided_slice %68 {offsets = [1, 0, 0], sizes = [8, 16, 128], strides = [1, 1, 1]} : vector<10x16x128xf32> to vector<8x16x128xf32>
    %71 = vector.extract_strided_slice %68 {offsets = [2, 0, 0], sizes = [8, 16, 128], strides = [1, 1, 1]} : vector<10x16x128xf32> to vector<8x16x128xf32>
    %72 = tpu.concatenate %69, %70, %71 in 2 : vector<8x16x128xf32>, vector<8x16x128xf32>, vector<8x16x128xf32> -> vector<8x16x384xf32>
    %73 = vector.shape_cast %72 : vector<8x16x384xf32> to vector<128x384xf32>
    %c2_55 = arith.constant 2 : index
    %c0_56 = arith.constant 0 : index
    %c0_57 = arith.constant 0 : index
    %74 = vector.load %arg4[%c2_55, %c0_56, %c0_57] : memref<3x384x128xf32, #tpu.memory_space<vmem>>, vector<1x384x128xf32>
    %75 = vector.shape_cast %74 : vector<1x384x128xf32> to vector<384x128xf32>
    %cst_58 = arith.constant dense<0.000000e+00> : vector<128x128xf32>
    %76 = tpu.matmul %73, %75, %cst_58 {dimension_numbers = #tpu.dot_dimension_numbers<[1], [0], [0], [1], [0, 0, 1, 1], [], []>} : vector<128x384xf32>, vector<384x128xf32>, vector<128x128xf32> -> vector<128x128xf32>
    %77 = arith.addf %67, %76 : vector<128x128xf32>
    %c0_59 = arith.constant 0 : index
    %c0_60 = arith.constant 0 : index
    %78 = vector.load %arg6[%c0_59, %c0_60] : memref<1x128xf32, #tpu.memory_space<vmem>>, vector<1x128xf32>
    %79 = vector.broadcast %78 : vector<1x128xf32> to vector<128x128xf32>
    %80 = arith.addf %77, %79 : vector<128x128xf32>
    %c0_61 = arith.constant 0 : index
    %c0_62 = arith.constant 0 : index
    %c2_63 = arith.constant 2 : index
    %c1_64 = arith.constant 1 : index
    %c0_65 = arith.constant 0 : index
    %81 = vector.load %arg2[%c0_61, %c0_62, %c2_63, %c1_64, %c0_65] : memref<1x1x12x18x128xf32, #tpu.memory_space<vmem>>, vector<1x1x8x16x128xf32>
    %82 = vector.shape_cast %81 : vector<1x1x8x16x128xf32> to vector<8x16x128xf32>
    %83 = vector.shape_cast %80 : vector<128x128xf32> to vector<8x16x128xf32>
    %84 = arith.addf %83, %82 : vector<8x16x128xf32>
    %cst_66 = arith.constant 0.000000e+00 : f32
    %85 = vector.broadcast %cst_66 : f32 to vector<8x16x128xf32>
    %86 = arith.maximumf %84, %85 : vector<8x16x128xf32>
    %c0_67 = arith.constant 0 : index
    %c0_68 = arith.constant 0 : index
    %c0_69 = arith.constant 0 : index
    %c0_70 = arith.constant 0 : index
    %87 = vector.load %arg7[%c0_67, %c0_68, %c0_69, %c0_70] : memref<1x8x16x128xf32, #tpu.memory_space<vmem>>, vector<1x8x16x128xf32>
    %88 = vector.shape_cast %87 : vector<1x8x16x128xf32> to vector<8x16x128xf32>
    %89 = vector.shape_cast %86 : vector<8x16x128xf32> to vector<1x8x16x128xf32>
    tpu.vector_store %arg7[%c0_67, %c0_68, %c0_69, %c0_70], %89 {strides = array<i32>} : memref<1x8x16x128xf32, #tpu.memory_space<vmem>>, vector<1x8x16x128xf32>,
    return
  }
  func.func @transform_0(%arg0: i32, %arg1: i32) -> (i32, i32, i32, i32, i32) {
    %c0_i32 = arith.constant 0 : i32
    %c0_i32_0 = arith.constant 0 : i32
    %c0_i32_1 = arith.constant 0 : i32
    %c0_i32_2 = arith.constant 0 : i32
    return %arg0, %arg1, %c0_i32, %c0_i32_0, %c0_i32_1 : i32, i32, i32, i32, i32
  }
  func.func @transform_1(%arg0: i32, %arg1: i32) -> (i32, i32, i32) {
    %c0_i32 = arith.constant 0 : i32
    %c0_i32_0 = arith.constant 0 : i32
    %c0_i32_1 = arith.constant 0 : i32
    %c0_i32_2 = arith.constant 0 : i32
    return %c0_i32, %c0_i32_0, %c0_i32_1 : i32, i32, i32
  }
  func.func @transform_2(%arg0: i32, %arg1: i32) -> (i32, i32, i32) {
    %c0_i32 = arith.constant 0 : i32
    %c0_i32_0 = arith.constant 0 : i32
    %c0_i32_1 = arith.constant 0 : i32
    %c0_i32_2 = arith.constant 0 : i32
    return %c0_i32, %c0_i32_0, %c0_i32_1 : i32, i32, i32
  }
  func.func @transform_3(%arg0: i32, %arg1: i32) -> (i32, i32) {
    %c0_i32 = arith.constant 0 : i32
    %c0_i32_0 = arith.constant 0 : i32
    %c0_i32_1 = arith.constant 0 : i32
    return %c0_i32, %c0_i32_0 : i32, i32
  }
  func.func @transform_4(%arg0: i32, %arg1: i32) -> (i32, i32) {
    %c0_i32 = arith.constant 0 : i32
    %c0_i32_0 = arith.constant 0 : i32
    %c0_i32_1 = arith.constant 0 : i32
    return %c0_i32, %c0_i32_0 : i32, i32
  }
  func.func @transform_5(%arg0: i32, %arg1: i32) -> (i32, i32, i32, i32) {
    %c0_i32 = arith.constant 0 : i32
    %c0_i32_0 = arith.constant 0 : i32
    %c0_i32_1 = arith.constant 0 : i32
    return %arg0, %arg1, %c0_i32, %c0_i32_0 : i32, i32, i32, i32
  }
}

</mosaic_0001>

<bundles_post_ra>
// kernel: tpu_custom_call.1
= control target key start
LH: loop header
LB: loop body
LE: loop exit
PB: predicated region body
PF: predicated region fallthrough
CT: control target
= control target key end

     0   :  { %s6034_s0 = inlined_call_operand.vmem [shape: f32[2,2,12,18,128], index: 0, kind: input, shape index: {}]   ;;  %s6035_s1 = inlined_call_operand.vmem [shape: f32[3,384,128], index: 1, kind: input, shape index: {}]   ;;  %s6036_s2 = inlined_call_operand.hbm [shape: f32[3,384,128], index: 2, kind: input, shape index: {}]   ;;  %s6037_s3 = inlined_call_operand.vmem [shape: f32[1,128], index: 3, kind: input, shape index: {}]   ;;  %s6038_s4 = inlined_call_operand.vmem [shape: f32[1,128], index: 4, kind: input, shape index: {}]   ;;  %s6039_s5 = inlined_call_operand.hbm [shape: f32[2,16,16,128], index: 5, kind: output, shape index: {}]  }
   0x1   :  { %6046 = sst [smem:[#allocation10_spill]] %s6036_s2 }
   0x2   :  { %10 = vsyncpa [#allocation4], 0 }
   0x3   :  { %11 = vsyncpa [#allocation5], 0 }
   0x4   :  { %13 = vsyncpa [#allocation5 + $0x1], 0  ;;  %s4594_s18 = smov 0   ;;  %s4596_s19 = smov 0  }
   0x5   :  { %s4598_s20 = smov 0   ;;  %s4600_s21 = smov 0  }
   0x6   :  { %s4602_s22 = smov 0   ;;  %s4604_s23 = smov 0  }
   0x7   :  { %s4606_s24 = smov 0   ;;  %s4608_s25 = smov 0  }
   0x8 LB: > { %s2891_s26 = sadd.s32 4294967295, %s4552_s25   ;;  %s2892_s27 = sadd.s32 4294967294, %s4552_s25   ;;  %s4552_s25 = sphi %s4608_s25, %s19_s25   ;;  %s4548_s24 = sphi %s4606_s24, %s6066_s24   ;;  %s4544_s23 = sphi %s4604_s23, %s6065_s23   ;;  %s4540_s22 = sphi %s4602_s22, %s6064_s22   ;;  %s4536_s21 = sphi %s4600_s21, %s6063_s21   ;;  %s4532_s20 = sphi %s4598_s20, %s6062_s20   ;;  %s4528_s19 = sphi %s4596_s19, %s6061_s19   ;;  %s4524_s18 = sphi %s4594_s18, %s6060_s18  }
   0x9   : > { %s28_s28 = sadd.s32 1, %s4544_s23  ;;  %s31_s29 = sadd.s32 1, %s4548_s24 }
   0xa   : > { %p29_p0 = scmp.ge.s32.totalorder %s28_s28, 2  ;;  %s152_s30 = sadd.s32 1, %s4532_s20 }
   0xb   : > { %p162_p1 = scmp.ne.s32.totalorder %s4532_s20, %s4528_s19  ;;  %p163_p2 = scmp.eq.s32.totalorder %s2891_s26, 3 }
   0xc   : > { %s6068_s28 = smov (%p29_p0, %s28_s28), 0  ;;  %s6070_s29 = smov (!%p29_p0, %s31_s29), %s4548_s24 }
   0xd   : > { %s148_s6 = ssub.s32 %s4544_s23, %s6068_s28  ;;  %p4646_p3 = por %p163_p2, %p162_p1 }
   0xe   : > { %p33_p4 = scmp.ge.s32.totalorder %s6070_s29, 2  ;;  %p168_p5 = scmp.ne.s32.totalorder %s4528_s19, %s4524_s18 }
   0xf   : > { %s6047_s7 = scalar_select %p4646_p3, 1, 0 }
  0x10   : > { %p169_p6 = scmp.eq.s32.totalorder %s2892_s27, 3  ;;  %p2893_p7 = scmp.ge.s32.totalorder %s4552_s25, 1 }
  0x11   : > { %s6072_s29 = smov (%p33_p4, %s6070_s29), 0  ;;  %p176_p9 = scmp.lt.s32.totalorder %s4552_s25, 5 }
  0x12   : > { %6048 = sst [smem:[#allocation9_spill]] %s6072_s29  ;;  %p4655_p8 = por %p169_p6, %p168_p5 }
  0x13   : > { %s147_s9 = ssub.s32 %s4548_s24, %s6072_s29  ;;  %p4662_p10 = pnand %p2893_p7, %p176_p9 }
  0x14   : > { %s6049_s8 = scalar_select %p4655_p8, 1, 0 }
  0x15   : > { %s149_s10 = sor.u32 %s148_s6, %s147_s9  ;;  %p4666_p12 = scmp.eq.s32.totalorder %s2891_s26, 0 }
  0x16   : > { %s6050_s11 = scalar_select %p4662_p10, 1, 0 }
  0x17   : > { %p150_p11 = scmp.eq.s32.totalorder %s149_s10, 0  ;;  %p4342_p13 = pneg %p4662_p10 }
  0x18   : > { %s6051_s12 = scalar_select %p4666_p12, 1, 0 }
  0x19   : > { %s4673_s13 = scalar_select %p150_p11, %s4532_s20, %s152_s30  }
  0x1a   : > { %s4554_s14 = smov [#allocation3]   ;;  %p4677_p0 = pnand %p4666_p12, %p4342_p13 }
  0x1b   : > { %s191_s15 = sshll.u32 %s4554_s14, 4  ;;  %s6053_s2 = sld [smem:[#allocation10_spill]]  ;;  %s192_s15 = int_to_ptr.vmem [resolvable:$true] %s191_s15 }
  0x1c   : > { %p4428_p2 = pneg %p4677_p0 }
  0x21   : > { %s4426_s26 = scalar_lea.hbm %s6053_s2, 18432 }
  0x22   : > { %p4427_p1 = scmp.ne.s32.totalorder %s6053_s2, %s4426_s26  ;;  %p4433_p6 = scmp.lt.u32.totalorder %s4426_s26, %s6053_s2 }
  0x24   : > { %p4429_p4 = pnand %p4428_p2, %p4427_p1 }
  0x26   : > { %p4430_p5 = pneg %p4429_p4 }
  0x28   : > { %p4435_p7 = pnand %p4433_p6, %p4430_p5 }
  0x2a   : > { %4438 = shalt.err (!%p4435_p7)
}
  0x2b   : > { %s4439_s14 = scalar_lea.vmem %s192_s15, 18432  ;;  %p4447_p8 = scmp.lt.s32.totalorder %s192_s15, %s192_s15 }
  0x2c   : > { %p4440_p9 = scmp.ne.s32.totalorder %s192_s15, %s4439_s14  ;;  %p4448_p3 = scmp.lt.s32.totalorder %s4439_s14, %s4439_s14 }
  0x2e   : > { %p4442_p11 = pnand %p4440_p9, %p4428_p2  ;;  %p4449_p12 = por %p4448_p3, %p4447_p8 }
  0x30   : > { %p4443_p13 = pneg %p4442_p11 }
  0x32   : > { %p4450_p10 = pnand %p4449_p12, %p4443_p13 }
  0x34   : > { %4453 = shalt.err (!%p4450_p10)
}
  0x35   : > { %s4555_s17 = smov 128   ;;  %s4556_s27 = smov 8  }
  0x36   : > { %4345 = dma.hbm_to_vmem [thread:$0]  (!%p4677_p0), %s6053_s2, 18432, %s192_s15, [#allocation4], %s4555_s17, %s4555_s17, %s4556_s27  }
  0x37   : > { %p6054_p1 = scmp.ne.s32.totalorder %s6050_s11, 0 }
  0x38   : > { %p6055_p4 = scmp.ne.s32.totalorder (!%p6054_p1), %s6051_s12, 0 }
  0x39   : > { %225 = sbr.rel (%p6054_p1) target bundleno = 989 (0x3dd), region = 40 }
  0x40   : > { %4515 = dma.done.wait (%p6055_p4), [#allocation4], 18432  }
  0x41   : > { %4517 = vsyncadd (%p6055_p4), [#allocation4], 4294948864  ;;  %s6044_s26 = sand.u32 1, %s4528_s19   ;;  %p257_p3 = scmp.lt.s32.totalorder %s4540_s22, 1  ;;  %v4557_v0 = vmov 0.0   ;;  %v4558_v1 = vmov 0.0|0.0  }
  0x42   : > { %1562 = vst [vmem:[#allocation2] sm:$0x1] %v4557_v0  ;;  %1563 = vst [vmem:[#allocation2 + $0x18] sm:$0x1] %v4557_v0  ;;  %s4707_s11 = sshll.u32 %s6044_s26, 7  ;;  %3822 = vmatprep.subr.bf16.mxu0 %v4558_v1  ;;  %p259_p8 = scmp.lt.s32.totalorder %s4536_s21, 1 }
  0x43   : > { %1564 = vst [vmem:[#allocation2 + $0x30] sm:$0x1] %v4557_v0  ;;  %1565 = vst [vmem:[#allocation2 + $0x48] sm:$0x1] %v4557_v0  ;;  %s258_s12 = scalar_select %p257_p3, %s4540_s22, 1  ;;  %v2900_v2 = vld [vmem:[%s6035_s1 + $0x180] sm:$0xff] }
  0x44   : > { %1566 = vst [vmem:[#allocation2 + $0x60] sm:$0x1] %v4557_v0  ;;  %1567 = vst [vmem:[#allocation2 + $0x78] sm:$0x1] %v4557_v0  ;;  %s260_s15 = scalar_select %p259_p8, %s4536_s21, 1  ;;  %v2901_v3 = vld [vmem:[%s6035_s1 + $0x188] sm:$0xff] }
  0x45   : > { %1568 = vst [vmem:[#allocation2 + $0x90] sm:$0x1] %v4557_v0  ;;  %1569 = vst [vmem:[#allocation2 + $0xa8] sm:$0x1] %v4557_v0  ;;  %s4335_s16 = smul.u32 72, %s258_s12  ;;  %v2932_v4 = vld [vmem:[%s6035_s1 + $0x280] sm:$0xff]  ;;  %v3823_v5 = vpack.c.bf16 %v2901_v3, %v2900_v2 }
  0x46   : > { %1570 = vst [vmem:[#allocation2 + $0xc0] sm:$0x1] %v4557_v0  ;;  %1571 = vst [vmem:[#allocation2 + $0xd8] sm:$0x1] %v4557_v0  ;;  %s4334_s30 = smul.u32 36, %s260_s15  ;;  %v2933_v6 = vld [vmem:[%s6035_s1 + $0x288] sm:$0xff] }
  0x47   : > { %1572 = vst [vmem:[#allocation2 + $0x11] sm:$0x1] %v4557_v0  ;;  %1573 = vst [vmem:[#allocation2 + $0x29] sm:$0x1] %v4557_v0  ;;  %v2902_v7 = vld [vmem:[%s6035_s1 + $0x190] sm:$0xff]  ;;  %v2903_v8 = vld [vmem:[%s6035_s1 + $0x198] sm:$0xff]  ;;  %v3870_v9 = vpack.c.bf16 %v2933_v6, %v2932_v4  ;;  %3824 = vmatpush1.bf16.msra.mxu0 %v3823_v5 }
  0x48   : > { %1574 = vst [vmem:[#allocation2 + $0x41] sm:$0x1] %v4557_v0  ;;  %1575 = vst [vmem:[#allocation2 + $0x59] sm:$0x1] %v4557_v0  ;;  %s263_s14 = sadd.s32 %s4335_s16, %s4334_s30  ;;  %v2934_v10 = vld [vmem:[%s6035_s1 + $0x290] sm:$0xff]  ;;  %v2935_v11 = vld [vmem:[%s6035_s1 + $0x298] sm:$0xff]  ;;  %v3826_v12 = vpack.c.bf16 %v2903_v8, %v2902_v7  ;;  %3825 = vmatprep.subr.bf16.mxu0 %v4558_v1 }
  0x49   : > { %1576 = vst [vmem:[#allocation2 + $0x71] sm:$0x1] %v4557_v0  ;;  %1577 = vst [vmem:[#allocation2 + $0x89] sm:$0x1] %v4557_v0  ;;  %v3874_v13 = vpack.c.bf16 %v2935_v11, %v2934_v10  ;;  %v2936_v14 = vld [vmem:[%s6035_s1 + $0x2a0] sm:$0xff]  ;;  %v2937_v15 = vld [vmem:[%s6035_s1 + $0x2a8] sm:$0xff]  ;;  %3871 = vmatprep.subr.bf16.mxu1 %v3870_v9 }
  0x4a   : > { %1578 = vst [vmem:[#allocation2 + $0xa1] sm:$0x1] %v4557_v0  ;;  %1579 = vst [vmem:[#allocation2 + $0xb9] sm:$0x1] %v4557_v0  ;;  %v2904_v16 = vld [vmem:[%s6035_s1 + $0x1a0] sm:$0xff]  ;;  %v2905_v17 = vld [vmem:[%s6035_s1 + $0x1a8] sm:$0xff]  ;;  %3873 = vmatpush3.bf16.msra.mxu1 %v3870_v9  ;;  %v3878_v18 = vpack.c.bf16 %v2937_v15, %v2936_v14 }
  0x4b   : > { %1580 = vst [vmem:[#allocation2 + $0xd1] sm:$0x1] %v4557_v0  ;;  %1581 = vst [vmem:[#allocation2 + $0xe9] sm:$0x1] %v4557_v0  ;;  %s2899_s17 = sshll.u32 %s263_s14, 3  ;;  %3875 = vmatprep.subr.bf16.mxu1 %v3874_v13  ;;  %3827 = vmatpush1.bf16.msra.mxu0 %v3826_v12  ;;  %v3829_v19 = vpack.c.bf16 %v2905_v17, %v2904_v16  ;;  %v2938_v20 = vld [vmem:[%s6035_s1 + $0x2b0] sm:$0xff] }
  0x4c   : > { %v2939_v21 = vld [vmem:[%s6035_s1 + $0x2b8] sm:$0xff]  ;;  %s4761_s12 = scalar_lea.vmem %s6034_s0, %s2899_s17  ;;  %3828 = vmatprep.subr.bf16.mxu0 %v4558_v1  ;;  %v2906_v22 = vld [vmem:[%s6035_s1 + $0x1b0] sm:$0xff]  ;;  %v2940_v27 = vld [vmem:[%s6035_s1 + $0x2c0] sm:$0xff]  ;;  %s5550_s29 = scalar_lea.vmem [#allocation6], %s4707_s11 }
  0x4d   : > { %v2907_v23 = vld [vmem:[%s6035_s1 + $0x1b8] sm:$0xff]  ;;  %v3882_v24 = vpack.c.bf16 %v2939_v21, %v2938_v20  ;;  %v2941_v28 = vld [vmem:[%s6035_s1 + $0x2c8] sm:$0xff]  ;;  %v2908_v29 = vld [vmem:[%s6035_s1 + $0x1c0] sm:$0xff]  ;;  %p2997_p10 = scmp.ne.s32.totalorder %s4536_s21, 0 }
  0x4e   : > { %3877 = vmatpush3.bf16.msra.mxu1 %v3874_v13  ;;  %v4771_v25 = vld [vmem:[%s4761_s12 + $0x31] sm:$0xff]  ;;  %v3832_v26 = vpack.c.bf16 %v2907_v23, %v2906_v22  ;;  %v2909_v30 = vld [vmem:[%s6035_s1 + $0x1c8] sm:$0xff]  ;;  %v3886_v31 = vpack.c.bf16 %v2941_v28, %v2940_v27  ;;  %v2944_v39 = vld [vmem:[%s6035_s1 + $0x2e0] sm:$0xff] }
  0x4f   : > { %3879 = vmatprep.subr.bf16.mxu1 %v3878_v18  ;;  %3830 = vmatpush1.bf16.msra.mxu0 %v3829_v19  ;;  %v3835_v32 = vpack.c.bf16 %v2909_v30, %v2908_v29  ;;  %v2942_v33 = vld [vmem:[%s6035_s1 + $0x2d0] sm:$0xff]  ;;  %v2943_v34 = vld [vmem:[%s6035_s1 + $0x2d8] sm:$0xff]  ;;  %v2945_v40 = vld [vmem:[%s6035_s1 + $0x2e8] sm:$0xff] }
  0x50   : > { %3500 = vmatprep.mubr.f32.mxu1 %v4771_v25  ;;  %3831 = vmatprep.subr.bf16.mxu0 %v4558_v1  ;;  %v2910_v35 = vld [vmem:[%s6035_s1 + $0x1d0] sm:$0xff]  ;;  %v2911_v36 = vld [vmem:[%s6035_s1 + $0x1d8] sm:$0xff]  ;;  %v3890_v37 = vpack.c.bf16 %v2943_v34, %v2942_v33  ;;  %v2912_v41 = vld [vmem:[%s6035_s1 + $0x1e0] sm:$0xff]  ;;  %v3894_v43 = vpack.c.bf16 %v2945_v40, %v2944_v39 }
  0x51   : > { %v3838_v38 = vpack.c.bf16 %v2911_v36, %v2910_v35  ;;  %v2913_v42 = vld [vmem:[%s6035_s1 + $0x1e8] sm:$0xff]  ;;  %v4814_v44 = vld [vmem:[%s4761_s12 + $0x19] sm:$0xff]  ;;  %v2946_v46 = vld [vmem:[%s6035_s1 + $0x2f0] sm:$0xff] }
  0x52   : > { %3881 = vmatpush3.bf16.msra.mxu1 %v3878_v18  ;;  %v3841_v45 = vpack.c.bf16 %v2913_v42, %v2912_v41  ;;  %v2947_v47 = vld [vmem:[%s6035_s1 + $0x2f8] sm:$0xff]  ;;  %476 = vmatprep.mubr.f32.mxu0 %v4814_v44  ;;  %v2914_v48 = vld [vmem:[%s6035_s1 + $0x1f0] sm:$0xff]  ;;  %v2916_v52 = vld [vmem:[%s6035_s1 + $0x200] sm:$0xff] }
  0x53   : > { %3883 = vmatprep.subr.bf16.mxu1 %v3882_v24  ;;  %3833 = vmatpush1.bf16.msra.mxu0 %v3832_v26  ;;  %v2915_v49 = vld [vmem:[%s6035_s1 + $0x1f8] sm:$0xff]  ;;  %v3898_v50 = vpack.c.bf16 %v2947_v47, %v2946_v46  ;;  %v2917_v53 = vld [vmem:[%s6035_s1 + $0x208] sm:$0xff]  ;;  %v291_v54 = vld [vmem:[%s6035_s1] sm:$0xff] }
  0x54   : > { %3834 = vmatprep.subr.bf16.mxu0 %v4558_v1  ;;  %v3844_v51 = vpack.c.bf16 %v2915_v49, %v2914_v48  ;;  %v292_v55 = vld [vmem:[%s6035_s1 + $0x8] sm:$0xff]  ;;  %v3847_v56 = vpack.c.bf16 %v2917_v53, %v2916_v52  ;;  %v2918_v57 = vld [vmem:[%s6035_s1 + $0x210] sm:$0xff]  ;;  %v2919_v58 = vld [vmem:[%s6035_s1 + $0x218] sm:$0xff] }
  0x55   : > { %v4851_v59 = vld [vmem:[%s4761_s12 + $0x39] sm:$0xff]  ;;  %v3903_v60 = vpack.c.bf16 %v292_v55, %v291_v54  ;;  %v293_v61 = vld [vmem:[%s6035_s1 + $0x10] sm:$0xff]  ;;  %v3850_v0 = vpack.c.bf16 %v2919_v58, %v2918_v57  ;;  %v2921_v3 = vld [vmem:[%s6035_s1 + $0x228] sm:$0xff] }
  0x56   : > { %3885 = vmatpush3.bf16.msra.mxu1 %v3882_v24  ;;  %v294_v62 = vld [vmem:[%s6035_s1 + $0x18] sm:$0xff]  ;;  %v4861_v63 = vld [vmem:[%s4761_s12 + $0x49] sm:$0xff]  ;;  %v2920_v2 = vld [vmem:[%s6035_s1 + $0x220] sm:$0xff] }
  0x57   : > { %3887 = vmatprep.subr.bf16.mxu1 %v3886_v31  ;;  %3836 = vmatpush1.bf16.msra.mxu0 %v3835_v32  ;;  %v3906_v4 = vpack.c.bf16 %v294_v62, %v293_v61  ;;  %v4873_v5 = vld [vmem:[%s4761_s12 + $0x51] sm:$0xff]  ;;  %v295_v6 = vld [vmem:[%s6035_s1 + $0x20] sm:$0xff]  ;;  %v296_v7 = vld [vmem:[%s6035_s1 + $0x28] sm:$0xff]  ;;  %v3853_v9 = vpack.c.bf16 %v2921_v3, %v2920_v2 }
  0x58   : > { %3837 = vmatprep.subr.bf16.mxu0 %v4558_v1  ;;  %v4883_v8 = vld [vmem:[%s4761_s12 + $0x61] sm:$0xff]  ;;  %v2922_v10 = vld [vmem:[%s6035_s1 + $0x230] sm:$0xff]  ;;  %v2923_v11 = vld [vmem:[%s6035_s1 + $0x238] sm:$0xff]  ;;  %v3909_v12 = vpack.c.bf16 %v296_v7, %v295_v6 }
  0x59   : > { %v4895_v13 = vld [vmem:[%s4761_s12 + $0x69] sm:$0xff]  ;;  %v298_v15 = vld [vmem:[%s6035_s1 + $0x38] sm:$0xff]  ;;  %v3856_v17 = vpack.c.bf16 %v2923_v11, %v2922_v10  ;;  %v2924_v18 = vld [vmem:[%s6035_s1 + $0x240] sm:$0xff] }
  0x5a   : > { %3889 = vmatpush3.bf16.msra.mxu1 %v3886_v31  ;;  %v297_v14 = vld [vmem:[%s6035_s1 + $0x30] sm:$0xff]  ;;  %v4905_v16 = vld [vmem:[%s4761_s12 + $0x79] sm:$0xff]  ;;  %v2925_v19 = vld [vmem:[%s6035_s1 + $0x248] sm:$0xff] }
  0x5b   : > { %3891 = vmatprep.subr.bf16.mxu1 %v3890_v37  ;;  %3839 = vmatpush1.bf16.msra.mxu0 %v3838_v38  ;;  %v3912_v20 = vpack.c.bf16 %v298_v15, %v297_v14  ;;  %v4917_v21 = vld [vmem:[%s4761_s12 + $0x81] sm:$0xff]  ;;  %v4927_v24 = vld [vmem:[%s4761_s12 + $0x91] sm:$0xff]  ;;  %v3859_v26 = vpack.c.bf16 %v2925_v19, %v2924_v18  ;;  %v4939_v30 = vld [vmem:[%s4761_s12 + $0x99] sm:$0xff] }
  0x5c   : > { %3840 = vmatprep.subr.bf16.mxu0 %v4558_v1  ;;  %v299_v22 = vld [vmem:[%s6035_s1 + $0x40] sm:$0xff]  ;;  %v300_v23 = vld [vmem:[%s6035_s1 + $0x48] sm:$0xff]  ;;  %v2926_v27 = vld [vmem:[%s6035_s1 + $0x250] sm:$0xff] }
  0x5d   : > { %v2927_v28 = vld [vmem:[%s6035_s1 + $0x258] sm:$0xff]  ;;  %v3915_v29 = vpack.c.bf16 %v300_v23, %v299_v22  ;;  %v301_v31 = vld [vmem:[%s6035_s1 + $0x50] sm:$0xff]  ;;  %v2928_v35 = vld [vmem:[%s6035_s1 + $0x260] sm:$0xff] }
  0x5e   : > { %3893 = vmatpush3.bf16.msra.mxu1 %v3890_v37  ;;  %v302_v32 = vld [vmem:[%s6035_s1 + $0x58] sm:$0xff]  ;;  %v4949_v33 = vld [vmem:[%s4761_s12 + $0xa9] sm:$0xff]  ;;  %v3862_v34 = vpack.c.bf16 %v2927_v28, %v2926_v27  ;;  %v303_v39 = vld [vmem:[%s6035_s1 + $0x60] sm:$0xff] }
  0x5f   : > { %3895 = vmatprep.subr.bf16.mxu1 %v3894_v43  ;;  %3842 = vmatpush1.bf16.msra.mxu0 %v3841_v45  ;;  %v2929_v36 = vld [vmem:[%s6035_s1 + $0x268] sm:$0xff]  ;;  %v3918_v37 = vpack.c.bf16 %v302_v32, %v301_v31  ;;  %v4961_v38 = vld [vmem:[%s4761_s12 + $0xb1] sm:$0xff]  ;;  %v323_v48 = vld [vmem:[%s6035_s1 + $0x100] sm:$0xff] }
  0x60   : > { %3843 = vmatprep.subr.bf16.mxu0 %v4558_v1  ;;  %v304_v40 = vld [vmem:[%s6035_s1 + $0x68] sm:$0xff]  ;;  %v3865_v42 = vpack.c.bf16 %v2929_v36, %v2928_v35  ;;  %v2931_v45 = vld [vmem:[%s6035_s1 + $0x278] sm:$0xff]  ;;  %v325_v57 = vld [vmem:[%s6035_s1 + $0x110] sm:$0xff] }
  0x61   : > { %v4971_v41 = vld [vmem:[%s4761_s12 + $0xc1] sm:$0xff]  ;;  %v3921_v46 = vpack.c.bf16 %v304_v40, %v303_v39  ;;  %v4983_v47 = vld [vmem:[%s4761_s12 + $0xc9] sm:$0xff]  ;;  %v4999_v52 = vld [vmem:[%s4761_s12 + $0xd9] sm:$0xff] }
  0x62   : > { %3897 = vmatpush3.bf16.msra.mxu1 %v3894_v43  ;;  %v2930_v43 = vld [vmem:[%s6035_s1 + $0x270] sm:$0xff]  ;;  %v324_v49 = vld [vmem:[%s6035_s1 + $0x108] sm:$0xff]  ;;  %v326_v58 = vld [vmem:[%s6035_s1 + $0x118] sm:$0xff] }
  0x63   : > { %3899 = vmatprep.subr.bf16.mxu1 %v3898_v50  ;;  %3845 = vmatpush1.bf16.msra.mxu0 %v3844_v51  ;;  %v306_v51 = vld [vmem:[%s6035_s1 + $0x78] sm:$0xff]  ;;  %v3868_v53 = vpack.c.bf16 %v2931_v45, %v2930_v43  ;;  %v3950_v54 = vpack.c.bf16 %v324_v49, %v323_v48  ;;  %v308_v61 = vld [vmem:[%s6035_s1 + $0x88] sm:$0xff]  ;;  %v3954_v3 = vpack.c.bf16 %v326_v58, %v325_v57  ;;  %v327_v7 = vld [vmem:[%s6035_s1 + $0x120] sm:$0xff] }
  0x64   : > { %3846 = vmatprep.subr.bf16.mxu0 %v4558_v1  ;;  %v5021_v62 = vld [vmem:[%s4761_s12 + $0xf1] sm:$0xff]  ;;  %v342_v2 = vld [vmem:[%s4761_s12 + $0x21] sm:$0xff]  ;;  %v5028_v6 = vld [vmem:[%s4761_s12 + $0xf9] sm:$0xff] }
  0x65   : > { %v309_v10 = vld [vmem:[%s6035_s1 + $0x90] sm:$0xff]  ;;  %v310_v11 = vld [vmem:[%s6035_s1 + $0x98] sm:$0xff]  ;;  %v311_v22 = vld [vmem:[%s6035_s1 + $0xa0] sm:$0xff] }
  0x66   : > { %3901 = vmatpush3.bf16.msra.mxu1 %v3898_v50  ;;  %v305_v50 = vld [vmem:[%s6035_s1 + $0x70] sm:$0xff]  ;;  %v312_v23 = vld [vmem:[%s6035_s1 + $0xa8] sm:$0xff]  ;;  %v315_v39 = vld [vmem:[%s6035_s1 + $0xc0] sm:$0xff] }
  0x67   : > { %3902 = vmatprep.subr.bf16.mxu1 %v4558_v1  ;;  %3848 = vmatpush1.bf16.msra.mxu0 %v3847_v56  ;;  %v3924_v55 = vpack.c.bf16 %v306_v51, %v305_v50  ;;  %v5005_v56 = vld [vmem:[%s4761_s12 + $0xe1] sm:$0xff]  ;;  %v340_v14 = vld [vmem:[%s4761_s12 + $0x9] sm:$0xff]  ;;  %v362_v18 = vld [vmem:[%s4761_s12 + $0x111] sm:$0xff]  ;;  %v3933_v28 = vpack.c.bf16 %v312_v23, %v311_v22 }
  0x68   : > { %3849 = vmatprep.subr.bf16.mxu0 %v4558_v1  ;;  %v329_v19 = vld [vmem:[%s6035_s1 + $0x130] sm:$0xff]  ;;  %v332_v31 = vld [vmem:[%s6035_s1 + $0x148] sm:$0xff]  ;;  %v335_v45 = vld [vmem:[%s6035_s1 + $0x160] sm:$0xff] }
  0x69   : > { %3501 = vmatmul.mubr.f32.vlgmr.msra.gmra.mrb[0].mxu1 %v4851_v59  ;;  %v313_v32 = vld [vmem:[%s6035_s1 + $0xb0] sm:$0xff]  ;;  %v316_v40 = vld [vmem:[%s6035_s1 + $0xc8] sm:$0xff]  ;;  %v318_v49 = vld [vmem:[%s6035_s1 + $0xd8] sm:$0xff] }
  0x6a   : > { %3904 = vmatpush1.bf16.msra.mxu1 %v3903_v60  ;;  %3503 = vmatprep.mubr.f32.mxu1 %v4861_v63  ;;  %v307_v60 = vld [vmem:[%s6035_s1 + $0x80] sm:$0xff]  ;;  %v3939_v43 = vpack.c.bf16 %v316_v40, %v315_v39  ;;  %v317_v48 = vld [vmem:[%s6035_s1 + $0xd0] sm:$0xff]  ;;  %v5192_v22 = vld [vmem:[%s4761_s12 + $0x48] sm:$0xff] }
  0x6b   : > { %3905 = vmatprep.subr.bf16.mxu1 %v4558_v1  ;;  %3851 = vmatpush1.bf16.msra.mxu0 %v3850_v0  ;;  %v339_v0 = vld [vmem:[%s4761_s12 + $0x1] sm:$0xff]  ;;  %v3942_v51 = vpack.c.bf16 %v318_v49, %v317_v48 }
  0x6c   : > { %3852 = vmatprep.subr.bf16.mxu0 %v4558_v1  ;;  %v2956_v23 = vld [vmem:[%s6035_s1 + $0x340] sm:$0xff]  ;;  %v2965_v40 = vld [vmem:[%s6035_s1 + $0x388] sm:$0xff] }
  0x6d   : > { %3504 = vmatmul.mubr.f32.gmra.mrb[2].mxu1 %v4873_v5  ;;  %v2964_v39 = vld [vmem:[%s6035_s1 + $0x380] sm:$0xff]  ;;  %v2969_v49 = vld [vmem:[%s6035_s1 + $0x3a8] sm:$0xff] }
  0x6e   : > { %3907 = vmatpush1.bf16.msra.mxu1 %v3906_v4  ;;  %3506 = vmatprep.mubr.f32.mxu1 %v4883_v8  ;;  %v3927_v4 = vpack.c.bf16 %v308_v61, %v307_v60  ;;  %v2981_v60 = vld [vmem:[%s6035_s1 + $0x408] sm:$0xff]  ;;  %v321_v61 = vld [vmem:[%s6035_s1 + $0xf0] sm:$0xff]  ;;  %v2968_v48 = vld [vmem:[%s6035_s1 + $0x3a0] sm:$0xff] }
  0x6f   : > { %3908 = vmatprep.subr.bf16.mxu1 %v4558_v1  ;;  %3854 = vmatpush1.bf16.msra.mxu0 %v3853_v9  ;;  %v328_v9 = vld [vmem:[%s6035_s1 + $0x128] sm:$0xff] }
  0x70   : > { %3855 = vmatprep.subr.bf16.mxu0 %v4558_v1  ;;  %v3958_v15 = vpack.c.bf16 %v328_v9, %v327_v7  ;;  %v267_v7 = vld [vmem:[%s4761_s12] sm:$0xff] }
  0x71   : > { %3507 = vmatmul.mubr.f32.gmra.mrb[4].mxu1 %v4895_v13  ;;  %v270_v9 = vld [vmem:[%s4761_s12 + $0x20] sm:$0xff] }
  0x72   : > { %3910 = vmatpush1.bf16.msra.mxu1 %v3909_v12  ;;  %3509 = vmatprep.mubr.f32.mxu1 %v4905_v16  ;;  %v361_v12 = vld [vmem:[%s4761_s12 + $0x109] sm:$0xff] }
  0x73   : > { %3911 = vmatprep.subr.bf16.mxu1 %v4558_v1  ;;  %3857 = vmatpush1.bf16.msra.mxu0 %v3856_v17  ;;  %v3930_v17 = vpack.c.bf16 %v310_v11, %v309_v10  ;;  %v2950_v10 = vld [vmem:[%s6035_s1 + $0x310] sm:$0xff]  ;;  %v2951_v11 = vld [vmem:[%s6035_s1 + $0x318] sm:$0xff] }
  0x74   : > { %3858 = vmatprep.subr.bf16.mxu0 %v4558_v1 }
  0x75   : > { %3510 = vmatmul.mubr.f32.gmra.mrb[6].mxu1 %v4917_v21 }
  0x76   : > { %3913 = vmatpush1.bf16.msra.mxu1 %v3912_v20  ;;  %3512 = vmatprep.mubr.f32.mxu1 %v4927_v24  ;;  %v330_v20 = vld [vmem:[%s6035_s1 + $0x138] sm:$0xff] }
  0x77   : > { %3914 = vmatprep.subr.bf16.mxu1 %v4558_v1  ;;  %3860 = vmatpush1.bf16.msra.mxu0 %v3859_v26  ;;  %v5061_v26 = vld [vmem:[%s4761_s12 + $0x18] sm:$0xff]  ;;  %v3962_v27 = vpack.c.bf16 %v330_v20, %v329_v19  ;;  %v2954_v19 = vld [vmem:[%s6035_s1 + $0x330] sm:$0xff] }
  0x78   : > { %3861 = vmatprep.subr.bf16.mxu0 %v4558_v1  ;;  %v2955_v20 = vld [vmem:[%s6035_s1 + $0x338] sm:$0xff] }
  0x79   : > { %3513 = vmatmul.mubr.f32.gmra.mrb[8].mxu1 %v4939_v30 }
  0x7a   : > { %3916 = vmatpush1.bf16.msra.mxu1 %v3915_v29  ;;  %3515 = vmatprep.mubr.f32.mxu1 %v4949_v33  ;;  %v331_v29 = vld [vmem:[%s6035_s1 + $0x140] sm:$0xff] }
  0x7b   : > { %3917 = vmatprep.subr.bf16.mxu1 %v4558_v1  ;;  %3863 = vmatpush1.bf16.msra.mxu0 %v3862_v34  ;;  %v314_v34 = vld [vmem:[%s6035_s1 + $0xb8] sm:$0xff]  ;;  %v3966_v35 = vpack.c.bf16 %v332_v31, %v331_v29  ;;  %v5219_v31 = vld [vmem:[%s4761_s12 + $0x60] sm:$0xff] }
  0x7c   : > { %3864 = vmatprep.subr.bf16.mxu0 %v4558_v1  ;;  %v3936_v36 = vpack.c.bf16 %v314_v34, %v313_v32  ;;  %v2959_v29 = vld [vmem:[%s6035_s1 + $0x358] sm:$0xff]  ;;  %v2960_v32 = vld [vmem:[%s6035_s1 + $0x360] sm:$0xff]  ;;  %v2961_v34 = vld [vmem:[%s6035_s1 + $0x368] sm:$0xff] }
  0x7d   : > { %3516 = vmatmul.mubr.f32.gmra.mrb[10].mxu1 %v4961_v38 }
  0x7e   : > { %3919 = vmatpush1.bf16.msra.mxu1 %v3918_v37  ;;  %3518 = vmatprep.mubr.f32.mxu1 %v4971_v41  ;;  %v334_v37 = vld [vmem:[%s6035_s1 + $0x158] sm:$0xff] }
  0x7f   : > { %3920 = vmatprep.subr.bf16.mxu1 %v4558_v1  ;;  %3866 = vmatpush1.bf16.msra.mxu0 %v3865_v42 }
  0x80   : > { %3867 = vmatprep.subr.bf16.mxu0 %v4558_v1 }
  0x81   : > { %3519 = vmatmul.mubr.f32.gmra.mrb[12].mxu1 %v4983_v47 }
  0x82   : > { %3922 = vmatpush1.bf16.msra.mxu1 %v3921_v46  ;;  %3521 = vmatprep.mubr.f32.mxu1 %v4999_v52  ;;  %v336_v46 = vld [vmem:[%s6035_s1 + $0x168] sm:$0xff] }
  0x83   : > { %3923 = vmatprep.subr.bf16.mxu1 %v4558_v1  ;;  %3869 = vmatpush1.bf16.msra.mxu0 %v3868_v53  ;;  %v3974_v50 = vpack.c.bf16 %v336_v46, %v335_v45  ;;  %v338_v53 = vld [vmem:[%s6035_s1 + $0x178] sm:$0xff]  ;;  %v5275_v46 = vld [vmem:[%s4761_s12 + $0x90] sm:$0xff] }
  0x84   : > { %3951 = vmatprep.subr.bf16.mxu0 %v3950_v54  ;;  %v2967_v45 = vld [vmem:[%s6035_s1 + $0x398] sm:$0xff] }
  0x85   : > { %3522 = vmatmul.mubr.f32.gmra.mrb[14].mxu1 %v5005_v56 }
  0x86   : > { %3925 = vmatpush1.bf16.msra.mxu1 %v3924_v55  ;;  %3524 = vmatprep.mubr.f32.mxu1 %v5021_v62  ;;  %v320_v55 = vld [vmem:[%s6035_s1 + $0xe8] sm:$0xff] }
  0x87   : > { %477 = vmatmul.mubr.f32.vlgmr.msra.gmra.mrb[0].mxu0 %v339_v0  ;;  %3926 = vmatprep.subr.bf16.mxu1 %v4558_v1  ;;  %v322_v0 = vld [vmem:[%s6035_s1 + $0xf8] sm:$0xff] }
  0x88   : > { %481 = vmatprep.mubr.f32.mxu0 %v342_v2  ;;  %3953 = vmatpush3.bf16.msra.mxu0 %v3950_v54  ;;  %v319_v54 = vld [vmem:[%s6035_s1 + $0xe0] sm:$0xff] }
  0x89   : > { %3525 = vmatmul.mubr.f32.gmra.mrb[16].mxu1 %v5028_v6  ;;  %3955 = vmatprep.subr.bf16.mxu0 %v3954_v3  ;;  %v3945_v58 = vpack.c.bf16 %v320_v55, %v319_v54  ;;  %v5309_v54 = vld [vmem:[%s4761_s12 + $0xa8] sm:$0xff] }
  0x8a   : > { %3928 = vmatpush1.bf16.msra.mxu1 %v3927_v4  ;;  %3527 = vmatprep.mubr.f32.mxu1 %v361_v12  ;;  %v2949_v4 = vld [vmem:[%s6035_s1 + $0x308] sm:$0xff] }
  0x8b   : > { %482 = vmatmul.mubr.f32.gmra.mrb[2].mxu0 %v340_v14  ;;  %3929 = vmatprep.subr.bf16.mxu1 %v4558_v1  ;;  %v268_v12 = vld [vmem:[%s4761_s12 + $0x8] sm:$0xff]  ;;  %v3986_v14 = vpack.c.bf16 %v2951_v11, %v2950_v10 }
  0x8c   : > { %486 = vmatprep.mubr.f32.mxu0 %v4771_v25  ;;  %3957 = vmatpush3.bf16.msra.mxu0 %v3954_v3  ;;  %v2948_v3 = vld [vmem:[%s6035_s1 + $0x300] sm:$0xff]  ;;  %v2973_v55 = vld [vmem:[%s6035_s1 + $0x3c8] sm:$0xff] }
  0x8d   : > { %3528 = vmatmul.mubr.f32.gmra.mrb[18].mxu1 %v362_v18  ;;  %3959 = vmatprep.subr.bf16.mxu0 %v3958_v15  ;;  %v5179_v18 = vld [vmem:[%s4761_s12 + $0x38] sm:$0xff] }
  0x8e   : > { %3931 = vmatpush1.bf16.msra.mxu1 %v3930_v17  ;;  %806 = vmatprep.mubr.f32.mxu1 %v5061_v26  ;;  %v2953_v17 = vld [vmem:[%s6035_s1 + $0x328] sm:$0xff] }
  0x8f   : > { %487 = vmatmul.mubr.f32.gmra.mrb[4].mxu0 %v4814_v44  ;;  %3932 = vmatprep.subr.bf16.mxu1 %v4558_v1  ;;  %v333_v44 = vld [vmem:[%s6035_s1 + $0x150] sm:$0xff] }
  0x90   : > { %491 = vmatprep.mubr.f32.mxu0 %v4851_v59  ;;  %3961 = vmatpush3.bf16.msra.mxu0 %v3958_v15  ;;  %v3970_v42 = vpack.c.bf16 %v334_v37, %v333_v44  ;;  %v2952_v15 = vld [vmem:[%s6035_s1 + $0x320] sm:$0xff]  ;;  %v2963_v44 = vld [vmem:[%s6035_s1 + $0x378] sm:$0xff] }
  0x91   : > { %3963 = vmatprep.subr.bf16.mxu0 %v3962_v27  ;;  %v5247_v37 = vld [vmem:[%s4761_s12 + $0x78] sm:$0xff] }
  0x92   : > { %3934 = vmatpush1.bf16.msra.mxu1 %v3933_v28  ;;  %v2958_v28 = vld [vmem:[%s6035_s1 + $0x350] sm:$0xff] }
  0x93   : > { %492 = vmatmul.mubr.f32.gmra.mrb[6].mxu0 %v342_v2  ;;  %3935 = vmatprep.subr.bf16.mxu1 %v4558_v1 }
  0x94   : > { %496 = vmatprep.mubr.f32.mxu0 %v4861_v63  ;;  %3965 = vmatpush3.bf16.msra.mxu0 %v3962_v27  ;;  %v2957_v27 = vld [vmem:[%s6035_s1 + $0x348] sm:$0xff] }
  0x95   : > { %3967 = vmatprep.subr.bf16.mxu0 %v3966_v35 }
  0x96   : > { %3937 = vmatpush1.bf16.msra.mxu1 %v3936_v36  ;;  %v2962_v36 = vld [vmem:[%s6035_s1 + $0x370] sm:$0xff] }
  0x97   : > { %497 = vmatmul.mubr.f32.gmra.mrb[8].mxu0 %v4771_v25  ;;  %3938 = vmatprep.subr.bf16.mxu1 %v4558_v1  ;;  %v337_v25 = vld [vmem:[%s6035_s1 + $0x170] sm:$0xff] }
  0x98   : > { %501 = vmatprep.mubr.f32.mxu0 %v4873_v5  ;;  %3969 = vmatpush3.bf16.msra.mxu0 %v3966_v35  ;;  %v3978_v57 = vpack.c.bf16 %v338_v53, %v337_v25  ;;  %v5233_v35 = vld [vmem:[%s4761_s12 + $0x68] sm:$0xff]  ;;  %v2982_v25 = vld [vmem:[%s6035_s1 + $0x410] sm:$0xff]  ;;  %v2983_v53 = vld [vmem:[%s6035_s1 + $0x418] sm:$0xff] }
  0x99   : > { %3971 = vmatprep.subr.bf16.mxu0 %v3970_v42 }
  0x9a   : > { %3940 = vmatpush1.bf16.msra.mxu1 %v3939_v43  ;;  %v2966_v43 = vld [vmem:[%s6035_s1 + $0x390] sm:$0xff] }
  0x9b   : > { %502 = vmatmul.mubr.f32.gmra.mrb[10].mxu0 %v4851_v59  ;;  %3941 = vmatprep.subr.bf16.mxu1 %v4558_v1  ;;  %v2980_v59 = vld [vmem:[%s6035_s1 + $0x400] sm:$0xff] }
  0x9c   : > { %506 = vmatprep.mubr.f32.mxu0 %v4883_v8  ;;  %3973 = vmatpush3.bf16.msra.mxu0 %v3970_v42  ;;  %v5139_v2 = vpack.c.bf16 %v2981_v60, %v2980_v59  ;;  %v5261_v42 = vld [vmem:[%s4761_s12 + $0x80] sm:$0xff]  ;;  %v2985_v59 = vld [vmem:[%s6035_s1 + $0x428] sm:$0xff]  ;;  %v5329_v60 = vld [vmem:[%s4761_s12 + $0xb0] sm:$0xff] }
  0x9d   : > { %3975 = vmatprep.subr.bf16.mxu0 %v3974_v50 }
  0x9e   : > { %3943 = vmatpush1.bf16.msra.mxu1 %v3942_v51  ;;  %v2970_v51 = vld [vmem:[%s6035_s1 + $0x3b0] sm:$0xff] }
  0x9f   : > { %507 = vmatmul.mubr.f32.gmra.mrb[12].mxu0 %v4861_v63  ;;  %3944 = vmatprep.subr.bf16.mxu1 %v4558_v1  ;;  %v3948_v63 = vpack.c.bf16 %v322_v0, %v321_v61  ;;  %v2974_v61 = vld [vmem:[%s6035_s1 + $0x3d0] sm:$0xff]  ;;  %v2975_v0 = vld [vmem:[%s6035_s1 + $0x3d8] sm:$0xff] }
  0xa0   : > { %511 = vmatprep.mubr.f32.mxu0 %v4895_v13  ;;  %3977 = vmatpush3.bf16.msra.mxu0 %v3974_v50  ;;  %v5289_v50 = vld [vmem:[%s4761_s12 + $0x98] sm:$0xff] }
  0xa1   : > { %3979 = vmatprep.subr.bf16.mxu0 %v3978_v57 }
  0xa2   : > { %3946 = vmatpush1.bf16.msra.mxu1 %v3945_v58  ;;  %v2984_v58 = vld [vmem:[%s6035_s1 + $0x420] sm:$0xff] }
  0xa3   : > { %512 = vmatmul.mubr.f32.gmra.mrb[14].mxu0 %v4873_v5  ;;  %3947 = vmatprep.subr.bf16.mxu1 %v4558_v1  ;;  %v3983_v5 = vpack.c.bf16 %v2949_v4, %v2948_v3  ;;  %v4022_v3 = vpack.c.bf16 %v2975_v0, %v2974_v61  ;;  %v2986_v4 = vld [vmem:[%s6035_s1 + $0x430] sm:$0xff] }
  0xa4   : > { %516 = vmatprep.mubr.f32.mxu0 %v4905_v16  ;;  %3981 = vmatpush3.bf16.msra.mxu0 %v3978_v57  ;;  %v4034_v57 = vpack.c.bf16 %v2983_v53, %v2982_v25  ;;  %v1093_v25 = vld [vmem:[%s4761_s12 + $0xfa] sm:$0xff]  ;;  %v1094_v53 = vld [vmem:[%s4761_s12 + $0x10a] sm:$0xff] }
  0xa5   : > { %4031 = vmatprep.subr.bf16.mxu0 %v5139_v2 }
  0xa6   : > { %3949 = vmatpush1.bf16.msra.mxu1 %v3948_v63  ;;  %v4038_v63 = vpack.c.bf16 %v2985_v59, %v2984_v58 }
  0xa7   : > { %517 = vmatmul.mubr.f32.gmra.mrb[16].mxu0 %v4883_v8  ;;  %3982 = vmatprep.subr.bf16.mxu1 %v4558_v1  ;;  %v5166_v8 = vld [vmem:[%s4761_s12 + $0x30] sm:$0xff] }
  0xa8   : > { %521 = vmatprep.mubr.f32.mxu0 %v4917_v21 }
  0xa9   : > { %807 = vmatmul.mubr.f32.vlgmr.msra.gmra.mrb[20].mxu1 %v267_v7  ;;  %v2987_v7 = vld [vmem:[%s6035_s1 + $0x438] sm:$0xff] }
  0xaa   : > { %3984 = vmatpush1.bf16.msra.mxu1 %v3983_v5  ;;  %811 = vmatprep.mubr.f32.mxu1 %v270_v9  ;;  %v2976_v5 = vld [vmem:[%s6035_s1 + $0x3e0] sm:$0xff]  ;;  %v4042_v10 = vpack.c.bf16 %v2987_v7, %v2986_v4 }
  0xab   : > { %522 = vmatmul.mubr.f32.gmra.mrb[18].mxu0 %v4895_v13  ;;  %3985 = vmatprep.subr.bf16.mxu1 %v4558_v1  ;;  %v3989_v13 = vpack.c.bf16 %v2953_v17, %v2952_v15  ;;  %v2978_v15 = vld [vmem:[%s6035_s1 + $0x3f0] sm:$0xff]  ;;  %v2979_v17 = vld [vmem:[%s6035_s1 + $0x3f8] sm:$0xff] }
  0xac   : > { %526 = vmatprep.mubr.f32.mxu0 %v4927_v24 }
  0xad   : > { %812 = vmatmul.mubr.f32.gmra.mrb[22].mxu1 %v268_v12  ;;  %v2988_v12 = vld [vmem:[%s6035_s1 + $0x440] sm:$0xff] }
  0xae   : > { %3987 = vmatpush1.bf16.msra.mxu1 %v3986_v14  ;;  %816 = vmatprep.mubr.f32.mxu1 %v5166_v8  ;;  %v2989_v14 = vld [vmem:[%s6035_s1 + $0x448] sm:$0xff] }
  0xaf   : > { %527 = vmatmul.mubr.f32.gmra.mrb[20].mxu0 %v4905_v16  ;;  %3988 = vmatprep.subr.bf16.mxu1 %v4558_v1  ;;  %v3992_v16 = vpack.c.bf16 %v2955_v20, %v2954_v19  ;;  %v2991_v19 = vld [vmem:[%s6035_s1 + $0x458] sm:$0xff]  ;;  %v4028_v20 = vpack.c.bf16 %v2979_v17, %v2978_v15 }
  0xb0   : > { %531 = vmatprep.mubr.f32.mxu0 %v4939_v30 }
  0xb1   : > { %817 = vmatmul.mubr.f32.gmra.mrb[24].mxu1 %v5061_v26  ;;  %v5205_v26 = vld [vmem:[%s4761_s12 + $0x50] sm:$0xff] }
  0xb2   : > { %821 = vmatprep.mubr.f32.mxu1 %v5179_v18  ;;  %3990 = vmatpush1.bf16.msra.mxu1 %v3989_v13  ;;  %v4046_v13 = vpack.c.bf16 %v2989_v14, %v2988_v12 }
  0xb3   : > { %532 = vmatmul.mubr.f32.gmra.mrb[22].mxu0 %v4917_v21  ;;  %3991 = vmatprep.subr.bf16.mxu1 %v4558_v1  ;;  %v3995_v21 = vpack.c.bf16 %v2957_v27, %v2956_v23  ;;  %v2992_v23 = vld [vmem:[%s6035_s1 + $0x460] sm:$0xff]  ;;  %v2993_v27 = vld [vmem:[%s6035_s1 + $0x468] sm:$0xff] }
  0xb4   : > { %536 = vmatprep.mubr.f32.mxu0 %v4949_v33 }
  0xb5   : > { %822 = vmatmul.mubr.f32.gmra.mrb[26].mxu1 %v270_v9  ;;  %v2977_v9 = vld [vmem:[%s6035_s1 + $0x3e8] sm:$0xff] }
  0xb6   : > { %826 = vmatprep.mubr.f32.mxu1 %v5192_v22  ;;  %3993 = vmatpush1.bf16.msra.mxu1 %v3992_v16  ;;  %v4025_v11 = vpack.c.bf16 %v2977_v9, %v2976_v5  ;;  %v285_v16 = vld [vmem:[%s4761_s12 + $0xd8] sm:$0xff] }
  0xb7   : > { %537 = vmatmul.mubr.f32.gmra.mrb[24].mxu0 %v4927_v24  ;;  %3994 = vmatprep.subr.bf16.mxu1 %v4558_v1  ;;  %v3998_v24 = vpack.c.bf16 %v2959_v29, %v2958_v28  ;;  %v2995_v28 = vld [vmem:[%s6035_s1 + $0x478] sm:$0xff]  ;;  %v287_v29 = vld [vmem:[%s4761_s12 + $0xf0] sm:$0xff] }
  0xb8   : > { %541 = vmatprep.mubr.f32.mxu0 %v4961_v38 }
  0xb9   : > { %827 = vmatmul.mubr.f32.gmra.mrb[28].mxu1 %v5166_v8 }
  0xba   : > { %831 = vmatprep.mubr.f32.mxu1 %v5205_v26  ;;  %3996 = vmatpush1.bf16.msra.mxu1 %v3995_v21  ;;  %v4054_v21 = vpack.c.bf16 %v2993_v27, %v2992_v23 }
  0xbb   : > { %542 = vmatmul.mubr.f32.gmra.mrb[26].mxu0 %v4939_v30  ;;  %3997 = vmatprep.subr.bf16.mxu1 %v4558_v1  ;;  %v4001_v30 = vpack.c.bf16 %v2961_v34, %v2960_v32  ;;  %v1074_v32 = vld [vmem:[%s4761_s12 + $0x1a] sm:$0xff]  ;;  %v289_v34 = vld [vmem:[%s4761_s12 + $0x108] sm:$0xff] }
  0xbc   : > { %546 = vmatprep.mubr.f32.mxu0 %v4971_v41 }
  0xbd   : > { %832 = vmatmul.mubr.f32.gmra.mrb[30].mxu1 %v5179_v18 }
  0xbe   : > { %836 = vmatprep.mubr.f32.mxu1 %v5219_v31  ;;  %3999 = vmatpush1.bf16.msra.mxu1 %v3998_v24 }
  0xbf   : > { %547 = vmatmul.mubr.f32.gmra.mrb[28].mxu0 %v4949_v33  ;;  %4000 = vmatprep.subr.bf16.mxu1 %v4558_v1  ;;  %v4004_v33 = vpack.c.bf16 %v2963_v44, %v2962_v36  ;;  %v290_v36 = vld [vmem:[%s4761_s12 + $0x110] sm:$0xff] }
  0xc0   : > { %551 = vmatprep.mubr.f32.mxu0 %v4983_v47  ;;  %v1076_v44 = vld [vmem:[%s4761_s12 + $0x32] sm:$0xff] }
  0xc1   : > { %837 = vmatmul.mubr.f32.gmra.mrb[32].mxu1 %v5192_v22 }
  0xc2   : > { %841 = vmatprep.mubr.f32.mxu1 %v5233_v35  ;;  %4002 = vmatpush1.bf16.msra.mxu1 %v4001_v30  ;;  %v1072_v30 = vld [vmem:[%s4761_s12 + $0x2] sm:$0xff] }
  0xc3   : > { %552 = vmatmul.mubr.f32.gmra.mrb[30].mxu0 %v4961_v38  ;;  %4003 = vmatprep.subr.bf16.mxu1 %v4558_v1  ;;  %v4007_v38 = vpack.c.bf16 %v2965_v40, %v2964_v39  ;;  %v1078_v39 = vld [vmem:[%s4761_s12 + $0x4a] sm:$0xff]  ;;  %v1079_v40 = vld [vmem:[%s4761_s12 + $0x52] sm:$0xff] }
  0xc4   : > { %556 = vmatprep.mubr.f32.mxu0 %v4999_v52 }
  0xc5   : > { %842 = vmatmul.mubr.f32.gmra.mrb[34].mxu1 %v5205_v26 }
  0xc6   : > { %846 = vmatprep.mubr.f32.mxu1 %v5247_v37  ;;  %4005 = vmatpush1.bf16.msra.mxu1 %v4004_v33  ;;  %v1073_v33 = vld [vmem:[%s4761_s12 + $0xa] sm:$0xff] }
  0xc7   : > { %557 = vmatmul.mubr.f32.gmra.mrb[32].mxu0 %v4971_v41  ;;  %4006 = vmatprep.subr.bf16.mxu1 %v4558_v1  ;;  %v4010_v41 = vpack.c.bf16 %v2967_v45, %v2966_v43  ;;  %v1082_v43 = vld [vmem:[%s4761_s12 + $0x7a] sm:$0xff]  ;;  %v1083_v45 = vld [vmem:[%s4761_s12 + $0x82] sm:$0xff] }
  0xc8   : > { %561 = vmatprep.mubr.f32.mxu0 %v5005_v56 }
  0xc9   : > { %847 = vmatmul.mubr.f32.gmra.mrb[36].mxu1 %v5219_v31 }
  0xca   : > { %851 = vmatprep.mubr.f32.mxu1 %v5261_v42  ;;  %4008 = vmatpush1.bf16.msra.mxu1 %v4007_v38  ;;  %v1080_v38 = vld [vmem:[%s4761_s12 + $0x62] sm:$0xff] }
  0xcb   : > { %562 = vmatmul.mubr.f32.gmra.mrb[34].mxu0 %v4983_v47  ;;  %4009 = vmatprep.subr.bf16.mxu1 %v4558_v1  ;;  %v4013_v47 = vpack.c.bf16 %v2969_v49, %v2968_v48  ;;  %v1086_v48 = vld [vmem:[%s4761_s12 + $0xaa] sm:$0xff]  ;;  %v1087_v49 = vld [vmem:[%s4761_s12 + $0xb2] sm:$0xff] }
  0xcc   : > { %566 = vmatprep.mubr.f32.mxu0 %v5021_v62  ;;  %v2971_v62 = vld [vmem:[%s6035_s1 + $0x3b8] sm:$0xff] }
  0xcd   : > { %852 = vmatmul.mubr.f32.gmra.mrb[38].mxu1 %v5233_v35 }
  0xce   : > { %856 = vmatprep.mubr.f32.mxu1 %v5275_v46  ;;  %4011 = vmatpush1.bf16.msra.mxu1 %v4010_v41  ;;  %v1084_v41 = vld [vmem:[%s4761_s12 + $0x92] sm:$0xff] }
  0xcf   : > { %567 = vmatmul.mubr.f32.gmra.mrb[36].mxu0 %v4999_v52  ;;  %4012 = vmatprep.subr.bf16.mxu1 %v4558_v1  ;;  %v4016_v52 = vpack.c.bf16 %v2971_v62, %v2970_v51  ;;  %v1090_v51 = vld [vmem:[%s4761_s12 + $0xda] sm:$0xff]  ;;  %v1091_v62 = vld [vmem:[%s4761_s12 + $0xe2] sm:$0xff] }
  0xd0   : > { %571 = vmatprep.mubr.f32.mxu0 %v5028_v6  ;;  %v2972_v6 = vld [vmem:[%s6035_s1 + $0x3c0] sm:$0xff] }
  0xd1   : > { %857 = vmatmul.mubr.f32.gmra.mrb[40].mxu1 %v5247_v37 }
  0xd2   : > { %861 = vmatprep.mubr.f32.mxu1 %v5289_v50  ;;  %4014 = vmatpush1.bf16.msra.mxu1 %v4013_v47  ;;  %v1088_v47 = vld [vmem:[%s4761_s12 + $0xc2] sm:$0xff] }
  0xd3   : > { %572 = vmatmul.mubr.f32.gmra.mrb[38].mxu0 %v5005_v56  ;;  %4015 = vmatprep.subr.bf16.mxu1 %v4558_v1  ;;  %v4019_v56 = vpack.c.bf16 %v2973_v55, %v2972_v6 }
  0xd4   : > { %3562 = vmatprep.mubr.f32.mxu0 %v5166_v8  ;;  %v284_v8 = vld [vmem:[%s4761_s12 + $0xc8] sm:$0xff] }
  0xd5   : > { %862 = vmatmul.mubr.f32.gmra.mrb[42].mxu1 %v5261_v42 }
  0xd6   : > { %866 = vmatprep.mubr.f32.mxu1 %v5309_v54  ;;  %4017 = vmatpush1.bf16.msra.mxu1 %v4016_v52  ;;  %v1092_v52 = vld [vmem:[%s4761_s12 + $0xf2] sm:$0xff] }
  0xd7   : > { %3563 = vmatmul.mubr.f32.vlgmr.msra.gmra.mrb[40].mxu0 %v5179_v18  ;;  %4018 = vmatprep.subr.bf16.mxu1 %v4558_v1  ;;  %v2990_v18 = vld [vmem:[%s6035_s1 + $0x450] sm:$0xff] }
  0xd8   : > { %3565 = vmatprep.mubr.f32.mxu0 %v5192_v22  ;;  %4033 = vmatpush3.bf16.msra.mxu0 %v5139_v2  ;;  %v283_v2 = vld [vmem:[%s4761_s12 + $0xc0] sm:$0xff]  ;;  %v4050_v22 = vpack.c.bf16 %v2991_v19, %v2990_v18 }
  0xd9   : > { %867 = vmatmul.mubr.f32.gmra.mrb[44].mxu1 %v5275_v46  ;;  %4035 = vmatprep.subr.bf16.mxu0 %v4034_v57 }
  0xda   : > { %871 = vmatprep.mubr.f32.mxu1 %v5329_v60  ;;  %4020 = vmatpush1.bf16.msra.mxu1 %v4019_v56 }
  0xdb   : > { %3566 = vmatmul.mubr.f32.gmra.mrb[42].mxu0 %v5205_v26  ;;  %4021 = vmatprep.subr.bf16.mxu1 %v4558_v1  ;;  %v2994_v26 = vld [vmem:[%s6035_s1 + $0x470] sm:$0xff] }
  0xdc   : > { %3568 = vmatprep.mubr.f32.mxu0 %v5219_v31  ;;  %4037 = vmatpush3.bf16.msra.mxu0 %v4034_v57  ;;  %v4058_v24 = vpack.c.bf16 %v2995_v28, %v2994_v26  ;;  %v288_v31 = vld [vmem:[%s4761_s12 + $0xf8] sm:$0xff] }
  0xdd   : > { %872 = vmatmul.mubr.f32.gmra.mrb[46].mxu1 %v5289_v50  ;;  %4039 = vmatprep.subr.bf16.mxu0 %v4038_v63 }
  0xde   : > { %876 = vmatprep.mubr.f32.mxu1 %v283_v2  ;;  %4023 = vmatpush1.bf16.msra.mxu1 %v4022_v3 }
  0xdf   : > { %3569 = vmatmul.mubr.f32.gmra.mrb[44].mxu0 %v5233_v35  ;;  %4024 = vmatprep.subr.bf16.mxu1 %v4558_v1  ;;  %v1075_v35 = vld [vmem:[%s4761_s12 + $0x22] sm:$0xff] }
  0xe0   : > { %3571 = vmatprep.mubr.f32.mxu0 %v5247_v37  ;;  %4041 = vmatpush3.bf16.msra.mxu0 %v4038_v63  ;;  %v1077_v37 = vld [vmem:[%s4761_s12 + $0x3a] sm:$0xff] }
  0xe1   : > { %877 = vmatmul.mubr.f32.gmra.mrb[48].mxu1 %v5309_v54  ;;  %4043 = vmatprep.subr.bf16.mxu0 %v4042_v10 }
  0xe2   : > { %881 = vmatprep.mubr.f32.mxu1 %v284_v8  ;;  %4026 = vmatpush1.bf16.msra.mxu1 %v4025_v11 }
  0xe3   : > { %3572 = vmatmul.mubr.f32.gmra.mrb[46].mxu0 %v5261_v42  ;;  %4027 = vmatprep.subr.bf16.mxu1 %v4558_v1  ;;  %v286_v1 = vld [vmem:[%s4761_s12 + $0xe0] sm:$0xff]  ;;  %v1081_v42 = vld [vmem:[%s4761_s12 + $0x6a] sm:$0xff] }
  0xe4   : > { %3574 = vmatprep.mubr.f32.mxu0 %v5275_v46  ;;  %4045 = vmatpush3.bf16.msra.mxu0 %v4042_v10  ;;  %v1085_v46 = vld [vmem:[%s4761_s12 + $0x9a] sm:$0xff] }
  0xe5   : > { %882 = vmatmul.mubr.f32.gmra.mrb[50].mxu1 %v5329_v60  ;;  %4047 = vmatprep.subr.bf16.mxu0 %v4046_v13 }
  0xe6   : > { %886 = vmatprep.mubr.f32.mxu1 %v285_v16  ;;  %4029 = vmatpush1.bf16.msra.mxu1 %v4028_v20 }
  0xe7   : > { %3575 = vmatmul.mubr.f32.gmra.mrb[48].mxu0 %v5289_v50  ;;  %v1089_v50 = vld [vmem:[%s4761_s12 + $0xca] sm:$0xff] }
  0xe8   : > { %3577 = vmatprep.mubr.f32.mxu0 %v5309_v54  ;;  %4049 = vmatpush3.bf16.msra.mxu0 %v4046_v13  ;;  %v1095_v54 = vld [vmem:[%s4761_s12 + $0x112] sm:$0xff] }
  0xe9   : > { %887 = vmatmul.mubr.f32.gmra.mrb[52].mxu1 %v283_v2  ;;  %4051 = vmatprep.subr.bf16.mxu0 %v4050_v22 }
  0xea   : > { %891 = vmatprep.mubr.f32.mxu1 %v286_v1 }
  0xeb   : > { %3578 = vmatmul.mubr.f32.gmra.mrb[50].mxu0 %v5329_v60 }
  0xec   : > { %3580 = vmatprep.mubr.f32.mxu0 %v283_v2  ;;  %4053 = vmatpush3.bf16.msra.mxu0 %v4050_v22 }
  0xed   : > { %892 = vmatmul.mubr.f32.gmra.mrb[54].mxu1 %v284_v8  ;;  %4055 = vmatprep.subr.bf16.mxu0 %v4054_v21 }
  0xee   : > { %896 = vmatprep.mubr.f32.mxu1 %v287_v29 }
  0xef   : > { %3581 = vmatmul.mubr.f32.gmra.mrb[52].mxu0 %v284_v8 }
  0xf0   : > { %3583 = vmatprep.mubr.f32.mxu0 %v285_v16  ;;  %4057 = vmatpush3.bf16.msra.mxu0 %v4054_v21 }
  0xf1   : > { %897 = vmatmul.mubr.f32.gmra.mrb[56].mxu1 %v285_v16  ;;  %4059 = vmatprep.subr.bf16.mxu0 %v4058_v24 }
  0xf2   : > { %901 = vmatprep.mubr.f32.mxu1 %v288_v31 }
  0xf3   : > { %3584 = vmatmul.mubr.f32.gmra.mrb[54].mxu0 %v286_v1 }
  0xf4   : > { %3586 = vmatprep.mubr.f32.mxu0 %v287_v29  ;;  %4061 = vmatpush3.bf16.msra.mxu0 %v4058_v24 }
  0xf5   : > { %902 = vmatmul.mubr.f32.gmra.mrb[58].mxu1 %v286_v1 }
  0xf6   : > { %1209 = vmatprep.mubr.f32.mxu1 %v1074_v32 }
  0xf7   : > { %3587 = vmatmul.mubr.f32.gmra.mrb[56].mxu0 %v288_v31 }
  0xf8   : > { %3589 = vmatprep.mubr.f32.mxu0 %v289_v34 }
  0xf9   : > { %1210 = vmatmul.mubr.f32.vlgmr.msra.gmra.mrb[60].mxu1 %v1072_v30 }
  0xfa   : > { %1214 = vmatprep.mubr.f32.mxu1 %v1075_v35 }
  0xfb   : > { %3590 = vmatmul.mubr.f32.gmra.mrb[58].mxu0 %v290_v36 }
  0xfc   : > { %3624 = vmatprep.mubr.f32.mxu0 %v1076_v44 }
  0xfd   : > { %1215 = vmatmul.mubr.f32.gmra.mrb[62].mxu1 %v1073_v33 }
  0xfe   : > { %1219 = vmatprep.mubr.f32.mxu1 %v1076_v44 }
  0xff   : > { %3625 = vmatmul.mubr.f32.vlgmr.msra.gmra.mrb[60].mxu0 %v1077_v37 }
 0x100   : > { %3627 = vmatprep.mubr.f32.mxu0 %v1078_v39 }
 0x101   : > { %1220 = vmatmul.mubr.f32.gmra.mrb[64].mxu1 %v1074_v32 }
 0x102   : > { %1224 = vmatprep.mubr.f32.mxu1 %v1077_v37 }
 0x103   : > { %3628 = vmatmul.mubr.f32.gmra.mrb[62].mxu0 %v1079_v40 }
 0x104   : > { %3630 = vmatprep.mubr.f32.mxu0 %v1080_v38 }
 0x105   : > { %1225 = vmatmul.mubr.f32.gmra.mrb[66].mxu1 %v1075_v35 }
 0x106   : > { %1229 = vmatprep.mubr.f32.mxu1 %v1078_v39 }
 0x107   : > { %3631 = vmatmul.mubr.f32.gmra.mrb[64].mxu0 %v1081_v42 }
 0x108   : > { %3633 = vmatprep.mubr.f32.mxu0 %v1082_v43 }
 0x109   : > { %1230 = vmatmul.mubr.f32.gmra.mrb[68].mxu1 %v1076_v44 }
 0x10a   : > { %1234 = vmatprep.mubr.f32.mxu1 %v1079_v40 }
 0x10b   : > { %3634 = vmatmul.mubr.f32.gmra.mrb[66].mxu0 %v1083_v45 }
 0x10c   : > { %3636 = vmatprep.mubr.f32.mxu0 %v1084_v41 }
 0x10d   : > { %1235 = vmatmul.mubr.f32.gmra.mrb[70].mxu1 %v1077_v37 }
 0x10e   : > { %1239 = vmatprep.mubr.f32.mxu1 %v1080_v38 }
 0x10f   : > { %3637 = vmatmul.mubr.f32.gmra.mrb[68].mxu0 %v1085_v46 }
 0x110   : > { %3639 = vmatprep.mubr.f32.mxu0 %v1086_v48 }
 0x111   : > { %1240 = vmatmul.mubr.f32.gmra.mrb[72].mxu1 %v1078_v39 }
 0x112   : > { %1244 = vmatprep.mubr.f32.mxu1 %v1081_v42 }
 0x113   : > { %3640 = vmatmul.mubr.f32.gmra.mrb[70].mxu0 %v1087_v49 }
 0x114   : > { %3642 = vmatprep.mubr.f32.mxu0 %v1088_v47 }
 0x115   : > { %1245 = vmatmul.mubr.f32.gmra.mrb[74].mxu1 %v1079_v40 }
 0x116   : > { %1249 = vmatprep.mubr.f32.mxu1 %v1082_v43 }
 0x117   : > { %3643 = vmatmul.mubr.f32.gmra.mrb[72].mxu0 %v1089_v50 }
 0x118   : > { %3645 = vmatprep.mubr.f32.mxu0 %v1090_v51 }
 0x119   : > { %1250 = vmatmul.mubr.f32.gmra.mrb[76].mxu1 %v1080_v38 }
 0x11a   : > { %1254 = vmatprep.mubr.f32.mxu1 %v1083_v45 }
 0x11b   : > { %3646 = vmatmul.mubr.f32.gmra.mrb[74].mxu0 %v1091_v62 }
 0x11c   : > { %3648 = vmatprep.mubr.f32.mxu0 %v1092_v52 }
 0x11d   : > { %1255 = vmatmul.mubr.f32.gmra.mrb[78].mxu1 %v1081_v42 }
 0x11e   : > { %1259 = vmatprep.mubr.f32.mxu1 %v1084_v41 }
 0x11f   : > { %3649 = vmatmul.mubr.f32.gmra.mrb[76].mxu0 %v1093_v25 }
 0x120   : > { %3651 = vmatprep.mubr.f32.mxu0 %v1094_v53 }
 0x121   : > { %1260 = vmatmul.mubr.f32.gmra.mrb[80].mxu1 %v1082_v43 }
 0x122   : > { %1264 = vmatprep.mubr.f32.mxu1 %v1085_v46 }
 0x123   : > { %3652 = vmatmul.mubr.f32.gmra.mrb[78].mxu0 %v1095_v54 }
 0x125   : > { %1265 = vmatmul.mubr.f32.gmra.mrb[82].mxu1 %v1083_v45 }
 0x126   : > { %1269 = vmatprep.mubr.f32.mxu1 %v1086_v48 }
 0x129   : > { %1270 = vmatmul.mubr.f32.gmra.mrb[84].mxu1 %v1084_v41 }
 0x12a   : > { %1274 = vmatprep.mubr.f32.mxu1 %v1087_v49 }
 0x12d   : > { %1275 = vmatmul.mubr.f32.gmra.mrb[86].mxu1 %v1085_v46 }
 0x12e   : > { %1279 = vmatprep.mubr.f32.mxu1 %v1088_v47 }
 0x131   : > { %1280 = vmatmul.mubr.f32.gmra.mrb[88].mxu1 %v1086_v48 }
 0x132   : > { %1284 = vmatprep.mubr.f32.mxu1 %v1089_v50 }
 0x135   : > { %1285 = vmatmul.mubr.f32.gmra.mrb[90].mxu1 %v1087_v49 }
 0x136   : > { %1289 = vmatprep.mubr.f32.mxu1 %v1090_v51 }
 0x139   : > { %1290 = vmatmul.mubr.f32.gmra.mrb[92].mxu1 %v1088_v47 }
 0x13a   : > { %1294 = vmatprep.mubr.f32.mxu1 %v1091_v62 }
 0x13c   : > { %v3502_v6 = vpop.f32.mrb[0].mxu1 }
 0x13d   : > { %v643_v55 = vpop.f32.mrb[1].mxu1  ;;  %1295 = vmatmul.mubr.f32.gmra.mrb[94].mxu1 %v1089_v50 }
 0x13e   : > { %1299 = vmatprep.mubr.f32.mxu1 %v1092_v52 }
 0x140   : > { %v3505_v57 = vpop.f32.mrb[2].mxu1 }
 0x141   : > { %1300 = vmatmul.mubr.f32.gmra.mrb[96].mxu1 %v1090_v51  ;;  %v653_v56 = vpop.f32.mrb[3].mxu1 }
 0x142   : > { %1304 = vmatprep.mubr.f32.mxu1 %v1093_v25 }
 0x144   : > { %v3508_v58 = vpop.f32.mrb[4].mxu1 }
 0x145   : > { %1305 = vmatmul.mubr.f32.gmra.mrb[98].mxu1 %v1091_v62  ;;  %v663_v59 = vpop.f32.mrb[5].mxu1 }
 0x148   : > { %v3511_v60 = vpop.f32.mrb[6].mxu1 }
 0x149   : > { %v673_v61 = vpop.f32.mrb[7].mxu1 }
 0x14c   : > { %v3514_v0 = vpop.f32.mrb[8].mxu1 }
 0x14d   : > { %v683_v63 = vpop.f32.mrb[9].mxu1 }
 0x150   : > { %v3517_v3 = vpop.f32.mrb[10].mxu1 }
 0x151   : > { %v693_v4 = vpop.f32.mrb[11].mxu1 }
 0x154   : > { %v5431_v7 = vpop.f32.mrb[12].mxu1 }
 0x155   : > { %v703_v2 = vpop.f32.mrb[13].mxu1 }
 0x158   : > { %v5433_v5 = vpop.f32.mrb[14].mxu1 }
 0x159   : > { %v5435_v9 = vpop.f32.mrb[15].mxu1 }
 0x15a   : > { %v478_v10 = vpop.f32.mrb[0].mxu0 }
 0x15b   : > { %v644_v11 = vadd.f32 %v643_v55, %v478_v10  ;;  %v480_v12 = vpop.f32.mrb[1].mxu0 }
 0x15c   : > { %v5437_v14 = vpop.f32.mrb[16].mxu1 }
 0x15d   : > { %v5439_v8 = vpop.f32.mrb[17].mxu1 }
 0x15e   : > { %v483_v15 = vpop.f32.mrb[2].mxu0 }
 0x15f   : > { %v649_v17 = vadd.f32 %v3502_v6, %v483_v15  ;;  %v485_v13 = vpop.f32.mrb[3].mxu0 }
 0x160   : > { %v5441_v18 = vpop.f32.mrb[18].mxu1 }
 0x161   : > { %v5443_v19 = vpop.f32.mrb[19].mxu1 }
 0x162   : > { %v488_v20 = vpop.f32.mrb[4].mxu0 }
 0x163   : > { %v654_v16 = vadd.f32 %v653_v56, %v488_v20  ;;  %v490_v22 = vpop.f32.mrb[5].mxu0 }
 0x166   : > { %v493_v23 = vpop.f32.mrb[6].mxu0 }
 0x167   : > { %v659_v27 = vadd.f32 %v3505_v57, %v493_v23  ;;  %v495_v1 = vpop.f32.mrb[7].mxu0 }
 0x16a   : > { %v498_v21 = vpop.f32.mrb[8].mxu0 }
 0x16b   : > { %v664_v26 = vadd.f32 %v663_v59, %v498_v21  ;;  %v500_v28 = vpop.f32.mrb[9].mxu0 }
 0x16e   : > { %v503_v29 = vpop.f32.mrb[10].mxu0 }
 0x16f   : > { %v669_v24 = vadd.f32 %v3508_v58, %v503_v29  ;;  %v505_v31 = vpop.f32.mrb[11].mxu0 }
 0x172   : > { %v508_v32 = vpop.f32.mrb[12].mxu0 }
 0x173   : > { %v674_v34 = vadd.f32 %v673_v61, %v508_v32  ;;  %v510_v30 = vpop.f32.mrb[13].mxu0 }
 0x176   : > { %v513_v35 = vpop.f32.mrb[14].mxu0 }
 0x177   : > { %v679_v36 = vadd.f32 %v3511_v60, %v513_v35  ;;  %v515_v44 = vpop.f32.mrb[15].mxu0 }
 0x17a   : > { %v518_v33 = vpop.f32.mrb[16].mxu0 }
 0x17b   : > { %v684_v37 = vadd.f32 %v683_v63, %v518_v33  ;;  %v520_v39 = vpop.f32.mrb[17].mxu0 }
 0x17c   : > { %v808_v40 = vpop.f32.mrb[20].mxu1 }
 0x17d   : > { %v5445_v38 = vadd.f32 %v808_v40, %v644_v11  ;;  %v810_v42 = vpop.f32.mrb[21].mxu1 }
 0x17e   : > { %v523_v43 = vpop.f32.mrb[18].mxu0 }
 0x17f   : > { %v689_v45 = vadd.f32 %v3514_v0, %v523_v43  ;;  %v525_v41 = vpop.f32.mrb[19].mxu0 }
 0x180   : > { %v813_v46 = vpop.f32.mrb[22].mxu1 }
 0x181   : > { %v5447_v48 = vadd.f32 %v813_v46, %v649_v17  ;;  %v815_v49 = vpop.f32.mrb[23].mxu1 }
 0x182   : > { %v528_v47 = vpop.f32.mrb[20].mxu0 }
 0x183   : > { %v694_v50 = vadd.f32 %v693_v4, %v528_v47  ;;  %v530_v51 = vpop.f32.mrb[21].mxu0 }
 0x184   : > { %v818_v62 = vpop.f32.mrb[24].mxu1 }
 0x185   : > { %v5449_v52 = vadd.f32 %v818_v62, %v654_v16  ;;  %v820_v25 = vpop.f32.mrb[25].mxu1 }
 0x186   : > { %v533_v53 = vpop.f32.mrb[22].mxu0 }
 0x187   : > { %v699_v54 = vadd.f32 %v3517_v3, %v533_v53  ;;  %v535_v6 = vpop.f32.mrb[23].mxu0 }
 0x188   : > { %v823_v55 = vpop.f32.mrb[26].mxu1 }
 0x189   : > { %v824_v57 = vadd.f32 %v823_v55, %v659_v27  ;;  %v825_v56 = vpop.f32.mrb[27].mxu1 }
 0x18a   : > { %v538_v58 = vpop.f32.mrb[24].mxu0 }
 0x18b   : > { %v704_v59 = vadd.f32 %v703_v2, %v538_v58  ;;  %v540_v60 = vpop.f32.mrb[25].mxu0 }
 0x18c   : > { %v828_v61 = vpop.f32.mrb[28].mxu1 }
 0x18d   : > { %v829_v0 = vadd.f32 %v828_v61, %v664_v26  ;;  %v830_v63 = vpop.f32.mrb[29].mxu1 }
 0x18e   : > { %v543_v10 = vpop.f32.mrb[26].mxu0 }
 0x18f   : > { %v709_v4 = vadd.f32 %v5431_v7, %v543_v10  ;;  %v545_v11 = vpop.f32.mrb[27].mxu0 }
 0x190   : > { %v833_v12 = vpop.f32.mrb[30].mxu1 }
 0x191   : > { %v834_v15 = vadd.f32 %v833_v12, %v669_v24  ;;  %v835_v17 = vpop.f32.mrb[31].mxu1 }
 0x192   : > { %v548_v13 = vpop.f32.mrb[28].mxu0 }
 0x193   : > { %v714_v3 = vadd.f32 %v5435_v9, %v548_v13  ;;  %v550_v20 = vpop.f32.mrb[29].mxu0 }
 0x194   : > { %v838_v16 = vpop.f32.mrb[32].mxu1 }
 0x195   : > { %v839_v22 = vadd.f32 %v838_v16, %v674_v34  ;;  %v840_v23 = vpop.f32.mrb[33].mxu1 }
 0x196   : > { %v553_v27 = vpop.f32.mrb[30].mxu0 }
 0x197   : > { %v719_v2 = vadd.f32 %v5433_v5, %v553_v27  ;;  %v555_v1 = vpop.f32.mrb[31].mxu0 }
 0x198   : > { %v843_v21 = vpop.f32.mrb[34].mxu1 }
 0x199   : > { %v844_v26 = vadd.f32 %v843_v21, %v679_v36  ;;  %v845_v28 = vpop.f32.mrb[35].mxu1 }
 0x19a   : > { %v558_v29 = vpop.f32.mrb[32].mxu0 }
 0x19b   : > { %v724_v7 = vadd.f32 %v5439_v8, %v558_v29  ;;  %v560_v31 = vpop.f32.mrb[33].mxu0 }
 0x19c   : > { %v848_v24 = vpop.f32.mrb[36].mxu1 }
 0x19d   : > { %v849_v32 = vadd.f32 %v848_v24, %v684_v37  ;;  %v850_v30 = vpop.f32.mrb[37].mxu1 }
 0x19e   : > { %v563_v35 = vpop.f32.mrb[34].mxu0 }
 0x19f   : > { %v729_v9 = vadd.f32 %v5437_v14, %v563_v35  ;;  %v565_v44 = vpop.f32.mrb[35].mxu0 }
 0x1a0   : > { %v853_v34 = vpop.f32.mrb[38].mxu1 }
 0x1a1   : > { %v854_v33 = vadd.f32 %v853_v34, %v689_v45  ;;  %v855_v39 = vpop.f32.mrb[39].mxu1 }
 0x1a2   : > { %v568_v40 = vpop.f32.mrb[36].mxu0 }
 0x1a3   : > { %v734_v5 = vadd.f32 %v5443_v19, %v568_v40  ;;  %v570_v42 = vpop.f32.mrb[37].mxu0 }
 0x1a4   : > { %v858_v36 = vpop.f32.mrb[40].mxu1 }
 0x1a5   : > { %v859_v43 = vadd.f32 %v858_v36, %v694_v50  ;;  %v860_v41 = vpop.f32.mrb[41].mxu1 }
 0x1a6   : > { %v573_v46 = vpop.f32.mrb[38].mxu0 }
 0x1a7   : > { %v739_v8 = vadd.f32 %v5441_v18, %v573_v46  ;;  %v575_v49 = vpop.f32.mrb[39].mxu0 }
 0x1a8   : > { %v863_v37 = vpop.f32.mrb[42].mxu1 }
 0x1a9   : > { %v864_v47 = vadd.f32 %v863_v37, %v699_v54  ;;  %v865_v51 = vpop.f32.mrb[43].mxu1 }
 0x1aa   : > { %v3564_v62 = vpop.f32.mrb[40].mxu0 }
 0x1ab   : > { %v5459_v14 = vadd.f32 %v3564_v62, %v5447_v48  ;;  %v973_v45 = vpop.f32.mrb[41].mxu0 }
 0x1ac   : > { %v868_v25 = vpop.f32.mrb[44].mxu1  ;;  %v5462_v53 = vadd.f32 %v973_v45, %v5445_v38 }
 0x1ad   : > { %v869_v19 = vadd.f32 %v868_v25, %v704_v59  ;;  %v870_v6 = vpop.f32.mrb[45].mxu1 }
 0x1ae   : > { %v3567_v50 = vpop.f32.mrb[42].mxu0 }
 0x1af   : > { %v5464_v55 = vadd.f32 %v3567_v50, %v824_v57  ;;  %v983_v56 = vpop.f32.mrb[43].mxu0 }
 0x1b0   : > { %v873_v18 = vpop.f32.mrb[46].mxu1  ;;  %v5467_v58 = vadd.f32 %v983_v56, %v5449_v52 }
 0x1b1   : > { %v874_v54 = vadd.f32 %v873_v18, %v709_v4  ;;  %v875_v60 = vpop.f32.mrb[47].mxu1  ;;  %v5504_v18 = vld [vmem:[%s6037_s3] ss:$0 sm:$0xff] }
 0x1b2   : > { %v3570_v61 = vpop.f32.mrb[44].mxu0 }
 0x1b3   : > { %v5469_v48 = vadd.f32 %v3570_v61, %v834_v15  ;;  %v993_v63 = vpop.f32.mrb[45].mxu0 }
 0x1b4   : > { %v878_v10 = vpop.f32.mrb[48].mxu1  ;;  %v5471_v11 = vadd.f32 %v993_v63, %v829_v0 }
 0x1b5   : > { %v879_v38 = vadd.f32 %v878_v10, %v714_v3  ;;  %v880_v59 = vpop.f32.mrb[49].mxu1 }
 0x1b6   : > { %v3573_v12 = vpop.f32.mrb[46].mxu0 }
 0x1b7   : > { %v5473_v17 = vadd.f32 %v3573_v12, %v844_v26  ;;  %v1003_v57 = vpop.f32.mrb[47].mxu0 }
 0x1b8   : > { %v883_v13 = vpop.f32.mrb[50].mxu1  ;;  %v5475_v20 = vadd.f32 %v1003_v57, %v839_v22 }
 0x1b9   : > { %v884_v52 = vadd.f32 %v883_v13, %v719_v2  ;;  %v885_v16 = vpop.f32.mrb[51].mxu1 }
 0x1ba   : > { %v3576_v4 = vpop.f32.mrb[48].mxu0 }
 0x1bb   : > { %v5477_v23 = vadd.f32 %v3576_v4, %v854_v33  ;;  %v1013_v15 = vpop.f32.mrb[49].mxu0 }
 0x1bc   : > { %v888_v27 = vpop.f32.mrb[52].mxu1  ;;  %v5479_v1 = vadd.f32 %v1013_v15, %v849_v32 }
 0x1bd   : > { %v889_v0 = vadd.f32 %v888_v27, %v724_v7  ;;  %v890_v21 = vpop.f32.mrb[53].mxu1 }
 0x1be   : > { %v3579_v3 = vpop.f32.mrb[50].mxu0 }
 0x1bf   : > { %v5481_v28 = vadd.f32 %v3579_v3, %v864_v47  ;;  %v1023_v26 = vpop.f32.mrb[51].mxu0 }
 0x1c0   : > { %v893_v29 = vpop.f32.mrb[54].mxu1  ;;  %v5483_v31 = vadd.f32 %v1023_v26, %v859_v43 }
 0x1c1   : > { %v894_v22 = vadd.f32 %v893_v29, %v729_v9  ;;  %v895_v24 = vpop.f32.mrb[55].mxu1 }
 0x1c2   : > { %v3582_v2 = vpop.f32.mrb[52].mxu0 }
 0x1c3   : > { %v5485_v30 = vadd.f32 %v3582_v2, %v874_v54  ;;  %v1033_v35 = vpop.f32.mrb[53].mxu0 }
 0x1c4   : > { %v898_v44 = vpop.f32.mrb[56].mxu1  ;;  %v5487_v34 = vadd.f32 %v1033_v35, %v869_v19 }
 0x1c5   : > { %v899_v32 = vadd.f32 %v898_v44, %v734_v5  ;;  %v900_v33 = vpop.f32.mrb[57].mxu1 }
 0x1c6   : > { %v3585_v7 = vpop.f32.mrb[54].mxu0 }
 0x1c7   : > { %v5489_v39 = vadd.f32 %v3585_v7, %v884_v52  ;;  %v1043_v40 = vpop.f32.mrb[55].mxu0 }
 0x1c8   : > { %v903_v42 = vpop.f32.mrb[58].mxu1  ;;  %v5491_v36 = vadd.f32 %v1043_v40, %v879_v38 }
 0x1c9   : > { %v904_v43 = vadd.f32 %v903_v42, %v739_v8  ;;  %v905_v41 = vpop.f32.mrb[59].mxu1 }
 0x1ca   : > { %v3588_v9 = vpop.f32.mrb[56].mxu0 }
 0x1cb   : > { %v5493_v46 = vadd.f32 %v3588_v9, %v894_v22  ;;  %v1053_v49 = vpop.f32.mrb[57].mxu0 }
 0x1cc   : > { %v5495_v37 = vadd.f32 %v1053_v49, %v889_v0  ;;  %v1211_v47 = vpop.f32.mrb[60].mxu1 }
 0x1cd   : > { %v1213_v51 = vpop.f32.mrb[61].mxu1 }
 0x1ce   : > { %v3591_v62 = vpop.f32.mrb[58].mxu0 }
 0x1cf   : > { %v5497_v5 = vadd.f32 %v3591_v62, %v904_v43  ;;  %v1063_v45 = vpop.f32.mrb[59].mxu0 }
 0x1d0   : > { %v5499_v25 = vadd.f32 %v1063_v45, %v899_v32  ;;  %v1216_v19 = vpop.f32.mrb[62].mxu1 }
 0x1d1   : > { %v1218_v6 = vpop.f32.mrb[63].mxu1 }
 0x1d2   : > { %v3626_v50 = vpop.f32.mrb[60].mxu0 }
 0x1d3   : > { %v1382_v56 = vadd.f32 %v3626_v50, %v1216_v19  ;;  %v1376_v8 = vpop.f32.mrb[61].mxu0 }
 0x1d4   : > { %v1221_v54 = vpop.f32.mrb[64].mxu1  ;;  %v1377_v60 = vadd.f32 %v1376_v8, %v1211_v47 }
 0x1d5   : > { %v1476_v61 = vadd.f32 %v1382_v56, %v5459_v14  ;;  %v1223_v63 = vpop.f32.mrb[65].mxu1 }
 0x1d6   : > { %v1475_v10 = vadd.f32 %v1377_v60, %v5462_v53  ;;  %v3629_v38 = vpop.f32.mrb[62].mxu0 }
 0x1d7   : > { %v1503_v59 = vadd.f32 %v5504_v18, %v1476_v61  ;;  %v1386_v12 = vpop.f32.mrb[63].mxu0 }
 0x1d8   : > { %v1502_v57 = vadd.f32 %v5504_v18, %v1475_v10  ;;  %v1226_v13 = vpop.f32.mrb[66].mxu1  ;;  %v1387_v52 = vadd.f32 %v1386_v12, %v1221_v54 }
 0x1d9   : > { %v1523_v16 = vmax.f32 %v1503_v59, 0.0  ;;  %v1392_v4 = vadd.f32 %v3629_v38, %v1226_v13  ;;  %v1228_v15 = vpop.f32.mrb[67].mxu1 }
 0x1da   : > { %v1522_v27 = vmax.f32 %v1502_v57, 0.0  ;;  %v1477_v0 = vadd.f32 %v1387_v52, %v5467_v58  ;;  %v3632_v21 = vpop.f32.mrb[64].mxu0 }
 0x1db   : > { %1543 = vst [vmem:[#allocation2 + $0x9] sm:$0xff] %v1523_v16  ;;  %v1478_v14 = vadd.f32 %v1392_v4, %v5464_v55  ;;  %v1396_v3 = vpop.f32.mrb[65].mxu0 }
 0x1dc   : > { %1542 = vst [vmem:[#allocation2 + $0x1] sm:$0xff] %v1522_v27  ;;  %v1504_v53 = vadd.f32 %v5504_v18, %v1477_v0  ;;  %v1231_v26 = vpop.f32.mrb[68].mxu1 }
 0x1dd   : > { %v1505_v29 = vadd.f32 %v5504_v18, %v1478_v14  ;;  %v1397_v22 = vadd.f32 %v1396_v3, %v1231_v26  ;;  %v1233_v24 = vpop.f32.mrb[69].mxu1 }
 0x1de   : > { %v1524_v2 = vmax.f32 %v1504_v53, 0.0  ;;  %v3635_v35 = vpop.f32.mrb[66].mxu0 }
 0x1df   : > { %v1525_v44 = vmax.f32 %v1505_v29, 0.0  ;;  %v1479_v32 = vadd.f32 %v1397_v22, %v5471_v11  ;;  %v1406_v33 = vpop.f32.mrb[67].mxu0 }
 0x1e0   : > { %1544 = vst [vmem:[#allocation2 + $0x19] sm:$0xff] %v1524_v2  ;;  %v1236_v58 = vpop.f32.mrb[70].mxu1 }
 0x1e1   : > { %1545 = vst [vmem:[#allocation2 + $0x21] sm:$0xff] %v1525_v44  ;;  %v1506_v55 = vadd.f32 %v5504_v18, %v1479_v32  ;;  %v1402_v7 = vadd.f32 %v3632_v21, %v1236_v58  ;;  %v1238_v40 = vpop.f32.mrb[71].mxu1 }
 0x1e2   : > { %v3638_v42 = vpop.f32.mrb[68].mxu0 }
 0x1e3   : > { %v1526_v43 = vmax.f32 %v1506_v55, 0.0  ;;  %v1480_v41 = vadd.f32 %v1402_v7, %v5469_v48  ;;  %v1416_v9 = vpop.f32.mrb[69].mxu0 }
 0x1e4   : > { %v1241_v49 = vpop.f32.mrb[72].mxu1 }
 0x1e5   : > { %1546 = vst [vmem:[#allocation2 + $0x31] sm:$0xff] %v1526_v43  ;;  %v1507_v47 = vadd.f32 %v5504_v18, %v1480_v41  ;;  %v1407_v51 = vadd.f32 %v1406_v33, %v1241_v49  ;;  %v1243_v62 = vpop.f32.mrb[73].mxu1 }
 0x1e6   : > { %v3641_v11 = vpop.f32.mrb[70].mxu0 }
 0x1e7   : > { %v1527_v45 = vmax.f32 %v1507_v47, 0.0  ;;  %v1481_v19 = vadd.f32 %v1407_v51, %v5475_v20  ;;  %v1426_v6 = vpop.f32.mrb[71].mxu0 }
 0x1e8   : > { %v1246_v50 = vpop.f32.mrb[74].mxu1 }
 0x1e9   : > { %1547 = vst [vmem:[#allocation2 + $0x39] sm:$0xff] %v1527_v45  ;;  %v1508_v56 = vadd.f32 %v5504_v18, %v1481_v19  ;;  %v1412_v8 = vadd.f32 %v3635_v35, %v1246_v50  ;;  %v1248_v54 = vpop.f32.mrb[75].mxu1 }
 0x1ea   : > { %v3644_v60 = vpop.f32.mrb[72].mxu0 }
 0x1eb   : > { %v1528_v48 = vmax.f32 %v1508_v56, 0.0  ;;  %v1482_v61 = vadd.f32 %v1412_v8, %v5473_v17  ;;  %v1436_v63 = vpop.f32.mrb[73].mxu0 }
 0x1ec   : > { %v1251_v10 = vpop.f32.mrb[76].mxu1 }
 0x1ed   : > { %1548 = vst [vmem:[#allocation2 + $0x49] sm:$0xff] %v1528_v48  ;;  %v1509_v38 = vadd.f32 %v5504_v18, %v1482_v61  ;;  %v1417_v59 = vadd.f32 %v1416_v9, %v1251_v10  ;;  %v1253_v12 = vpop.f32.mrb[77].mxu1 }
 0x1ee   : > { %v3647_v57 = vpop.f32.mrb[74].mxu0 }
 0x1ef   : > { %v1529_v20 = vmax.f32 %v1509_v38, 0.0  ;;  %v1483_v13 = vadd.f32 %v1417_v59, %v5479_v1  ;;  %v1446_v52 = vpop.f32.mrb[75].mxu0 }
 0x1f0   : > { %v1256_v16 = vpop.f32.mrb[78].mxu1 }
 0x1f1   : > { %1549 = vst [vmem:[#allocation2 + $0x51] sm:$0xff] %v1529_v20  ;;  %v1510_v4 = vadd.f32 %v5504_v18, %v1483_v13  ;;  %v1422_v15 = vadd.f32 %v3638_v42, %v1256_v16  ;;  %v1258_v27 = vpop.f32.mrb[79].mxu1 }
 0x1f2   : > { %v3650_v0 = vpop.f32.mrb[76].mxu0 }
 0x1f3   : > { %v1530_v17 = vmax.f32 %v1510_v4, 0.0  ;;  %v1484_v21 = vadd.f32 %v1422_v15, %v5477_v23  ;;  %v1456_v14 = vpop.f32.mrb[77].mxu0 }
 0x1f4   : > { %v1261_v3 = vpop.f32.mrb[80].mxu1 }
 0x1f5   : > { %1550 = vst [vmem:[#allocation2 + $0x61] sm:$0xff] %v1530_v17  ;;  %v1511_v53 = vadd.f32 %v5504_v18, %v1484_v21  ;;  %v1427_v26 = vadd.f32 %v1426_v6, %v1261_v3  ;;  %v1263_v29 = vpop.f32.mrb[81].mxu1 }
 0x1f6   : > { %v5526_v22 = vpop.f32.mrb[78].mxu0 }
 0x1f7   : > { %v1531_v1 = vmax.f32 %v1511_v53, 0.0  ;;  %v1485_v24 = vadd.f32 %v1427_v26, %v5483_v31  ;;  %v1466_v2 = vpop.f32.mrb[79].mxu0 }
 0x1f8   : > { %v1266_v35 = vpop.f32.mrb[82].mxu1 }
 0x1f9   : > { %1551 = vst [vmem:[#allocation2 + $0x69] sm:$0xff] %v1531_v1  ;;  %v1512_v44 = vadd.f32 %v5504_v18, %v1485_v24  ;;  %v1432_v32 = vadd.f32 %v3641_v11, %v1266_v35  ;;  %v1268_v33 = vpop.f32.mrb[83].mxu1 }
 0x1fb   : > { %v1532_v23 = vmax.f32 %v1512_v44, 0.0  ;;  %v1486_v58 = vadd.f32 %v1432_v32, %v5481_v28 }
 0x1fc   : > { %v1271_v55 = vpop.f32.mrb[84].mxu1 }
 0x1fd   : > { %1552 = vst [vmem:[#allocation2 + $0x79] sm:$0xff] %v1532_v23  ;;  %v1513_v7 = vadd.f32 %v5504_v18, %v1486_v58  ;;  %v1437_v40 = vadd.f32 %v1436_v63, %v1271_v55  ;;  %v1273_v42 = vpop.f32.mrb[85].mxu1 }
 0x1ff   : > { %v1533_v43 = vmax.f32 %v1513_v7, 0.0  ;;  %v1487_v41 = vadd.f32 %v1437_v40, %v5487_v34 }
 0x200   : > { %v1276_v31 = vpop.f32.mrb[86].mxu1 }
 0x201   : > { %1553 = vst [vmem:[#allocation2 + $0x81] sm:$0xff] %v1533_v43  ;;  %v1514_v9 = vadd.f32 %v5504_v18, %v1487_v41  ;;  %v1442_v49 = vadd.f32 %v3644_v60, %v1276_v31  ;;  %v1278_v47 = vpop.f32.mrb[87].mxu1 }
 0x203   : > { %v1534_v51 = vmax.f32 %v1514_v9, 0.0  ;;  %v1488_v62 = vadd.f32 %v1442_v49, %v5485_v30 }
 0x204   : > { %v1281_v11 = vpop.f32.mrb[88].mxu1 }
 0x205   : > { %1554 = vst [vmem:[#allocation2 + $0x91] sm:$0xff] %v1534_v51  ;;  %v1515_v28 = vadd.f32 %v5504_v18, %v1488_v62  ;;  %v1447_v45 = vadd.f32 %v1446_v52, %v1281_v11  ;;  %v1283_v19 = vpop.f32.mrb[89].mxu1 }
 0x207   : > { %v1535_v6 = vmax.f32 %v1515_v28, 0.0  ;;  %v1489_v50 = vadd.f32 %v1447_v45, %v5491_v36 }
 0x208   : > { %v1286_v56 = vpop.f32.mrb[90].mxu1 }
 0x209   : > { %1555 = vst [vmem:[#allocation2 + $0x99] sm:$0xff] %v1535_v6  ;;  %v1516_v34 = vadd.f32 %v5504_v18, %v1489_v50  ;;  %v1452_v8 = vadd.f32 %v3647_v57, %v1286_v56  ;;  %v1288_v54 = vpop.f32.mrb[91].mxu1 }
 0x20b   : > { %v1536_v60 = vmax.f32 %v1516_v34, 0.0  ;;  %v1490_v48 = vadd.f32 %v1452_v8, %v5489_v39 }
 0x20c   : > { %v1291_v61 = vpop.f32.mrb[92].mxu1 }
 0x20d   : > { %1556 = vst [vmem:[#allocation2 + $0xa9] sm:$0xff] %v1536_v60  ;;  %v1517_v30 = vadd.f32 %v5504_v18, %v1490_v48  ;;  %v1457_v63 = vadd.f32 %v1456_v14, %v1291_v61  ;;  %v1293_v10 = vpop.f32.mrb[93].mxu1 }
 0x20f   : > { %v1537_v38 = vmax.f32 %v1517_v30, 0.0  ;;  %v1491_v59 = vadd.f32 %v1457_v63, %v5495_v37 }
 0x210   : > { %v1296_v12 = vpop.f32.mrb[94].mxu1 }
 0x211   : > { %1557 = vst [vmem:[#allocation2 + $0xb1] sm:$0xff] %v1537_v38  ;;  %v1518_v36 = vadd.f32 %v5504_v18, %v1491_v59  ;;  %v1462_v20 = vadd.f32 %v3650_v0, %v1296_v12  ;;  %v1298_v13 = vpop.f32.mrb[95].mxu1 }
 0x213   : > { %v1538_v57 = vmax.f32 %v1518_v36, 0.0  ;;  %v1492_v52 = vadd.f32 %v1462_v20, %v5493_v46 }
 0x214   : > { %v1301_v16 = vpop.f32.mrb[96].mxu1 }
 0x215   : > { %1558 = vst [vmem:[#allocation2 + $0xc1] sm:$0xff] %v1538_v57  ;;  %v1519_v39 = vadd.f32 %v5504_v18, %v1492_v52  ;;  %v1467_v4 = vadd.f32 %v1466_v2, %v1301_v16  ;;  %v1303_v15 = vpop.f32.mrb[97].mxu1 }
 0x217   : > { %v1539_v27 = vmax.f32 %v1519_v39, 0.0  ;;  %v1493_v17 = vadd.f32 %v1467_v4, %v5499_v25  ;;  %v4559_v25 = vmov (!%p2997_p10), 0.0  }
 0x218   : > { %v1306_v37 = vpop.f32.mrb[98].mxu1  ;;  %1586 = vst [vmem:[#allocation2] sm:$0xff] (!%p2997_p10), %v4559_v25  ;;  %1587 = vst [vmem:[#allocation2 + $0x8] sm:$0xff] (!%p2997_p10), %v4559_v25 }
 0x219   : > { %1559 = vst [vmem:[#allocation2 + $0xc9] sm:$0xff] %v1539_v27  ;;  %v1520_v21 = vadd.f32 %v5504_v18, %v1493_v17  ;;  %v1472_v0 = vadd.f32 %v5526_v22, %v1306_v37  ;;  %v1308_v14 = vpop.f32.mrb[99].mxu1  ;;  %1588 = vst [vmem:[#allocation2 + $0x10] sm:$0x3] (!%p2997_p10), %v4559_v25 }
 0x21b   : > { %v1540_v3 = vmax.f32 %v1520_v21, 0.0  ;;  %v1494_v46 = vadd.f32 %v1472_v0, %v5497_v5  ;;  %1585 = sbr.rel (%p2997_p10) target bundleno = 546 (0x222), region = 48 }
 0x21d   : > { %1560 = vst [vmem:[#allocation2 + $0xd9] sm:$0xff] %v1540_v3  ;;  %v1521_v53 = vadd.f32 %v5504_v18, %v1494_v46 }
 0x21f   : > { %v1541_v26 = vmax.f32 %v1521_v53, 0.0 }
 0x221   : > { %1561 = vst [vmem:[#allocation2 + $0xe1] sm:$0xff] %v1541_v26 }
 0x222 PF: > { %p2998_p12 = scmp.ne.s32.totalorder %s4536_s21, 1 }
 0x223   : > { %v4560_v29 = vmov (!%p2998_p12), 0.0  }
 0x224   : > { %1592 = sbr.rel (%p2998_p12) target bundleno = 555 (0x22b), region = 52  ;;  %1594 = vst [vmem:[#allocation2 + $0xd8] sm:$0xff] (!%p2998_p12), %v4560_v29  ;;  %1595 = vst [vmem:[#allocation2 + $0xe0] sm:$0xff] (!%p2998_p12), %v4560_v29 }
 0x225   : > { %1596 = vst [vmem:[#allocation2 + $0xe8] sm:$0x3] (!%p2998_p12), %v4560_v29 }
 0x22b PF: > { %v1702_v5 = vld [vmem:[#allocation3 + $0x200] sm:$0xff]  ;;  %v1703_v18 = vld [vmem:[#allocation3 + $0x208] sm:$0xff]  ;;  %v1704_v33 = vld [vmem:[#allocation3 + $0x210] sm:$0xff]  ;;  %s3023_s14 = sshll.u32 %s4536_s21, 4  ;;  %s3019_s16 = sshll.u32 %s4540_s22, 5 }
 0x22c   : > { %v1649_v22 = vld [vmem:[#allocation3 + $0x100] sm:$0xff]  ;;  %v4062_v1 = vpack.c.bf16 %v1703_v18, %v1702_v5  ;;  %v1650_v24 = vld [vmem:[#allocation3 + $0x108] sm:$0xff]  ;;  %v1705_v23 = vld [vmem:[#allocation3 + $0x218] sm:$0xff]  ;;  %s2791_s30 = sadd.s32 %s3023_s14, %s3019_s16  ;;  %s2794_s22 = sshll.u32 %s5550_s29, 4  ;;  %s5977_s22 = int_to_ptr.vmem [resolvable:$true] %s2794_s22 }
 0x22d   : > { %v1686_v2 = vld [vmem:[#allocation3 + $0x180] sm:$0xff]  ;;  %v1687_v35 = vld [vmem:[#allocation3 + $0x188] sm:$0xff]  ;;  %v4158_v44 = vpack.c.bf16 %v1650_v24, %v1649_v22  ;;  %v1651_v58 = vld [vmem:[#allocation3 + $0x110] sm:$0xff]  ;;  %v4066_v55 = vpack.c.bf16 %v1705_v23, %v1704_v33  ;;  %s3020_s21 = sshll.u32 %s2791_s30, 7  ;;  %s4454_s6 = scalar_lea.vmem %s5977_s22, 2048 }
 0x22e   : > { %v4064_v32 = vpack.c.bf16 %v1687_v35, %v1686_v2  ;;  %4063 = vmatprep.subr.bf16.mxu0 %v4062_v1  ;;  %v1652_v7 = vld [vmem:[#allocation3 + $0x118] sm:$0xff]  ;;  %v1688_v40 = vld [vmem:[#allocation3 + $0x190] sm:$0xff]  ;;  %v1706_v31 = vld [vmem:[#allocation3 + $0x220] sm:$0xff]  ;;  %s5975_s17 = scalar_lea.hbm %s6039_s5, %s3020_s21  ;;  %p4455_p0 = scmp.ne.s32.totalorder %s5977_s22, %s4454_s6 }
 0x22f   : > { %v1689_v42 = vld [vmem:[#allocation3 + $0x198] sm:$0xff]  ;;  %4159 = vmatprep.subr.bf16.mxu1 %v4158_v44  ;;  %v4162_v43 = vpack.c.bf16 %v1652_v7, %v1651_v58  ;;  %v1707_v9 = vld [vmem:[#allocation3 + $0x228] sm:$0xff]  ;;  %v1653_v49 = vld [vmem:[#allocation3 + $0x120] sm:$0xff]  ;;  %p6057_p2 = scmp.ne.s32.totalorder %s6047_s7, 0  ;;  %s4561_s9 = smov [#allocation6]  }
 0x230   : > { %4065 = vmatpush3.bf16.msra.mxu0 %v4064_v32  ;;  %v4068_v41 = vpack.c.bf16 %v1689_v42, %v1688_v40  ;;  %4161 = vmatpush3.bf16.msra.mxu1 %v4158_v44  ;;  %v4070_v47 = vpack.c.bf16 %v1707_v9, %v1706_v31  ;;  %v1654_v51 = vld [vmem:[#allocation3 + $0x128] sm:$0xff]  ;;  %v1690_v62 = vld [vmem:[#allocation3 + $0x1a0] sm:$0xff]  ;;  %v1708_v45 = vld [vmem:[#allocation3 + $0x230] sm:$0xff]  ;;  %s4458_s2 = sshll.u32 %s4561_s9, 4  ;;  %s4459_s2 = int_to_ptr.vmem [resolvable:$false] %s4458_s2 }
 0x231   : > { %4067 = vmatprep.subr.bf16.mxu0 %v4066_v55  ;;  %v1691_v11 = vld [vmem:[#allocation3 + $0x1a8] sm:$0xff]  ;;  %4163 = vmatprep.subr.bf16.mxu1 %v4162_v43  ;;  %v4166_v28 = vpack.c.bf16 %v1654_v51, %v1653_v49  ;;  %v1709_v19 = vld [vmem:[#allocation3 + $0x238] sm:$0xff]  ;;  %v1655_v6 = vld [vmem:[#allocation3 + $0x130] sm:$0xff]  ;;  %p4456_p5 = pnand %p4455_p0, %p6057_p2  ;;  %s4460_s11 = scalar_lea.vmem %s4459_s2, 4096 }
 0x232   : > { %v1656_v50 = vld [vmem:[#allocation3 + $0x138] sm:$0xff]  ;;  %v4072_v56 = vpack.c.bf16 %v1691_v11, %v1690_v62  ;;  %v4074_v34 = vpack.c.bf16 %v1709_v19, %v1708_v45  ;;  %v1692_v8 = vld [vmem:[#allocation3 + $0x1b0] sm:$0xff]  ;;  %v1710_v48 = vld [vmem:[#allocation3 + $0x240] sm:$0xff]  ;;  %p4461_p7 = scmp.lt.s32.totalorder %s5977_s22, %s4459_s2  ;;  %p4462_p9 = scmp.lt.s32.totalorder %s4460_s11, %s4454_s6 }
 0x233   : > { %v1693_v54 = vld [vmem:[#allocation3 + $0x1b8] sm:$0xff]  ;;  %v4170_v60 = vpack.c.bf16 %v1656_v50, %v1655_v6  ;;  %v1711_v61 = vld [vmem:[#allocation3 + $0x248] sm:$0xff]  ;;  %v1657_v30 = vld [vmem:[#allocation3 + $0x140] sm:$0xff]  ;;  %p4457_p6 = pneg %p4456_p5 }
 0x234   : > { %4069 = vmatpush3.bf16.msra.mxu0 %v4068_v41  ;;  %4165 = vmatpush3.bf16.msra.mxu1 %v4162_v43  ;;  %v1658_v63 = vld [vmem:[#allocation3 + $0x148] sm:$0xff]  ;;  %v4076_v10 = vpack.c.bf16 %v1693_v54, %v1692_v8  ;;  %v4078_v38 = vpack.c.bf16 %v1711_v61, %v1710_v48  ;;  %v1694_v59 = vld [vmem:[#allocation3 + $0x1c0] sm:$0xff]  ;;  %v1712_v20 = vld [vmem:[#allocation3 + $0x250] sm:$0xff]  ;;  %p4463_p11 = por %p4462_p9, %p4461_p7 }
 0x235   : > { %4071 = vmatprep.subr.bf16.mxu0 %v4070_v47  ;;  %4167 = vmatprep.subr.bf16.mxu1 %v4166_v28  ;;  %v1695_v12 = vld [vmem:[#allocation3 + $0x1c8] sm:$0xff]  ;;  %v4174_v36 = vpack.c.bf16 %v1658_v63, %v1657_v30  ;;  %v1713_v13 = vld [vmem:[#allocation3 + $0x258] sm:$0xff]  ;;  %v1659_v57 = vld [vmem:[#allocation3 + $0x150] sm:$0xff] }
 0x236   : > { %v1660_v52 = vld [vmem:[#allocation3 + $0x158] sm:$0xff]  ;;  %v4080_v16 = vpack.c.bf16 %v1695_v12, %v1694_v59  ;;  %v5554_v39 = vld [vmem:[#allocation2 + $0x19] sm:$0xff]  ;;  %v5556_v4 = vld [vmem:[#allocation2 + $0x30] sm:$0xff]  ;;  %v4082_v15 = vpack.c.bf16 %v1713_v13, %v1712_v20  ;;  %p4464_p13 = pnand %p4463_p11, %p4457_p6 }
 0x237   : > { %v1696_v27 = vld [vmem:[#allocation3 + $0x1d0] sm:$0xff]  ;;  %v1697_v17 = vld [vmem:[#allocation3 + $0x1d8] sm:$0xff]  ;;  %v4178_v37 = vpack.c.bf16 %v1660_v52, %v1659_v57  ;;  %v1714_v21 = vld [vmem:[#allocation3 + $0x260] sm:$0xff]  ;;  %1798 = vmatprep.mubr.f32.mxu0 %v5554_v39  ;;  %3742 = vmatprep.mubr.f32.mxu1 %v5556_v4 }
 0x238   : > { %4073 = vmatpush3.bf16.msra.mxu0 %v4072_v56  ;;  %4169 = vmatpush3.bf16.msra.mxu1 %v4166_v28  ;;  %v1715_v0 = vld [vmem:[#allocation3 + $0x268] sm:$0xff]  ;;  %v1661_v14 = vld [vmem:[#allocation3 + $0x160] sm:$0xff]  ;;  %v4084_v46 = vpack.c.bf16 %v1697_v17, %v1696_v27  ;;  %v1716_v5 = vld [vmem:[#allocation3 + $0x270] sm:$0xff] }
 0x239   : > { %4075 = vmatprep.subr.bf16.mxu0 %v4074_v34  ;;  %4171 = vmatprep.subr.bf16.mxu1 %v4170_v60  ;;  %v1662_v3 = vld [vmem:[#allocation3 + $0x168] sm:$0xff]  ;;  %v4086_v53 = vpack.c.bf16 %v1715_v0, %v1714_v21  ;;  %v1698_v26 = vld [vmem:[#allocation3 + $0x1e0] sm:$0xff]  ;;  %v1717_v18 = vld [vmem:[#allocation3 + $0x278] sm:$0xff] }
 0x23a   : > { %v1699_v25 = vld [vmem:[#allocation3 + $0x1e8] sm:$0xff]  ;;  %v4182_v29 = vpack.c.bf16 %v1662_v3, %v1661_v14  ;;  %v1663_v22 = vld [vmem:[#allocation3 + $0x170] sm:$0xff]  ;;  %v1664_v1 = vld [vmem:[#allocation3 + $0x178] sm:$0xff]  ;;  %v4090_v2 = vpack.c.bf16 %v1717_v18, %v1716_v5 }
 0x23b   : > { %v4088_v24 = vpack.c.bf16 %v1699_v25, %v1698_v26  ;;  %v1700_v35 = vld [vmem:[#allocation3 + $0x1f0] sm:$0xff]  ;;  %v1701_v44 = vld [vmem:[#allocation3 + $0x1f8] sm:$0xff]  ;;  %v4186_v32 = vpack.c.bf16 %v1664_v1, %v1663_v22  ;;  %v1718_v33 = vld [vmem:[#allocation3 + $0x280] sm:$0xff] }
 0x23c   : > { %4077 = vmatpush3.bf16.msra.mxu0 %v4076_v10  ;;  %4173 = vmatpush3.bf16.msra.mxu1 %v4170_v60  ;;  %v1719_v23 = vld [vmem:[#allocation3 + $0x288] sm:$0xff]  ;;  %v2351_v58 = vld [vmem:[#allocation3 + $0x380] sm:$0xff]  ;;  %v4092_v7 = vpack.c.bf16 %v1701_v44, %v1700_v35  ;;  %v2353_v31 = vld [vmem:[#allocation3 + $0x390] sm:$0xff] }
 0x23d   : > { %4079 = vmatprep.subr.bf16.mxu0 %v4078_v38  ;;  %4175 = vmatprep.subr.bf16.mxu1 %v4174_v36  ;;  %v2352_v55 = vld [vmem:[#allocation3 + $0x388] sm:$0xff]  ;;  %v4094_v40 = vpack.c.bf16 %v1719_v23, %v1718_v33  ;;  %v2335_v43 = vld [vmem:[#allocation3 + $0x300] sm:$0xff]  ;;  %v2354_v9 = vld [vmem:[#allocation3 + $0x398] sm:$0xff] }
 0x23e   : > { %v4190_v42 = vpack.c.bf16 %v2352_v55, %v2351_v58  ;;  %v2336_v41 = vld [vmem:[#allocation3 + $0x308] sm:$0xff]  ;;  %v1665_v49 = vld [vmem:[#allocation2 + $0x1] sm:$0xff]  ;;  %v4194_v45 = vpack.c.bf16 %v2354_v9, %v2353_v31  ;;  %v2355_v34 = vld [vmem:[#allocation3 + $0x3a0] sm:$0xff] }
 0x23f   : > { %v1720_v47 = vld [vmem:[#allocation3 + $0x290] sm:$0xff]  ;;  %v1721_v51 = vld [vmem:[#allocation3 + $0x298] sm:$0xff]  ;;  %v5560_v62 = vld [vmem:[#allocation2 + $0x38] sm:$0xff]  ;;  %v4192_v11 = vpack.c.bf16 %v2336_v41, %v2335_v43 }
 0x240   : > { %4081 = vmatpush3.bf16.msra.mxu0 %v4080_v16  ;;  %4177 = vmatpush3.bf16.msra.mxu1 %v4174_v36  ;;  %v5562_v28 = vld [vmem:[#allocation2 + $0x21] sm:$0xff]  ;;  %v4098_v56 = vpack.c.bf16 %v1721_v51, %v1720_v47  ;;  %v2356_v8 = vld [vmem:[#allocation3 + $0x3a8] sm:$0xff]  ;;  %v1666_v54 = vld [vmem:[#allocation2 + $0x9] sm:$0xff] }
 0x241   : > { %4083 = vmatprep.subr.bf16.mxu0 %v4082_v15  ;;  %4179 = vmatprep.subr.bf16.mxu1 %v4178_v37  ;;  %v2337_v19 = vld [vmem:[#allocation3 + $0x310] sm:$0xff]  ;;  %v2338_v6 = vld [vmem:[#allocation3 + $0x318] sm:$0xff]  ;;  %v1722_v60 = vld [vmem:[#allocation3 + $0x2a0] sm:$0xff]  ;;  %v4198_v38 = vpack.c.bf16 %v2356_v8, %v2355_v34 }
 0x242   : > { %v5564_v50 = vld [vmem:[#allocation2 + $0x48] sm:$0xff]  ;;  %v1723_v48 = vld [vmem:[#allocation3 + $0x2a8] sm:$0xff]  ;;  %v5568_v61 = vld [vmem:[#allocation2 + $0x50] sm:$0xff]  ;;  %v4196_v30 = vpack.c.bf16 %v2338_v6, %v2337_v19 }
 0x243   : > { %v5570_v63 = vld [vmem:[#allocation2 + $0x31] sm:$0xff]  ;;  %v5573_v10 = vld [vmem:[#allocation2 + $0x60] sm:$0xff]  ;;  %v2358_v20 = vld [vmem:[#allocation3 + $0x3b8] sm:$0xff]  ;;  %v4102_v13 = vpack.c.bf16 %v1723_v48, %v1722_v60 }
 0x244   : > { %4085 = vmatpush3.bf16.msra.mxu0 %v4084_v46  ;;  %4181 = vmatpush3.bf16.msra.mxu1 %v4178_v37  ;;  %v2339_v59 = vld [vmem:[#allocation3 + $0x320] sm:$0xff]  ;;  %v2340_v12 = vld [vmem:[#allocation3 + $0x328] sm:$0xff]  ;;  %v2357_v36 = vld [vmem:[#allocation3 + $0x3b0] sm:$0xff] }
 0x245   : > { %4087 = vmatprep.subr.bf16.mxu0 %v4086_v53  ;;  %4183 = vmatprep.subr.bf16.mxu1 %v4182_v29  ;;  %v1724_v57 = vld [vmem:[#allocation3 + $0x2b0] sm:$0xff]  ;;  %v1725_v52 = vld [vmem:[#allocation3 + $0x2b8] sm:$0xff]  ;;  %v4200_v15 = vpack.c.bf16 %v2340_v12, %v2339_v59  ;;  %v5582_v17 = vld [vmem:[#allocation2 + $0x78] sm:$0xff]  ;;  %v4202_v37 = vpack.c.bf16 %v2358_v20, %v2357_v36 }
 0x246   : > { %v5578_v16 = vld [vmem:[#allocation2 + $0x68] sm:$0xff]  ;;  %v5580_v27 = vld [vmem:[#allocation2 + $0x39] sm:$0xff]  ;;  %v2359_v14 = vld [vmem:[#allocation3 + $0x3c0] sm:$0xff]  ;;  %v4106_v46 = vpack.c.bf16 %v1725_v52, %v1724_v57 }
 0x247   : > { %v2341_v21 = vld [vmem:[#allocation3 + $0x330] sm:$0xff]  ;;  %v2342_v0 = vld [vmem:[#allocation3 + $0x338] sm:$0xff]  ;;  %v2360_v3 = vld [vmem:[#allocation3 + $0x3c8] sm:$0xff] }
 0x248   : > { %4089 = vmatpush3.bf16.msra.mxu0 %v4088_v24  ;;  %4185 = vmatpush3.bf16.msra.mxu1 %v4182_v29  ;;  %v1726_v53 = vld [vmem:[#allocation3 + $0x2c0] sm:$0xff]  ;;  %v1727_v26 = vld [vmem:[#allocation3 + $0x2c8] sm:$0xff]  ;;  %v5588_v25 = vld [vmem:[#allocation2 + $0x80] sm:$0xff]  ;;  %v4204_v29 = vpack.c.bf16 %v2342_v0, %v2341_v21  ;;  %v4206_v18 = vpack.c.bf16 %v2360_v3, %v2359_v14 }
 0x249   : > { %4091 = vmatprep.subr.bf16.mxu0 %v4090_v2  ;;  %4187 = vmatprep.subr.bf16.mxu1 %v4186_v32  ;;  %v5590_v5 = vld [vmem:[#allocation2 + $0x49] sm:$0xff]  ;;  %v2344_v1 = vld [vmem:[#allocation3 + $0x348] sm:$0xff]  ;;  %v2361_v24 = vld [vmem:[#allocation3 + $0x3d0] sm:$0xff]  ;;  %v4110_v35 = vpack.c.bf16 %v1727_v26, %v1726_v53 }
 0x24a   : > { %v2343_v22 = vld [vmem:[#allocation3 + $0x340] sm:$0xff]  ;;  %v2362_v2 = vld [vmem:[#allocation3 + $0x3d8] sm:$0xff]  ;;  %v1728_v44 = vld [vmem:[#allocation3 + $0x2d0] sm:$0xff] }
 0x24b   : > { %v5598_v33 = vld [vmem:[#allocation2 + $0x98] sm:$0xff]  ;;  %v4208_v23 = vpack.c.bf16 %v2344_v1, %v2343_v22  ;;  %v5602_v55 = vld [vmem:[#allocation2 + $0xa8] sm:$0xff]  ;;  %v2363_v43 = vld [vmem:[#allocation3 + $0x3e0] sm:$0xff] }
 0x24c   : > { %4093 = vmatpush3.bf16.msra.mxu0 %v4092_v7  ;;  %4189 = vmatpush3.bf16.msra.mxu1 %v4186_v32  ;;  %v1729_v32 = vld [vmem:[#allocation3 + $0x2d8] sm:$0xff]  ;;  %v5600_v58 = vld [vmem:[#allocation2 + $0x51] sm:$0xff]  ;;  %v4210_v7 = vpack.c.bf16 %v2362_v2, %v2361_v24  ;;  %v2349_v36 = vld [vmem:[#allocation3 + $0x370] sm:$0xff] }
 0x24d   : > { %4095 = vmatprep.subr.bf16.mxu0 %v4094_v40  ;;  %4191 = vmatprep.subr.bf16.mxu1 %v4190_v42  ;;  %v2346_v42 = vld [vmem:[#allocation3 + $0x358] sm:$0xff]  ;;  %v2364_v41 = vld [vmem:[#allocation3 + $0x3e8] sm:$0xff]  ;;  %v4114_v31 = vpack.c.bf16 %v1729_v32, %v1728_v44  ;;  %v1730_v9 = vld [vmem:[#allocation3 + $0x2e0] sm:$0xff] }
 0x24e   : > { %v5608_v47 = vld [vmem:[#allocation2 + $0xb0] sm:$0xff]  ;;  %v2348_v6 = vld [vmem:[#allocation3 + $0x368] sm:$0xff]  ;;  %v2366_v34 = vld [vmem:[#allocation3 + $0x3f8] sm:$0xff] }
 0x24f   : > { %1799 = vmatmul.mubr.f32.vlgmr.msra.gmra.mrb[80].mxu0 %v1665_v49  ;;  %3743 = vmatmul.mubr.f32.vlgmr.msra.gmra.mrb[100].mxu1 %v5560_v62  ;;  %v1731_v49 = vld [vmem:[#allocation3 + $0x2e8] sm:$0xff]  ;;  %v2347_v19 = vld [vmem:[#allocation3 + $0x360] sm:$0xff]  ;;  %v1733_v60 = vld [vmem:[#allocation3 + $0x2f8] sm:$0xff] }
 0x250   : > { %4097 = vmatpush3.bf16.msra.mxu0 %v4094_v40  ;;  %4193 = vmatpush3.bf16.msra.mxu1 %v4192_v11  ;;  %v2345_v40 = vld [vmem:[#allocation3 + $0x350] sm:$0xff]  ;;  %v4118_v8 = vpack.c.bf16 %v1731_v49, %v1730_v9  ;;  %v5618_v48 = vld [vmem:[#allocation2 + $0xc8] sm:$0xff]  ;;  %v1615_v59 = vld [vmem:[#allocation2 + $0xd8] sm:$0xff] }
 0x251   : > { %1803 = vmatprep.mubr.f32.mxu0 %v5562_v28  ;;  %3745 = vmatprep.mubr.f32.mxu1 %v5564_v50  ;;  %v4212_v51 = vpack.c.bf16 %v2346_v42, %v2345_v40  ;;  %v5610_v11 = vld [vmem:[#allocation2 + $0x61] sm:$0xff]  ;;  %v2367_v57 = vld [vmem:[#allocation3 + $0x400] sm:$0xff]  ;;  %v2368_v52 = vld [vmem:[#allocation3 + $0x408] sm:$0xff] }
 0x252   : > { %4195 = vmatprep.subr.bf16.mxu1 %v4194_v45  ;;  %4099 = vmatprep.subr.bf16.mxu0 %v4098_v56  ;;  %v4214_v45 = vpack.c.bf16 %v2364_v41, %v2363_v43  ;;  %v2350_v20 = vld [vmem:[#allocation3 + $0x378] sm:$0xff]  ;;  %v1616_v21 = vld [vmem:[#allocation2 + $0xe0] sm:$0xff]  ;;  %v2371_v2 = vld [vmem:[#allocation3 + $0x420] sm:$0xff] }
 0x253   : > { %1804 = vmatmul.mubr.f32.gmra.mrb[82].mxu0 %v1666_v54  ;;  %3746 = vmatmul.mubr.f32.gmra.mrb[102].mxu1 %v5568_v61  ;;  %v1732_v54 = vld [vmem:[#allocation3 + $0x2f0] sm:$0xff]  ;;  %v4220_v0 = vpack.c.bf16 %v2350_v20, %v2349_v36  ;;  %v2315_v44 = vld [vmem:[#allocation2 + $0xa] sm:$0xff]  ;;  %v2376_v49 = vld [vmem:[#allocation3 + $0x448] sm:$0xff] }
 0x254   : > { %1808 = vmatprep.mubr.f32.mxu0 %v5570_v63  ;;  %4197 = vmatpush3.bf16.msra.mxu1 %v4196_v30  ;;  %v4216_v30 = vpack.c.bf16 %v2348_v6, %v2347_v19  ;;  %v5625_v14 = vld [vmem:[#allocation2 + $0x79] sm:$0xff]  ;;  %v5629_v22 = vld [vmem:[#allocation2 + $0x81] sm:$0xff]  ;;  %v5633_v32 = vld [vmem:[#allocation2 + $0x91] sm:$0xff] }
 0x255   : > { %3748 = vmatprep.mubr.f32.mxu1 %v5573_v10  ;;  %4199 = vmatprep.subr.bf16.mxu1 %v4198_v38  ;;  %v5620_v38 = vld [vmem:[#allocation2 + $0x69] sm:$0xff]  ;;  %v2316_v3 = vld [vmem:[#allocation2 + $0x1a] sm:$0xff] }
 0x256   : > { %4101 = vmatpush3.bf16.msra.mxu0 %v4098_v56  ;;  %v2365_v56 = vld [vmem:[#allocation3 + $0x3f0] sm:$0xff]  ;;  %v2374_v42 = vld [vmem:[#allocation3 + $0x438] sm:$0xff]  ;;  %v2375_v9 = vld [vmem:[#allocation3 + $0x440] sm:$0xff] }
 0x257   : > { %1809 = vmatmul.mubr.f32.gmra.mrb[84].mxu0 %v5554_v39  ;;  %4103 = vmatprep.subr.bf16.mxu0 %v4102_v13  ;;  %v5592_v39 = vld [vmem:[#allocation2 + $0x90] sm:$0xff]  ;;  %v4218_v12 = vpack.c.bf16 %v2366_v34, %v2365_v56  ;;  %v2369_v26 = vld [vmem:[#allocation3 + $0x410] sm:$0xff]  ;;  %v4238_v19 = vpack.c.bf16 %v2376_v49, %v2375_v9  ;;  %v2378_v56 = vld [vmem:[#allocation3 + $0x458] sm:$0xff] }
 0x258   : > { %3749 = vmatmul.mubr.f32.gmra.mrb[104].mxu1 %v5578_v16  ;;  %1813 = vmatprep.mubr.f32.mxu0 %v5580_v27  ;;  %v2317_v1 = vld [vmem:[#allocation2 + $0x22] sm:$0xff]  ;;  %v5640_v43 = vld [vmem:[#allocation2 + $0x99] sm:$0xff]  ;;  %v5654_v34 = vld [vmem:[#allocation2 + $0xb1] sm:$0xff] }
 0x259   : > { %4201 = vmatpush3.bf16.msra.mxu1 %v4200_v15  ;;  %3751 = vmatprep.mubr.f32.mxu1 %v5582_v17  ;;  %v1633_v15 = vld [vmem:[#allocation3 + $0x80] sm:$0xff]  ;;  %v2373_v40 = vld [vmem:[#allocation3 + $0x430] sm:$0xff]  ;;  %v1624_v9 = vld [vmem:[#allocation3 + $0x38] sm:$0xff] }
 0x25a   : > { %4203 = vmatprep.subr.bf16.mxu1 %v4202_v37  ;;  %4105 = vmatpush3.bf16.msra.mxu0 %v4102_v13  ;;  %v4122_v13 = vpack.c.bf16 %v1733_v60, %v1732_v54  ;;  %v1634_v37 = vld [vmem:[#allocation3 + $0x88] sm:$0xff]  ;;  %v2377_v6 = vld [vmem:[#allocation3 + $0x450] sm:$0xff]  ;;  %v2379_v60 = vld [vmem:[#allocation3 + $0x460] sm:$0xff] }
 0x25b   : > { %1814 = vmatmul.mubr.f32.gmra.mrb[86].mxu0 %v5562_v28  ;;  %4107 = vmatprep.subr.bf16.mxu0 %v4106_v46  ;;  %v5612_v28 = vld [vmem:[#allocation2 + $0xc0] sm:$0xff]  ;;  %v4126_v53 = vpack.c.bf16 %v1634_v37, %v1633_v15  ;;  %v4242_v54 = vpack.c.bf16 %v2378_v56, %v2377_v6  ;;  %v1617_v37 = vld [vmem:[#allocation3] sm:$0xff] }
 0x25c   : > { %3752 = vmatmul.mubr.f32.gmra.mrb[106].mxu1 %v5588_v25  ;;  %1818 = vmatprep.mubr.f32.mxu0 %v5590_v5  ;;  %v5642_v41 = vld [vmem:[#allocation2 + $0x3a] sm:$0xff]  ;;  %v1641_v6 = vld [vmem:[#allocation3 + $0xc0] sm:$0xff] }
 0x25d   : > { %4205 = vmatpush3.bf16.msra.mxu1 %v4204_v29  ;;  %3754 = vmatprep.mubr.f32.mxu1 %v5592_v39  ;;  %v2370_v29 = vld [vmem:[#allocation3 + $0x418] sm:$0xff]  ;;  %v2381_v20 = vld [vmem:[#allocation3 + $0x470] sm:$0xff] }
 0x25e   : > { %4207 = vmatprep.subr.bf16.mxu1 %v4206_v18  ;;  %4109 = vmatpush3.bf16.msra.mxu0 %v4106_v46  ;;  %v4222_v46 = vpack.c.bf16 %v2368_v52, %v2367_v57  ;;  %v2314_v18 = vld [vmem:[#allocation2 + $0x2] sm:$0xff]  ;;  %v4226_v24 = vpack.c.bf16 %v2370_v29, %v2369_v26  ;;  %v5672_v52 = vld [vmem:[#allocation2 + $0x6a] sm:$0xff]  ;;  %v5696_v49 = vld [vmem:[#allocation2 + $0x9a] sm:$0xff] }
 0x25f   : > { %1819 = vmatmul.mubr.f32.gmra.mrb[88].mxu0 %v5570_v63  ;;  %4111 = vmatprep.subr.bf16.mxu0 %v4110_v35  ;;  %v5670_v57 = vld [vmem:[#allocation2 + $0xc9] sm:$0xff]  ;;  %v1619_v26 = vld [vmem:[#allocation3 + $0x10] sm:$0xff] }
 0x260   : > { %3755 = vmatmul.mubr.f32.gmra.mrb[108].mxu1 %v5598_v33  ;;  %1823 = vmatprep.mubr.f32.mxu0 %v5600_v58  ;;  %v1620_v29 = vld [vmem:[#allocation3 + $0x18] sm:$0xff] }
 0x261   : > { %4209 = vmatpush3.bf16.msra.mxu1 %v4208_v23  ;;  %3757 = vmatprep.mubr.f32.mxu1 %v5602_v55  ;;  %v5635_v23 = vld [vmem:[#allocation2 + $0x32] sm:$0xff] }
 0x262   : > { %4211 = vmatprep.subr.bf16.mxu1 %v4210_v7  ;;  %4113 = vmatpush3.bf16.msra.mxu0 %v4110_v35  ;;  %v2372_v35 = vld [vmem:[#allocation3 + $0x428] sm:$0xff] }
 0x263   : > { %1824 = vmatmul.mubr.f32.gmra.mrb[90].mxu0 %v5580_v27  ;;  %4115 = vmatprep.subr.bf16.mxu0 %v4114_v31  ;;  %v4230_v7 = vpack.c.bf16 %v2372_v35, %v2371_v2  ;;  %v1638_v2 = vld [vmem:[#allocation3 + $0xa8] sm:$0xff]  ;;  %v4132_v35 = vpack.c.bf16 %v1620_v29, %v1619_v26  ;;  %v1647_v29 = vld [vmem:[#allocation3 + $0xf0] sm:$0xff] }
 0x264   : > { %3758 = vmatmul.mubr.f32.gmra.mrb[110].mxu1 %v5608_v47  ;;  %1828 = vmatprep.mubr.f32.mxu0 %v5610_v11 }
 0x265   : > { %4213 = vmatpush3.bf16.msra.mxu1 %v4212_v51  ;;  %3760 = vmatprep.mubr.f32.mxu1 %v5612_v28  ;;  %v5647_v51 = vld [vmem:[#allocation2 + $0xa9] sm:$0xff] }
 0x266   : > { %4215 = vmatprep.subr.bf16.mxu1 %v4214_v45  ;;  %4117 = vmatpush3.bf16.msra.mxu0 %v4114_v31  ;;  %v4234_v31 = vpack.c.bf16 %v2374_v42, %v2373_v40  ;;  %v5649_v45 = vld [vmem:[#allocation2 + $0x4a] sm:$0xff]  ;;  %v1639_v42 = vld [vmem:[#allocation3 + $0xb0] sm:$0xff] }
 0x267   : > { %1829 = vmatmul.mubr.f32.gmra.mrb[92].mxu0 %v5590_v5  ;;  %4119 = vmatprep.subr.bf16.mxu0 %v4118_v8 }
 0x268   : > { %3761 = vmatmul.mubr.f32.gmra.mrb[112].mxu1 %v5618_v48  ;;  %1833 = vmatprep.mubr.f32.mxu0 %v5620_v38 }
 0x269   : > { %4217 = vmatpush3.bf16.msra.mxu1 %v4216_v30  ;;  %3763 = vmatprep.mubr.f32.mxu1 %v1615_v59  ;;  %v2380_v30 = vld [vmem:[#allocation3 + $0x468] sm:$0xff]  ;;  %v5662_v59 = vld [vmem:[#allocation2 + $0xc1] sm:$0xff] }
 0x26a   : > { %4219 = vmatprep.subr.bf16.mxu1 %v4218_v12  ;;  %4121 = vmatpush3.bf16.msra.mxu0 %v4118_v8  ;;  %v5656_v8 = vld [vmem:[#allocation2 + $0x52] sm:$0xff]  ;;  %v5664_v12 = vld [vmem:[#allocation2 + $0x62] sm:$0xff]  ;;  %v4246_v36 = vpack.c.bf16 %v2380_v30, %v2379_v60  ;;  %v5702_v60 = vld [vmem:[#allocation2 + $0xaa] sm:$0xff] }
 0x26b   : > { %1834 = vmatmul.mubr.f32.gmra.mrb[94].mxu0 %v5600_v58  ;;  %4123 = vmatprep.subr.bf16.mxu0 %v4122_v13 }
 0x26c   : > { %3764 = vmatmul.mubr.f32.gmra.mrb[114].mxu1 %v1616_v21  ;;  %1838 = vmatprep.mubr.f32.mxu0 %v5625_v14  ;;  %v1618_v21 = vld [vmem:[#allocation3 + $0x8] sm:$0xff] }
 0x26d   : > { %4221 = vmatpush3.bf16.msra.mxu1 %v4220_v0  ;;  %2447 = vmatprep.mubr.f32.mxu1 %v2316_v3  ;;  %v5678_v0 = vld [vmem:[#allocation2 + $0x7a] sm:$0xff] }
 0x26e   : > { %4125 = vmatpush3.bf16.msra.mxu0 %v4122_v13  ;;  %4223 = vmatprep.subr.bf16.mxu1 %v4222_v46  ;;  %v2382_v13 = vld [vmem:[#allocation3 + $0x478] sm:$0xff] }
 0x26f   : > { %1839 = vmatmul.mubr.f32.gmra.mrb[96].mxu0 %v5610_v11  ;;  %4127 = vmatprep.subr.bf16.mxu0 %v4126_v53  ;;  %v4250_v15 = vpack.c.bf16 %v2382_v13, %v2381_v20  ;;  %v4128_v53 = vpack.c.bf16 %v1618_v21, %v1617_v37  ;;  %v1628_v13 = vld [vmem:[#allocation3 + $0x58] sm:$0xff]  ;;  %v1645_v21 = vld [vmem:[#allocation3 + $0xe0] sm:$0xff] }
 0x270   : > { %2448 = vmatmul.mubr.f32.vlgmr.msra.gmra.mrb[116].mxu1 %v2314_v18  ;;  %1843 = vmatprep.mubr.f32.mxu0 %v5629_v22  ;;  %v5684_v18 = vld [vmem:[#allocation2 + $0x82] sm:$0xff] }
 0x271   : > { %2452 = vmatprep.mubr.f32.mxu1 %v2317_v1  ;;  %4225 = vmatpush3.bf16.msra.mxu1 %v4222_v46  ;;  %v1636_v46 = vld [vmem:[#allocation3 + $0x98] sm:$0xff] }
 0x272   : > { %4227 = vmatprep.subr.bf16.mxu1 %v4226_v24 }
 0x273   : > { %1844 = vmatmul.mubr.f32.gmra.mrb[98].mxu0 %v5620_v38 }
 0x274   : > { %2453 = vmatmul.mubr.f32.gmra.mrb[118].mxu1 %v2315_v44  ;;  %1848 = vmatprep.mubr.f32.mxu0 %v5633_v32  ;;  %v1622_v44 = vld [vmem:[#allocation3 + $0x28] sm:$0xff] }
 0x275   : > { %2457 = vmatprep.mubr.f32.mxu1 %v5635_v23  ;;  %4229 = vmatpush3.bf16.msra.mxu1 %v4226_v24  ;;  %v1637_v24 = vld [vmem:[#allocation3 + $0xa0] sm:$0xff] }
 0x276   : > { %4231 = vmatprep.subr.bf16.mxu1 %v4230_v7  ;;  %v4134_v40 = vpack.c.bf16 %v1638_v2, %v1637_v24  ;;  %v1631_v24 = vld [vmem:[#allocation3 + $0x70] sm:$0xff] }
 0x277   : > { %1849 = vmatmul.mubr.f32.gmra.mrb[100].mxu0 %v5625_v14  ;;  %v1683_v2 = vld [vmem:[#allocation2 + $0xd9] sm:$0xff] }
 0x278   : > { %2458 = vmatmul.mubr.f32.gmra.mrb[120].mxu1 %v2316_v3  ;;  %1853 = vmatprep.mubr.f32.mxu0 %v5640_v43  ;;  %v1635_v3 = vld [vmem:[#allocation3 + $0x90] sm:$0xff] }
 0x279   : > { %2462 = vmatprep.mubr.f32.mxu1 %v5642_v41  ;;  %4233 = vmatpush3.bf16.msra.mxu1 %v4230_v7  ;;  %v5690_v7 = vld [vmem:[#allocation2 + $0x92] sm:$0xff] }
 0x27a   : > { %4235 = vmatprep.subr.bf16.mxu1 %v4234_v31 }
 0x27b   : > { %1854 = vmatmul.mubr.f32.gmra.mrb[102].mxu0 %v5629_v22 }
 0x27c   : > { %2463 = vmatmul.mubr.f32.gmra.mrb[122].mxu1 %v2317_v1  ;;  %1858 = vmatprep.mubr.f32.mxu0 %v5647_v51  ;;  %v4130_v1 = vpack.c.bf16 %v1636_v46, %v1635_v3  ;;  %v1630_v46 = vld [vmem:[#allocation3 + $0x68] sm:$0xff] }
 0x27d   : > { %2467 = vmatprep.mubr.f32.mxu1 %v5649_v45  ;;  %4237 = vmatpush3.bf16.msra.mxu1 %v4234_v31 }
 0x27e   : > { %4239 = vmatprep.subr.bf16.mxu1 %v4238_v19 }
 0x27f   : > { %1859 = vmatmul.mubr.f32.gmra.mrb[104].mxu0 %v5633_v32 }
 0x280   : > { %2468 = vmatmul.mubr.f32.gmra.mrb[124].mxu1 %v5635_v23  ;;  %1863 = vmatprep.mubr.f32.mxu0 %v5654_v34 }
 0x281   : > { %2472 = vmatprep.mubr.f32.mxu1 %v5656_v8  ;;  %4241 = vmatpush3.bf16.msra.mxu1 %v4238_v19 }
 0x282   : > { %4243 = vmatprep.subr.bf16.mxu1 %v4242_v54 }
 0x283   : > { %1864 = vmatmul.mubr.f32.gmra.mrb[106].mxu0 %v5640_v43 }
 0x284   : > { %2473 = vmatmul.mubr.f32.gmra.mrb[126].mxu1 %v5642_v41  ;;  %1868 = vmatprep.mubr.f32.mxu0 %v5662_v59 }
 0x285   : > { %2477 = vmatprep.mubr.f32.mxu1 %v5664_v12  ;;  %4245 = vmatpush3.bf16.msra.mxu1 %v4242_v54  ;;  %v1626_v54 = vld [vmem:[#allocation3 + $0x48] sm:$0xff] }
 0x286   : > { %4247 = vmatprep.subr.bf16.mxu1 %v4246_v36 }
 0x287   : > { %1869 = vmatmul.mubr.f32.gmra.mrb[108].mxu0 %v5647_v51 }
 0x288   : > { %2478 = vmatmul.mubr.f32.gmra.mrb[128].mxu1 %v5649_v45  ;;  %1873 = vmatprep.mubr.f32.mxu0 %v5670_v57 }
 0x289   : > { %2482 = vmatprep.mubr.f32.mxu1 %v5672_v52  ;;  %4249 = vmatpush3.bf16.msra.mxu1 %v4246_v36  ;;  %v1643_v36 = vld [vmem:[#allocation3 + $0xd0] sm:$0xff] }
 0x28a   : > { %4251 = vmatprep.subr.bf16.mxu1 %v4250_v15 }
 0x28b   : > { %1874 = vmatmul.mubr.f32.gmra.mrb[110].mxu0 %v5654_v34 }
 0x28c   : > { %2483 = vmatmul.mubr.f32.gmra.mrb[130].mxu1 %v5656_v8  ;;  %3686 = vmatprep.mubr.f32.mxu0 %v5570_v63  ;;  %v1621_v63 = vld [vmem:[#allocation3 + $0x20] sm:$0xff] }
 0x28d   : > { %2487 = vmatprep.mubr.f32.mxu1 %v5678_v0  ;;  %4253 = vmatpush3.bf16.msra.mxu1 %v4250_v15  ;;  %v4136_v31 = vpack.c.bf16 %v1622_v44, %v1621_v63  ;;  %v5708_v15 = vld [vmem:[#allocation2 + $0xb2] sm:$0xff] }
 0x28f   : > { %3687 = vmatmul.mubr.f32.vlgmr.msra.gmra.mrb[112].mxu0 %v5580_v27  ;;  %v1640_v27 = vld [vmem:[#allocation3 + $0xb8] sm:$0xff] }
 0x290   : > { %2488 = vmatmul.mubr.f32.gmra.mrb[132].mxu1 %v5664_v12  ;;  %4129 = vmatpush3.bf16.msra.mxu0 %v4128_v53  ;;  %v4138_v19 = vpack.c.bf16 %v1640_v27, %v1639_v42  ;;  %v2330_v53 = vld [vmem:[#allocation2 + $0xc2] sm:$0xff] }
 0x291   : > { %3689 = vmatprep.mubr.f32.mxu0 %v5590_v5  ;;  %2492 = vmatprep.mubr.f32.mxu1 %v5684_v18  ;;  %v1623_v5 = vld [vmem:[#allocation3 + $0x30] sm:$0xff] }
 0x292   : > { %4131 = vmatprep.subr.bf16.mxu0 %v4130_v1  ;;  %v4140_v56 = vpack.c.bf16 %v1624_v9, %v1623_v5  ;;  %v1648_v1 = vld [vmem:[#allocation3 + $0xf8] sm:$0xff]  ;;  %v1600_v42 = vld [vmem:[#allocation2 + $0x20] sm:$0xff] }
 0x293   : > { %3690 = vmatmul.mubr.f32.gmra.mrb[114].mxu0 %v5600_v58  ;;  %v1642_v58 = vld [vmem:[#allocation3 + $0xc8] sm:$0xff]  ;;  %v4154_v63 = vpack.c.bf16 %v1648_v1, %v1647_v29 }
 0x294   : > { %2493 = vmatmul.mubr.f32.gmra.mrb[134].mxu1 %v5672_v52  ;;  %4133 = vmatpush3.bf16.msra.mxu0 %v4132_v35  ;;  %v4142_v30 = vpack.c.bf16 %v1642_v58, %v1641_v6  ;;  %v2331_v35 = vld [vmem:[#allocation2 + $0xca] sm:$0xff] }
 0x295   : > { %3692 = vmatprep.mubr.f32.mxu0 %v5610_v11  ;;  %2497 = vmatprep.mubr.f32.mxu1 %v5690_v7  ;;  %v1625_v11 = vld [vmem:[#allocation3 + $0x40] sm:$0xff] }
 0x296   : > { %4135 = vmatprep.subr.bf16.mxu0 %v4134_v40  ;;  %v4144_v20 = vpack.c.bf16 %v1626_v54, %v1625_v11  ;;  %v1599_v40 = vld [vmem:[#allocation2 + $0x18] sm:$0xff] }
 0x297   : > { %3693 = vmatmul.mubr.f32.gmra.mrb[116].mxu0 %v5620_v38  ;;  %v1644_v38 = vld [vmem:[#allocation3 + $0xd8] sm:$0xff] }
 0x298   : > { %2498 = vmatmul.mubr.f32.gmra.mrb[136].mxu1 %v5678_v0  ;;  %4137 = vmatpush3.bf16.msra.mxu0 %v4136_v31  ;;  %v4146_v37 = vpack.c.bf16 %v1644_v38, %v1643_v36 }
 0x299   : > { %3695 = vmatprep.mubr.f32.mxu0 %v5625_v14  ;;  %2502 = vmatprep.mubr.f32.mxu1 %v5696_v49  ;;  %v1627_v14 = vld [vmem:[#allocation3 + $0x50] sm:$0xff] }
 0x29a   : > { %4139 = vmatprep.subr.bf16.mxu0 %v4138_v19  ;;  %v4148_v3 = vpack.c.bf16 %v1628_v13, %v1627_v14 }
 0x29b   : > { %3696 = vmatmul.mubr.f32.gmra.mrb[118].mxu0 %v5629_v22  ;;  %v1646_v22 = vld [vmem:[#allocation3 + $0xe8] sm:$0xff] }
 0x29c   : > { %2503 = vmatmul.mubr.f32.gmra.mrb[138].mxu1 %v5684_v18  ;;  %4141 = vmatpush3.bf16.msra.mxu0 %v4140_v56  ;;  %v4150_v26 = vpack.c.bf16 %v1646_v22, %v1645_v21 }
 0x29d   : > { %3698 = vmatprep.mubr.f32.mxu0 %v5633_v32  ;;  %2507 = vmatprep.mubr.f32.mxu1 %v5702_v60  ;;  %v1629_v32 = vld [vmem:[#allocation3 + $0x60] sm:$0xff] }
 0x29e   : > { %4143 = vmatprep.subr.bf16.mxu0 %v4142_v30 }
 0x29f   : > { %3699 = vmatmul.mubr.f32.gmra.mrb[120].mxu0 %v5640_v43  ;;  %v4152_v43 = vpack.c.bf16 %v1630_v46, %v1629_v32 }
 0x2a0   : > { %2508 = vmatmul.mubr.f32.gmra.mrb[140].mxu1 %v5690_v7  ;;  %4145 = vmatpush3.bf16.msra.mxu0 %v4144_v20 }
 0x2a1   : > { %3701 = vmatprep.mubr.f32.mxu0 %v5647_v51  ;;  %2512 = vmatprep.mubr.f32.mxu1 %v5708_v15  ;;  %v1632_v51 = vld [vmem:[#allocation3 + $0x78] sm:$0xff] }
 0x2a2   : > { %4147 = vmatprep.subr.bf16.mxu0 %v4146_v37  ;;  %v4156_v44 = vpack.c.bf16 %v1632_v51, %v1631_v24 }
 0x2a3   : > { %3702 = vmatmul.mubr.f32.gmra.mrb[122].mxu0 %v5654_v34  ;;  %v1684_v34 = vld [vmem:[#allocation2 + $0xe1] sm:$0xff] }
 0x2a4   : > { %2513 = vmatmul.mubr.f32.gmra.mrb[142].mxu1 %v5696_v49  ;;  %4149 = vmatpush3.bf16.msra.mxu0 %v4148_v3 }
 0x2a5   : > { %3704 = vmatprep.mubr.f32.mxu0 %v5662_v59  ;;  %2517 = vmatprep.mubr.f32.mxu1 %v2330_v53  ;;  %v1597_v59 = vld [vmem:[#allocation2] sm:$0xff] }
 0x2a6   : > { %4151 = vmatprep.subr.bf16.mxu0 %v4150_v26 }
 0x2a7   : > { %3705 = vmatmul.mubr.f32.gmra.mrb[124].mxu0 %v5670_v57  ;;  %v1598_v57 = vld [vmem:[#allocation2 + $0x8] sm:$0xff] }
 0x2a8   : > { %2518 = vmatmul.mubr.f32.gmra.mrb[144].mxu1 %v5702_v60  ;;  %4153 = vmatpush3.bf16.msra.mxu0 %v4152_v43 }
 0x2a9   : > { %3707 = vmatprep.mubr.f32.mxu0 %v1683_v2  ;;  %2522 = vmatprep.mubr.f32.mxu1 %v2331_v35 }
 0x2aa   : > { %4155 = vmatprep.subr.bf16.mxu0 %v4154_v63 }
 0x2ab   : > { %3708 = vmatmul.mubr.f32.gmra.mrb[126].mxu0 %v1684_v34 }
 0x2ac   : > { %2523 = vmatmul.mubr.f32.gmra.mrb[146].mxu1 %v5708_v15  ;;  %4157 = vmatpush3.bf16.msra.mxu0 %v4156_v44 }
 0x2ad   : > { %2088 = vmatprep.mubr.f32.mxu0 %v1599_v40  ;;  %3798 = vmatprep.mubr.f32.mxu1 %v5635_v23  ;;  %v2332_v23 = vld [vmem:[#allocation2 + $0xda] sm:$0xff] }
 0x2af   : > { %2089 = vmatmul.mubr.f32.vlgmr.msra.gmra.mrb[128].mxu0 %v1597_v59 }
 0x2b0   : > { %3799 = vmatmul.mubr.f32.vlgmr.msra.gmra.mrb[100].mxu1 %v5642_v41  ;;  %2093 = vmatprep.mubr.f32.mxu0 %v1600_v42 }
 0x2b1   : > { %3801 = vmatprep.mubr.f32.mxu1 %v5649_v45 }
 0x2b3   : > { %2094 = vmatmul.mubr.f32.gmra.mrb[130].mxu0 %v1598_v57 }
 0x2b4   : > { %3802 = vmatmul.mubr.f32.gmra.mrb[102].mxu1 %v5656_v8  ;;  %2098 = vmatprep.mubr.f32.mxu0 %v5556_v4 }
 0x2b5   : > { %3804 = vmatprep.mubr.f32.mxu1 %v5664_v12 }
 0x2b7   : > { %2099 = vmatmul.mubr.f32.gmra.mrb[132].mxu0 %v1599_v40 }
 0x2b8   : > { %3805 = vmatmul.mubr.f32.gmra.mrb[104].mxu1 %v5672_v52  ;;  %2103 = vmatprep.mubr.f32.mxu0 %v5560_v62 }
 0x2b9   : > { %3807 = vmatprep.mubr.f32.mxu1 %v5678_v0 }
 0x2bb   : > { %2104 = vmatmul.mubr.f32.gmra.mrb[134].mxu0 %v1600_v42 }
 0x2bc   : > { %3808 = vmatmul.mubr.f32.gmra.mrb[106].mxu1 %v5684_v18  ;;  %2108 = vmatprep.mubr.f32.mxu0 %v5564_v50 }
 0x2bd   : > { %3810 = vmatprep.mubr.f32.mxu1 %v5690_v7 }
 0x2bf   : > { %2109 = vmatmul.mubr.f32.gmra.mrb[136].mxu0 %v5556_v4  ;;  %v2333_v4 = vld [vmem:[#allocation2 + $0xe2] sm:$0xff] }
 0x2c0   : > { %3811 = vmatmul.mubr.f32.gmra.mrb[108].mxu1 %v5696_v49  ;;  %2113 = vmatprep.mubr.f32.mxu0 %v5568_v61 }
 0x2c1   : > { %3813 = vmatprep.mubr.f32.mxu1 %v5702_v60 }
 0x2c3   : > { %2114 = vmatmul.mubr.f32.gmra.mrb[138].mxu0 %v5560_v62 }
 0x2c4   : > { %3814 = vmatmul.mubr.f32.gmra.mrb[110].mxu1 %v5708_v15  ;;  %2118 = vmatprep.mubr.f32.mxu0 %v5573_v10 }
 0x2c5   : > { %3816 = vmatprep.mubr.f32.mxu1 %v2330_v53 }
 0x2c7   : > { %2119 = vmatmul.mubr.f32.gmra.mrb[140].mxu0 %v5564_v50 }
 0x2c8   : > { %3817 = vmatmul.mubr.f32.gmra.mrb[112].mxu1 %v2331_v35  ;;  %2123 = vmatprep.mubr.f32.mxu0 %v5578_v16 }
 0x2c9   : > { %3819 = vmatprep.mubr.f32.mxu1 %v2332_v23 }
 0x2cb   : > { %2124 = vmatmul.mubr.f32.gmra.mrb[142].mxu0 %v5568_v61 }
 0x2cc   : > { %3820 = vmatmul.mubr.f32.gmra.mrb[114].mxu1 %v2333_v4  ;;  %2128 = vmatprep.mubr.f32.mxu0 %v5582_v17 }
 0x2cf   : > { %2129 = vmatmul.mubr.f32.gmra.mrb[144].mxu0 %v5573_v10 }
 0x2d0   : > { %2133 = vmatprep.mubr.f32.mxu0 %v5588_v25 }
 0x2d3   : > { %2134 = vmatmul.mubr.f32.gmra.mrb[146].mxu0 %v5578_v16 }
 0x2d4   : > { %2138 = vmatprep.mubr.f32.mxu0 %v5592_v39 }
 0x2d7   : > { %2139 = vmatmul.mubr.f32.gmra.mrb[148].mxu0 %v5582_v17 }
 0x2d8   : > { %2143 = vmatprep.mubr.f32.mxu0 %v5598_v33 }
 0x2db   : > { %2144 = vmatmul.mubr.f32.gmra.mrb[150].mxu0 %v5588_v25 }
 0x2dc   : > { %2148 = vmatprep.mubr.f32.mxu0 %v5602_v55 }
 0x2df   : > { %2149 = vmatmul.mubr.f32.gmra.mrb[152].mxu0 %v5592_v39 }
 0x2e0   : > { %2153 = vmatprep.mubr.f32.mxu0 %v5608_v47 }
 0x2e3   : > { %2154 = vmatmul.mubr.f32.gmra.mrb[154].mxu0 %v5598_v33 }
 0x2e4   : > { %2158 = vmatprep.mubr.f32.mxu0 %v5612_v28 }
 0x2e7   : > { %2159 = vmatmul.mubr.f32.gmra.mrb[156].mxu0 %v5602_v55 }
 0x2e8   : > { %2163 = vmatprep.mubr.f32.mxu0 %v5618_v48 }
 0x2eb   : > { %2164 = vmatmul.mubr.f32.gmra.mrb[158].mxu0 %v5608_v47 }
 0x322   : > { %v3164_v62 = vpop.f32.mrb[80].mxu0 }
 0x323   : > { %v3165_v50 = vpop.f32.mrb[81].mxu0 }
 0x324   : > { %v5758_v61 = vadd.f32 %v3165_v50, %v3164_v62 }
 0x326   : > { %v3167_v10 = vpop.f32.mrb[82].mxu0 }
 0x327   : > { %v3168_v16 = vpop.f32.mrb[83].mxu0 }
 0x328   : > { %v5760_v17 = vadd.f32 %v3168_v16, %v3167_v10 }
 0x32a   : > { %v3170_v25 = vpop.f32.mrb[84].mxu0 }
 0x32b   : > { %v3171_v39 = vpop.f32.mrb[85].mxu0 }
 0x32c   : > { %v5762_v41 = vadd.f32 %v3171_v39, %v3170_v25 }
 0x32e   : > { %v3173_v33 = vpop.f32.mrb[86].mxu0 }
 0x32f   : > { %v3174_v28 = vpop.f32.mrb[87].mxu0 }
 0x330   : > { %v5764_v45 = vadd.f32 %v3174_v28, %v3173_v33 }
 0x332   : > { %v3176_v55 = vpop.f32.mrb[88].mxu0 }
 0x333   : > { %v3177_v48 = vpop.f32.mrb[89].mxu0 }
 0x334   : > { %v5766_v8 = vadd.f32 %v3177_v48, %v3176_v55 }
 0x336   : > { %v3179_v47 = vpop.f32.mrb[90].mxu0 }
 0x337   : > { %v3180_v12 = vpop.f32.mrb[91].mxu0 }
 0x338   : > { %v5768_v52 = vadd.f32 %v3180_v12, %v3179_v47 }
 0x33a   : > { %v3182_v0 = vpop.f32.mrb[92].mxu0 }
 0x33b   : > { %v3183_v18 = vpop.f32.mrb[93].mxu0 }
 0x33c   : > { %v5770_v7 = vadd.f32 %v3183_v18, %v3182_v0 }
 0x33e   : > { %v3185_v27 = vpop.f32.mrb[94].mxu0 }
 0x33f   : > { %v3186_v31 = vpop.f32.mrb[95].mxu0 }
 0x340   : > { %v5772_v5 = vadd.f32 %v3186_v31, %v3185_v27 }
 0x342   : > { %v3188_v9 = vpop.f32.mrb[96].mxu0 }
 0x343   : > { %v3189_v49 = vpop.f32.mrb[97].mxu0  ;;  %v3388_v19 = vpop.f32.mrb[116].mxu1 }
 0x344   : > { %v5774_v6 = vadd.f32 %v3189_v49, %v3188_v9  ;;  %v3389_v58 = vpop.f32.mrb[117].mxu1 }
 0x345   : > { %v5776_v56 = vadd.f32 %v3389_v58, %v3388_v19 }
 0x346   : > { %v3191_v11 = vpop.f32.mrb[98].mxu0 }
 0x347   : > { %v3192_v54 = vpop.f32.mrb[99].mxu0  ;;  %v3391_v60 = vpop.f32.mrb[118].mxu1 }
 0x348   : > { %v5778_v30 = vadd.f32 %v3192_v54, %v3191_v11  ;;  %v3392_v36 = vpop.f32.mrb[119].mxu1 }
 0x349   : > { %v5780_v38 = vadd.f32 %v3392_v36, %v3391_v60 }
 0x34a   : > { %v3194_v20 = vpop.f32.mrb[100].mxu0 }
 0x34b   : > { %v3195_v14 = vpop.f32.mrb[101].mxu0  ;;  %v3394_v13 = vpop.f32.mrb[120].mxu1 }
 0x34c   : > { %v5782_v15 = vadd.f32 %v3195_v14, %v3194_v20  ;;  %v3395_v37 = vpop.f32.mrb[121].mxu1 }
 0x34d   : > { %v5784_v21 = vadd.f32 %v3395_v37, %v3394_v13 }
 0x34e   : > { %v3197_v22 = vpop.f32.mrb[102].mxu0 }
 0x34f   : > { %v3198_v3 = vpop.f32.mrb[103].mxu0  ;;  %v3397_v32 = vpop.f32.mrb[122].mxu1 }
 0x350   : > { %v5786_v46 = vadd.f32 %v3198_v3, %v3197_v22  ;;  %v3398_v53 = vpop.f32.mrb[123].mxu1 }
 0x351   : > { %v5788_v26 = vadd.f32 %v3398_v53, %v3397_v32 }
 0x352   : > { %v3200_v29 = vpop.f32.mrb[104].mxu0 }
 0x353   : > { %v3201_v1 = vpop.f32.mrb[105].mxu0  ;;  %v3400_v43 = vpop.f32.mrb[124].mxu1 }
 0x354   : > { %v5790_v24 = vadd.f32 %v3201_v1, %v3200_v29  ;;  %v3401_v51 = vpop.f32.mrb[125].mxu1 }
 0x355   : > { %v5792_v2 = vadd.f32 %v3401_v51, %v3400_v43 }
 0x356   : > { %v3203_v35 = vpop.f32.mrb[106].mxu0 }
 0x357   : > { %v3204_v63 = vpop.f32.mrb[107].mxu0  ;;  %v3403_v34 = vpop.f32.mrb[126].mxu1 }
 0x358   : > { %v3205_v44 = vadd.f32 %v3204_v63, %v3203_v35  ;;  %v3404_v40 = vpop.f32.mrb[127].mxu1 }
 0x359   : > { %v5794_v59 = vadd.f32 %v3404_v40, %v3403_v34 }
 0x35a   : > { %v3206_v42 = vpop.f32.mrb[108].mxu0 }
 0x35b   : > { %v3207_v57 = vpop.f32.mrb[109].mxu0  ;;  %v3406_v23 = vpop.f32.mrb[128].mxu1 }
 0x35c   : > { %v3208_v4 = vadd.f32 %v3207_v57, %v3206_v42  ;;  %v3407_v62 = vpop.f32.mrb[129].mxu1 }
 0x35d   : > { %v5796_v50 = vadd.f32 %v3407_v62, %v3406_v23 }
 0x35e   : > { %v3209_v10 = vpop.f32.mrb[110].mxu0 }
 0x35f   : > { %v3210_v16 = vpop.f32.mrb[111].mxu0  ;;  %v3409_v25 = vpop.f32.mrb[130].mxu1 }
 0x360   : > { %v3211_v39 = vadd.f32 %v3210_v16, %v3209_v10  ;;  %v3410_v33 = vpop.f32.mrb[131].mxu1 }
 0x361   : > { %v5798_v28 = vadd.f32 %v3410_v33, %v3409_v25 }
 0x362   : > { %v3688_v55 = vpop.f32.mrb[112].mxu0 }
 0x363   : > { %v5801_v48 = vadd.f32 %v3688_v55, %v5760_v17  ;;  %v1945_v47 = vpop.f32.mrb[113].mxu0  ;;  %v3412_v12 = vpop.f32.mrb[132].mxu1 }
 0x364   : > { %v1946_v0 = vadd.f32 %v5758_v61, %v1945_v47  ;;  %v3413_v18 = vpop.f32.mrb[133].mxu1 }
 0x365   : > { %v5804_v27 = vadd.f32 %v3413_v18, %v3412_v12 }
 0x366   : > { %v3691_v31 = vpop.f32.mrb[114].mxu0 }
 0x367   : > { %v5807_v9 = vadd.f32 %v3691_v31, %v5764_v45  ;;  %v1955_v49 = vpop.f32.mrb[115].mxu0  ;;  %v3415_v19 = vpop.f32.mrb[134].mxu1 }
 0x368   : > { %v5810_v58 = vadd.f32 %v5762_v41, %v1955_v49  ;;  %v3416_v11 = vpop.f32.mrb[135].mxu1 }
 0x369   : > { %v5812_v54 = vadd.f32 %v3416_v11, %v3415_v19 }
 0x36a   : > { %v3694_v17 = vpop.f32.mrb[116].mxu0 }
 0x36b   : > { %v5815_v60 = vadd.f32 %v3694_v17, %v5768_v52  ;;  %v1965_v61 = vpop.f32.mrb[117].mxu0  ;;  %v3418_v36 = vpop.f32.mrb[136].mxu1 }
 0x36c   : > { %v5818_v20 = vadd.f32 %v5766_v8, %v1965_v61  ;;  %v3419_v14 = vpop.f32.mrb[137].mxu1 }
 0x36d   : > { %v5820_v45 = vadd.f32 %v3419_v14, %v3418_v36 }
 0x36e   : > { %v3697_v13 = vpop.f32.mrb[118].mxu0 }
 0x36f   : > { %v5823_v37 = vadd.f32 %v3697_v13, %v5772_v5  ;;  %v1975_v41 = vpop.f32.mrb[119].mxu0  ;;  %v3421_v22 = vpop.f32.mrb[138].mxu1 }
 0x370   : > { %v5826_v3 = vadd.f32 %v5770_v7, %v1975_v41  ;;  %v3422_v32 = vpop.f32.mrb[139].mxu1 }
 0x371   : > { %v5828_v52 = vadd.f32 %v3422_v32, %v3421_v22 }
 0x372   : > { %v3700_v53 = vpop.f32.mrb[120].mxu0 }
 0x373   : > { %v5831_v29 = vadd.f32 %v3700_v53, %v5778_v30  ;;  %v1985_v8 = vpop.f32.mrb[121].mxu0  ;;  %v3424_v1 = vpop.f32.mrb[140].mxu1  ;;  %v3000_v53 = vld [vmem:[%s4761_s12 + $0x31] sm:$0xff] }
 0x374   : > { %v5834_v43 = vadd.f32 %v5774_v6, %v1985_v8  ;;  %v3425_v51 = vpop.f32.mrb[141].mxu1 }
 0x375   : > { %v5836_v5 = vadd.f32 %v3425_v51, %v3424_v1 }
 0x376   : > { %v3703_v35 = vpop.f32.mrb[122].mxu0 }
 0x377   : > { %v5839_v63 = vadd.f32 %v3703_v35, %v5786_v46  ;;  %v1995_v7 = vpop.f32.mrb[123].mxu0  ;;  %v3427_v34 = vpop.f32.mrb[142].mxu1 }
 0x378   : > { %v5842_v40 = vadd.f32 %v5782_v15, %v1995_v7  ;;  %v3428_v42 = vpop.f32.mrb[143].mxu1 }
 0x379   : > { %v5844_v30 = vadd.f32 %v3428_v42, %v3427_v34 }
 0x37a   : > { %v3706_v57 = vpop.f32.mrb[124].mxu0 }
 0x37b   : > { %v5846_v23 = vadd.f32 %v3706_v57, %v3205_v44  ;;  %v2005_v6 = vpop.f32.mrb[125].mxu0  ;;  %v3430_v62 = vpop.f32.mrb[144].mxu1 }
 0x37c   : > { %v5849_v10 = vadd.f32 %v5790_v24, %v2005_v6  ;;  %v3431_v16 = vpop.f32.mrb[145].mxu1  ;;  %v3001_v6 = vld [vmem:[%s4761_s12 + $0x39] sm:$0xff] }
 0x37d   : > { %v5851_v25 = vadd.f32 %v3431_v16, %v3430_v62 }
 0x37e   : > { %v3709_v46 = vpop.f32.mrb[126].mxu0 }
 0x37f   : > { %v5853_v33 = vadd.f32 %v3709_v46, %v3211_v39  ;;  %v2015_v55 = vpop.f32.mrb[127].mxu0  ;;  %v3433_v15 = vpop.f32.mrb[146].mxu1 }
 0x380   : > { %v5855_v47 = vadd.f32 %v3208_v4, %v2015_v55  ;;  %v3434_v12 = vpop.f32.mrb[147].mxu1  ;;  %v5863_v4 = vld [vmem:[%s6038_s4] ss:$0 sm:$0xff] }
 0x381   : > { %v5857_v18 = vadd.f32 %v3434_v12, %v3433_v15 }
 0x382   : > { %v3276_v44 = vpop.f32.mrb[128].mxu0 }
 0x383   : > { %v3800_v31 = vpop.f32.mrb[100].mxu1  ;;  %v3277_v49 = vpop.f32.mrb[129].mxu0 }
 0x384   : > { %v3278_v19 = vadd.f32 %v3277_v49, %v3276_v44  ;;  %v2594_v24 = vpop.f32.mrb[101].mxu1  ;;  %v3002_v49 = vld [vmem:[%s4761_s12 + $0x49] sm:$0xff] }
 0x386   : > { %v2091_v11 = vadd.f32 %v3278_v19, %v1946_v0  ;;  %v3279_v17 = vpop.f32.mrb[130].mxu0 }
 0x387   : > { %v3803_v61 = vpop.f32.mrb[102].mxu1  ;;  %v3280_v36 = vpop.f32.mrb[131].mxu0 }
 0x388   : > { %v4260_v39 = vadd.f32 %v5776_v56, %v2091_v11  ;;  %v3281_v14 = vadd.f32 %v3280_v36, %v3279_v17  ;;  %v2604_v13 = vpop.f32.mrb[103].mxu1 }
 0x38a   : > { %v4261_v41 = vadd.f32 %v4260_v39, %v2594_v24  ;;  %v2096_v22 = vadd.f32 %v3281_v14, %v5801_v48  ;;  %v3282_v32 = vpop.f32.mrb[132].mxu0 }
 0x38b   : > { %v3806_v8 = vpop.f32.mrb[104].mxu1  ;;  %v3283_v0 = vpop.f32.mrb[133].mxu0 }
 0x38c   : > { %v2696_v1 = vadd.f32 %v4261_v41, %v5863_v4  ;;  %v4256_v56 = vadd.f32 %v5780_v38, %v2096_v22  ;;  %v3284_v51 = vadd.f32 %v3283_v0, %v3282_v32  ;;  %v2614_v35 = vpop.f32.mrb[105].mxu1  ;;  %v3003_v22 = vld [vmem:[%s4761_s12 + $0x51] sm:$0xff] }
 0x38e   : > { %v2729_v7 = vadd.f32 %v3000_v53, %v2696_v1  ;;  %v4257_v34 = vadd.f32 %v4256_v56, %v3800_v31  ;;  %v2101_v42 = vadd.f32 %v3284_v51, %v5810_v58  ;;  %v3285_v57 = vpop.f32.mrb[134].mxu0 }
 0x38f   : > { %v5871_v62 = vpop.f32.mrb[106].mxu1  ;;  %v3286_v48 = vpop.f32.mrb[135].mxu0 }
 0x390   : > { %v2745_v16 = vmax.f32 %v2729_v7, 0.0  ;;  %v2697_v46 = vadd.f32 %v4257_v34, %v5863_v4  ;;  %v4268_v55 = vadd.f32 %v5784_v21, %v2101_v42  ;;  %v3287_v15 = vadd.f32 %v3286_v48, %v3285_v57  ;;  %v2624_v38 = vpop.f32.mrb[107].mxu1  ;;  %v3004_v42 = vld [vmem:[%s4761_s12 + $0x61] sm:$0xff] }
 0x392   : > { %2761 = vst [vmem:[%s5550_s29] sm:$0xff] %v2745_v16  ;;  %v2730_v12 = vadd.f32 %v3001_v6, %v2697_v46  ;;  %v4269_v44 = vadd.f32 %v4268_v55, %v2604_v13  ;;  %v2106_v31 = vadd.f32 %v3287_v15, %v5807_v9  ;;  %v3288_v58 = vpop.f32.mrb[136].mxu0 }
 0x393   : > { %v5878_v19 = vpop.f32.mrb[108].mxu1  ;;  %v3289_v24 = vpop.f32.mrb[137].mxu0 }
 0x394   : > { %v2746_v11 = vmax.f32 %v2730_v12, 0.0  ;;  %v2698_v17 = vadd.f32 %v4269_v44, %v5863_v4  ;;  %v4264_v36 = vadd.f32 %v5788_v26, %v2106_v31  ;;  %v3290_v21 = vadd.f32 %v3289_v24, %v3288_v58  ;;  %v5882_v39 = vpop.f32.mrb[109].mxu1  ;;  %v3005_v44 = vld [vmem:[%s4761_s12 + $0x69] sm:$0xff] }
 0x396   : > { %2762 = vst [vmem:[%s5550_s29 + $0x8] sm:$0xff] %v2746_v11  ;;  %v2731_v14 = vadd.f32 %v3002_v49, %v2698_v17  ;;  %v4265_v13 = vadd.f32 %v4264_v36, %v3803_v61  ;;  %v2111_v9 = vadd.f32 %v3290_v21, %v5818_v20  ;;  %v3291_v41 = vpop.f32.mrb[138].mxu0 }
 0x397   : > { %v5887_v32 = vpop.f32.mrb[110].mxu1  ;;  %v3292_v53 = vpop.f32.mrb[139].mxu0 }
 0x398   : > { %v2747_v0 = vmax.f32 %v2731_v14, 0.0  ;;  %v2699_v1 = vadd.f32 %v4265_v13, %v5863_v4  ;;  %v4276_v26 = vadd.f32 %v5792_v2, %v2111_v9  ;;  %v3293_v56 = vadd.f32 %v3292_v53, %v3291_v41  ;;  %v5891_v51 = vpop.f32.mrb[111].mxu1  ;;  %v3006_v14 = vld [vmem:[%s4761_s12 + $0x79] sm:$0xff] }
 0x39a   : > { %2763 = vst [vmem:[%s5550_s29 + $0x10] sm:$0xff] %v2747_v0  ;;  %v2732_v7 = vadd.f32 %v3003_v22, %v2699_v1  ;;  %v4277_v61 = vadd.f32 %v4276_v26, %v2614_v35  ;;  %v2116_v20 = vadd.f32 %v3293_v56, %v5815_v60  ;;  %v3294_v34 = vpop.f32.mrb[140].mxu0  ;;  %v3007_v26 = vld [vmem:[%s4761_s12 + $0x81] sm:$0xff] }
 0x39b   : > { %v5896_v57 = vpop.f32.mrb[112].mxu1  ;;  %v3295_v6 = vpop.f32.mrb[141].mxu0 }
 0x39c   : > { %v2748_v48 = vmax.f32 %v2732_v7, 0.0  ;;  %v2700_v16 = vadd.f32 %v4277_v61, %v5863_v4  ;;  %v4272_v2 = vadd.f32 %v5794_v59, %v2116_v20  ;;  %v3296_v46 = vadd.f32 %v3295_v6, %v3294_v34  ;;  %v5900_v55 = vpop.f32.mrb[113].mxu1  ;;  %v3008_v6 = vld [vmem:[%s4761_s12 + $0x91] sm:$0xff] }
 0x39e   : > { %2764 = vst [vmem:[%s5550_s29 + $0x18] sm:$0xff] %v2748_v48  ;;  %v2733_v15 = vadd.f32 %v3004_v42, %v2700_v16  ;;  %v4273_v35 = vadd.f32 %v4272_v2, %v3806_v8  ;;  %v2121_v60 = vadd.f32 %v3296_v46, %v5826_v3  ;;  %v3297_v12 = vpop.f32.mrb[142].mxu0 }
 0x39f   : > { %v5905_v31 = vpop.f32.mrb[114].mxu1  ;;  %v3298_v58 = vpop.f32.mrb[143].mxu0 }
 0x3a0   : > { %v2749_v49 = vmax.f32 %v2733_v15, 0.0  ;;  %v2701_v24 = vadd.f32 %v4273_v35, %v5863_v4  ;;  %v4284_v59 = vadd.f32 %v5796_v50, %v2121_v60  ;;  %v3299_v11 = vadd.f32 %v3298_v58, %v3297_v12  ;;  %v5909_v17 = vpop.f32.mrb[115].mxu1  ;;  %v3009_v60 = vld [vmem:[%s4761_s12 + $0x99] sm:$0xff] }
 0x3a2   : > { %2765 = vst [vmem:[%s5550_s29 + $0x20] sm:$0xff] %v2749_v49  ;;  %v2734_v8 = vadd.f32 %v3005_v44, %v2701_v24  ;;  %v4285_v36 = vadd.f32 %v4284_v59, %v2624_v38  ;;  %v2126_v3 = vadd.f32 %v3299_v11, %v5823_v37  ;;  %v3300_v21 = vpop.f32.mrb[144].mxu0  ;;  %v3010_v11 = vld [vmem:[%s4761_s12 + $0xa9] sm:$0xff] }
 0x3a3   : > { %v3301_v13 = vpop.f32.mrb[145].mxu0 }
 0x3a4   : > { %v2750_v9 = vmax.f32 %v2734_v8, 0.0  ;;  %v2702_v41 = vadd.f32 %v4285_v36, %v5863_v4  ;;  %v4280_v22 = vadd.f32 %v5798_v28, %v2126_v3  ;;  %v3302_v53 = vadd.f32 %v3301_v13, %v3300_v21 }
 0x3a6   : > { %2766 = vst [vmem:[%s5550_s29 + $0x28] sm:$0xff] %v2750_v9  ;;  %v2735_v50 = vadd.f32 %v3006_v14, %v2702_v41  ;;  %v4281_v0 = vadd.f32 %v4280_v22, %v5871_v62  ;;  %v2131_v1 = vadd.f32 %v3302_v53, %v5834_v43  ;;  %v3303_v38 = vpop.f32.mrb[146].mxu0  ;;  %v3011_v9 = vld [vmem:[%s4761_s12 + $0xb1] sm:$0xff] }
 0x3a7   : > { %v3304_v37 = vpop.f32.mrb[147].mxu0 }
 0x3a8   : > { %v2751_v56 = vmax.f32 %v2735_v50, 0.0  ;;  %v2703_v7 = vadd.f32 %v4281_v0, %v5863_v4  ;;  %v4292_v61 = vadd.f32 %v5804_v27, %v2131_v1  ;;  %v3305_v20 = vadd.f32 %v3304_v37, %v3303_v38  ;;  %v3012_v38 = vld [vmem:[%s4761_s12 + $0xc1] sm:$0xff] }
 0x3aa   : > { %2767 = vst [vmem:[%s5550_s29 + $0x30] sm:$0xff] %v2751_v56  ;;  %v2736_v28 = vadd.f32 %v3007_v26, %v2703_v7  ;;  %v4293_v34 = vadd.f32 %v4292_v61, %v5882_v39  ;;  %v2136_v42 = vadd.f32 %v3305_v20, %v5831_v29  ;;  %v3306_v62 = vpop.f32.mrb[148].mxu0  ;;  %v3013_v20 = vld [vmem:[%s4761_s12 + $0xc9] sm:$0xff] }
 0x3ab   : > { %v3307_v43 = vpop.f32.mrb[149].mxu0 }
 0x3ac   : > { %v2752_v48 = vmax.f32 %v2736_v28, 0.0  ;;  %v2704_v16 = vadd.f32 %v4293_v34, %v5863_v4  ;;  %v4288_v2 = vadd.f32 %v5812_v54, %v2136_v42  ;;  %v3308_v46 = vadd.f32 %v3307_v43, %v3306_v62 }
 0x3ae   : > { %2768 = vst [vmem:[%s5550_s29 + $0x38] sm:$0xff] %v2752_v48  ;;  %v2737_v27 = vadd.f32 %v3008_v6, %v2704_v16  ;;  %v4289_v15 = vadd.f32 %v4288_v2, %v5878_v19  ;;  %v2141_v35 = vadd.f32 %v3308_v46, %v5842_v40  ;;  %v3309_v39 = vpop.f32.mrb[150].mxu0  ;;  %v3015_v46 = vld [vmem:[%s4761_s12 + $0xe1] sm:$0xff] }
 0x3af   : > { %v3310_v29 = vpop.f32.mrb[151].mxu0 }
 0x3b0   : > { %v2753_v12 = vmax.f32 %v2737_v27, 0.0  ;;  %v2705_v44 = vadd.f32 %v4289_v15, %v5863_v4  ;;  %v4300_v58 = vadd.f32 %v5820_v45, %v2141_v35  ;;  %v3311_v49 = vadd.f32 %v3310_v29, %v3309_v39 }
 0x3b2   : > { %2769 = vst [vmem:[%s5550_s29 + $0x40] sm:$0xff] %v2753_v12  ;;  %v2738_v54 = vadd.f32 %v3009_v60, %v2705_v44  ;;  %v4301_v24 = vadd.f32 %v4300_v58, %v5891_v51  ;;  %v2146_v59 = vadd.f32 %v3311_v49, %v5839_v63  ;;  %v3312_v19 = vpop.f32.mrb[152].mxu0 }
 0x3b3   : > { %v3313_v40 = vpop.f32.mrb[153].mxu0 }
 0x3b4   : > { %v2754_v8 = vmax.f32 %v2738_v54, 0.0  ;;  %v2706_v36 = vadd.f32 %v4301_v24, %v5863_v4  ;;  %v4296_v3 = vadd.f32 %v5828_v52, %v2146_v59  ;;  %v3314_v21 = vadd.f32 %v3313_v40, %v3312_v19 }
 0x3b6   : > { %2770 = vst [vmem:[%s5550_s29 + $0x48] sm:$0xff] %v2754_v8  ;;  %v2739_v45 = vadd.f32 %v3010_v11, %v2706_v36  ;;  %v4297_v14 = vadd.f32 %v4296_v3, %v5887_v32  ;;  %v2151_v13 = vadd.f32 %v3314_v21, %v5849_v10  ;;  %v3315_v51 = vpop.f32.mrb[154].mxu0 }
 0x3b7   : > { %v3316_v63 = vpop.f32.mrb[155].mxu0 }
 0x3b8   : > { %v2755_v41 = vmax.f32 %v2739_v45, 0.0  ;;  %v2707_v22 = vadd.f32 %v4297_v14, %v5863_v4  ;;  %v4308_v53 = vadd.f32 %v5836_v5, %v2151_v13  ;;  %v3317_v50 = vadd.f32 %v3316_v63, %v3315_v51 }
 0x3ba   : > { %2771 = vst [vmem:[%s5550_s29 + $0x50] sm:$0xff] %v2755_v41  ;;  %v2740_v52 = vadd.f32 %v3011_v9, %v2707_v22  ;;  %v4309_v0 = vadd.f32 %v4308_v53, %v5900_v55  ;;  %v2156_v1 = vadd.f32 %v3317_v50, %v5846_v23  ;;  %v3318_v32 = vpop.f32.mrb[156].mxu0 }
 0x3bb   : > { %v3319_v10 = vpop.f32.mrb[157].mxu0 }
 0x3bc   : > { %v2756_v26 = vmax.f32 %v2740_v52, 0.0  ;;  %v2708_v37 = vadd.f32 %v4309_v0, %v5863_v4  ;;  %v4304_v56 = vadd.f32 %v5844_v30, %v2156_v1  ;;  %v3320_v7 = vadd.f32 %v3319_v10, %v3318_v32 }
 0x3be   : > { %2772 = vst [vmem:[%s5550_s29 + $0x58] sm:$0xff] %v2756_v26  ;;  %v2741_v5 = vadd.f32 %v3012_v38, %v2708_v37  ;;  %v4305_v61 = vadd.f32 %v4304_v56, %v5896_v57  ;;  %v2161_v55 = vadd.f32 %v3320_v7, %v5855_v47  ;;  %v3321_v23 = vpop.f32.mrb[158].mxu0  ;;  %v3014_v47 = vld [vmem:[%s4761_s12 + $0xd9] sm:$0xff]  ;;  %s6056_s12 = sand.u32 1, %s4528_s19  }
 0x3bf   : > { %v3322_v28 = vpop.f32.mrb[159].mxu0  ;;  %s5982_s27 = scalar_lea.sflag [#allocation5], %s6056_s12 }
 0x3c0   : > { %v2757_v34 = vmax.f32 %v2741_v5, 0.0  ;;  %v2709_v42 = vadd.f32 %v4305_v61, %v5863_v4  ;;  %v4316_v62 = vadd.f32 %v5851_v25, %v2161_v55  ;;  %v3323_v30 = vadd.f32 %v3322_v28, %v3321_v23 }
 0x3c2   : > { %2773 = vst [vmem:[%s5550_s29 + $0x60] sm:$0xff] %v2757_v34  ;;  %v2742_v6 = vadd.f32 %v3013_v20, %v2709_v42  ;;  %v4317_v43 = vadd.f32 %v4316_v62, %v5909_v17  ;;  %v2166_v57 = vadd.f32 %v3323_v30, %v5853_v33 }
 0x3c4   : > { %v2758_v48 = vmax.f32 %v2742_v6, 0.0  ;;  %v2710_v16 = vadd.f32 %v4317_v43, %v5863_v4  ;;  %v4312_v2 = vadd.f32 %v5857_v18, %v2166_v57 }
 0x3c6   : > { %2774 = vst [vmem:[%s5550_s29 + $0x68] sm:$0xff] %v2758_v48  ;;  %v2743_v25 = vadd.f32 %v3014_v47, %v2710_v16  ;;  %v4313_v17 = vadd.f32 %v4312_v2, %v5905_v31 }
 0x3c8   : > { %v2759_v27 = vmax.f32 %v2743_v25, 0.0  ;;  %v2711_v33 = vadd.f32 %v4313_v17, %v5863_v4 }
 0x3ca   : > { %2775 = vst [vmem:[%s5550_s29 + $0x70] sm:$0xff] %v2759_v27  ;;  %v2744_v15 = vadd.f32 %v3015_v46, %v2711_v33 }
 0x3cc   : > { %v2760_v18 = vmax.f32 %v2744_v15, 0.0 }
 0x3ce   : > { %2776 = vst [vmem:[%s5550_s29 + $0x78] sm:$0xff] %v2760_v18 }
 0x3cf   : > { %4467 = shalt.err (!%p4464_p13)
}
 0x3d0   : > { %s4468_s29 = scalar_lea.hbm %s5975_s17, 2048  ;;  %s4472_s16 = scalar_lea.hbm %s6039_s5, 8192 }
 0x3d1   : > { %p4469_p1 = scmp.ne.s32.totalorder %s5975_s17, %s4468_s29  ;;  %p4473_p8 = scmp.lt.u32.totalorder %s5975_s17, %s6039_s5 }
 0x3d2   : > { %p4474_p10 = scmp.lt.u32.totalorder %s4472_s16, %s4468_s29  ;;  %p4476_p0 = scmp.lt.u32.totalorder %s4468_s29, %s5975_s17 }
 0x3d3   : > { %p4470_p4 = pnand %p4469_p1, %p6057_p2 }
 0x3d4   : > { %p4475_p12 = por %p4474_p10, %p4473_p8 }
 0x3d5   : > { %p4471_p3 = pneg %p4470_p4 }
 0x3d6   : > { %p4477_p5 = por %p4476_p0, %p4475_p12 }
 0x3d8   : > { %p4478_p6 = pnand %p4477_p5, %p4471_p3 }
 0x3da   : > { %4481 = shalt.err (!%p4478_p6)
}
 0x3db   : > { %s4562_s15 = smov 128   ;;  %s4563_s10 = smov 8  }
 0x3dc   : > { %4340 = dma.vmem_to_hbm [thread:$0]  (%p6057_p2), %s5977_s22, 2048, %s5975_s17, %s5982_s27, %s4562_s15, %s4562_s15, %s4563_s10  }
 0x3dd PF: > { %p4352_p7 = scmp.ge.s32.totalorder %s4552_s25, 2  ;;  %s2809_s12 = sand.u32 1, %s4524_s18  }
 0x3de   : > { %p6058_p9 = scmp.ne.s32.totalorder %s6049_s8, 0  ;;  %s2810_s6 = scalar_lea.sflag [#allocation5], %s2809_s12 }
 0x3e0   : > { %p4347_p11 = pnand %p4352_p7, %p6058_p9 }
 0x3e2   : > { %4519 = dma.done.wait (!%p4347_p11), %s2810_s6, 2048  }
 0x3e3   : > { %4521 = vsyncadd (!%p4347_p11), %s2810_s6, 4294965248  ;;  %s19_s25 = sadd.s32 1, %s4552_s25   ;;  %s6059_s7 = sld [smem:[#allocation9_spill]] }
 0x3e4   : > { %p16_p13 = scmp.ge.s32.totalorder %s19_s25, 6   ;;  %s6060_s18 = smov %s4528_s19 }
 0x3e5   : > { %s6061_s19 = smov %s4532_s20  ;;  %s6062_s20 = smov %s4673_s13 }
 0x3e6   : > { %s6063_s21 = smov %s4544_s23  ;;  %s6064_s22 = smov %s4548_s24 }
 0x3e7   : > { %s6065_s23 = smov %s6068_s28  ;;  %18 = sbr.rel (!%p16_p13) target bundleno = 8 (0x8), region = 94 }
 0x3e9   : > { %s6066_s24 = smov %s6059_s7 }
 0x3ee   :  { %2815 = vsyncpa [#allocation4], 1 }
 0x3ef   :  { %2817 = vsyncpa [#allocation4 + $0x1], 1 }
 0x3f0   :  { %2818 = vsyncpa [#allocation5], 1 }
 0x3f1   :  { %2820 = vsyncpa [#allocation5 + $0x1], 1 }

</bundles_post_ra>
